<compile_context>
chip_gen: v7x
topology: tpu7x:2x2x1
jax: 0.10.0
libtpu: 0.0.40
codegen_flags: <defaults>
</compile_context>

<pallas_src>
import jax
import jax.numpy as jnp
from jax.experimental import pallas as pl
from jax.experimental.pallas import tpu as pltpu

CHANNELS = 1
IMG_SIZE = 28
IMG_SHAPE = (CHANNELS, IMG_SIZE, IMG_SIZE)
LATENT_DIM = 100
LATENT_PAD = 128                           # zero-padded latent, full MXU tile
OUT_DIM = CHANNELS * IMG_SIZE * IMG_SIZE   # 784
BN_EPS = 1e-5
LEAKY_SLOPE = 0.2

# Packed layout for all small (1, width) parameters, f32. Every offset is a
# multiple of 128 (all widths before b5 are multiples of 128), so every slice
# start is lane-aligned.
_PACK_LAYOUT = {}
_off = 0
for _name, _w in [
    ("b1", 128),
    ("b2", 256), ("g2", 256), ("be2", 256),
    ("b3", 512), ("g3", 512), ("be3", 512),
    ("b4", 1024), ("g4", 1024), ("be4", 1024),
    ("b5", OUT_DIM),
]:
    _PACK_LAYOUT[_name] = (_off, _w)
    _off += _w
PACK_TOTAL = _off  # 6288


def _leaky_relu(x):
    return jnp.where(x > 0, x, LEAKY_SLOPE * x)


def _batchnorm_train(x, gamma, beta):
    # Training-mode BatchNorm1d: batch mean, biased batch variance.
    # Single-pass variance mean(x*x) - mean(x)^2 with a clamp against
    # cancellation-induced negatives.
    mean = jnp.mean(x, axis=0, keepdims=True)
    mean_sq = jnp.mean(x * x, axis=0, keepdims=True)
    var = jnp.maximum(mean_sq - mean * mean, 0.0)
    inv = jax.lax.rsqrt(var + BN_EPS)
    return (x - mean) * inv * gamma + beta


def generator_kernel(x_ref, w1_ref, w2_ref, w3_ref, w4_ref, w5_ref, p_ref,
                     out_ref):
    # Per-use lane-aligned static slices of the packed-param ref (no upfront
    # materialization of the whole (1, 6288) value).
    def vec(name):
        off, width = _PACK_LAYOUT[name]
        return p_ref[:, off:off + width]

    # MXU operands in bf16, accumulate in f32; elementwise chain stays f32.
    x = x_ref[...].astype(jnp.bfloat16)                      # (B, 128)

    # linear1 + LeakyReLU
    h = jnp.dot(x, w1_ref[...], preferred_element_type=jnp.float32) + vec("b1")
    h = _leaky_relu(h)

    # linear2 + BatchNorm + LeakyReLU
    h = jnp.dot(h.astype(jnp.bfloat16), w2_ref[...],
                preferred_element_type=jnp.float32) + vec("b2")
    h = _leaky_relu(_batchnorm_train(h, vec("g2"), vec("be2")))

    # linear3 + BatchNorm + LeakyReLU
    h = jnp.dot(h.astype(jnp.bfloat16), w3_ref[...],
                preferred_element_type=jnp.float32) + vec("b3")
    h = _leaky_relu(_batchnorm_train(h, vec("g3"), vec("be3")))

    # linear4 + BatchNorm + LeakyReLU
    h = jnp.dot(h.astype(jnp.bfloat16), w4_ref[...],
                preferred_element_type=jnp.float32) + vec("b4")
    h = _leaky_relu(_batchnorm_train(h, vec("g4"), vec("be4")))

    # linear5 + tanh (last dim 784 = full array width; masked tail store)
    h = jnp.dot(h.astype(jnp.bfloat16), w5_ref[...],
                preferred_element_type=jnp.float32) + vec("b5")
    out_ref[...] = jnp.tanh(h)


def init_params(key):
    """Deterministic PyTorch-style init: U(-1/sqrt(fan_in), 1/sqrt(fan_in)).

    Weights stored (in, out) bf16 (w1 zero-padded 100->128 rows); all 1-D
    params packed into one (1, PACK_TOTAL) f32 array.
    """
    dims = [(LATENT_DIM, 128), (128, 256), (256, 512), (512, 1024),
            (1024, OUT_DIM)]
    weights = {}
    small = {}
    for idx, (fin, fout) in enumerate(dims, start=1):
        key, kw, kb = jax.random.split(key, 3)
        bound = 1.0 / (fin ** 0.5)
        w = jax.random.uniform(kw, (fin, fout), jnp.float32, -bound, bound)
        b = jax.random.uniform(kb, (fout,), jnp.float32, -bound, bound)
        if idx == 1:
            # pad latent 100 -> 128 with zero rows (padded x columns are zero)
            w = jnp.pad(w, ((0, LATENT_PAD - LATENT_DIM), (0, 0)))
        weights[f"w{idx}"] = w.astype(jnp.bfloat16)
        small[f"b{idx}"] = b
    # BatchNorm affine params (PyTorch default: gamma=1, beta=0)
    for idx, fout in [(2, 256), (3, 512), (4, 1024)]:
        small[f"g{idx}"] = jnp.ones((fout,), jnp.float32)
        small[f"be{idx}"] = jnp.zeros((fout,), jnp.float32)

    packed = jnp.zeros((1, PACK_TOTAL), jnp.float32)
    for name, (off, width) in _PACK_LAYOUT.items():
        packed = packed.at[0, off:off + width].set(small[name])

    return {**weights, "packed": packed}


@jax.jit
def _generator_forward_batched(x, params):
    """x: (N, B, latentDim) — N independent batches (BN stats per batch)."""
    N, B, _ = x.shape
    # zero-pad latent 100 -> 128 (matches zero-padded rows of w1)
    x_pad = jnp.pad(x, ((0, 0), (0, 0), (0, LATENT_PAD - LATENT_DIM)))

    w1, w2, w3, w4, w5 = (params[f"w{i}"] for i in range(1, 6))
    packed = params["packed"]

    def resident(arr):
        # Full-array block, constant index map -> DMA'd once, VMEM-resident
        # across the whole micro-batch grid.
        return pl.BlockSpec(arr.shape, lambda n: (0,) * arr.ndim)

    out = pl.pallas_call(
        generator_kernel,
        out_shape=jax.ShapeDtypeStruct((N, B, OUT_DIM), jnp.float32),
        grid=(N,),
        in_specs=[
            pl.BlockSpec((None, B, LATENT_PAD), lambda n: (n, 0, 0)),
            resident(w1), resident(w2), resident(w3), resident(w4),
            resident(w5), resident(packed),
        ],
        out_specs=pl.BlockSpec((None, B, OUT_DIM), lambda n: (n, 0, 0)),
        compiler_params=pltpu.CompilerParams(
            dimension_semantics=("parallel",),
            vmem_limit_bytes=32 * 1024 * 1024),
    )(x_pad, w1, w2, w3, w4, w5, packed)

    # Matches `out.view(out.size(0), *imgShape)` -> NCHW per batch
    return out.reshape(N, B, *IMG_SHAPE)


def generator_forward(x, params):
    """x: (B, latentDim). Matches the PyTorch module's forward exactly."""
    return _generator_forward_batched(x[None], params)[0]


def generator_forward_many(x, params):
    """x: (N, B, latentDim): N independent generator calls fused into one
    pallas_call so the weight DMA is amortized N-fold."""
    return _generator_forward_batched(x, params)


if __name__ == "__main__":
    key = jax.random.PRNGKey(0)
    key_params, key_x, key_x2 = jax.random.split(key, 3)
    params = init_params(key_params)

    B = 8
    x = jax.random.normal(key_x, (B, LATENT_DIM), jnp.float32)

    out = generator_forward(x, params)
    jax.block_until_ready(out)

    assert out.shape == (B, *IMG_SHAPE), out.shape
    assert out.dtype == jnp.float32
    assert bool(jnp.all(jnp.isfinite(out)))
    assert bool(jnp.all(jnp.abs(out) <= 1.0 + 1e-6))  # tanh range

    # Amortized path: several independent micro-batches in one pallas_call
    # with VMEM-resident weights; must agree with the single-batch path.
    N = 3
    x_many = jax.random.normal(key_x2, (N, B, LATENT_DIM), jnp.float32)
    out_many = generator_forward_many(x_many, params)
    jax.block_until_ready(out_many)
    assert out_many.shape == (N, B, *IMG_SHAPE), out_many.shape
    ref0 = generator_forward(x_many[0], params)
    assert bool(jnp.allclose(out_many[0], ref0, atol=1e-6, rtol=1e-6))

    print("KERNEL_OK")
</pallas_src>

<mosaic_0001>
module attributes {stable_mosaic.version = 11 : i64} {
  func.func @generator_kernel(%arg0: i32, %arg1: memref<1x8x128xf32, #tpu.memory_space<vmem>>, %arg2: memref<128x128xbf16, #tpu.memory_space<vmem>>, %arg3: memref<128x256xbf16, #tpu.memory_space<vmem>>, %arg4: memref<256x512xbf16, #tpu.memory_space<vmem>>, %arg5: memref<512x1024xbf16, #tpu.memory_space<vmem>>, %arg6: memref<1024x784xbf16, #tpu.memory_space<vmem>>, %arg7: memref<1x6288xf32, #tpu.memory_space<vmem>>, %arg8: memref<1x8x784xf32, #tpu.memory_space<vmem>>) attributes {dimension_semantics = [#tpu.dimension_semantics<parallel>], iteration_bounds = array<i64: 1>, scalar_prefetch = 0 : i64, scratch_operands = 0 : i64, tpu.core_type = #tpu.core_type<tc>, window_params = [{transform_indices = @transform_0, window_bounds = array<i64: 1, 8, 128>}, {pipeline_mode = #tpu.pipeline_mode<synchronous>, transform_indices = @transform_1, window_bounds = array<i64: 128, 128>}, {pipeline_mode = #tpu.pipeline_mode<synchronous>, transform_indices = @transform_2, window_bounds = array<i64: 128, 256>}, {pipeline_mode = #tpu.pipeline_mode<synchronous>, transform_indices = @transform_3, window_bounds = array<i64: 256, 512>}, {pipeline_mode = #tpu.pipeline_mode<synchronous>, transform_indices = @transform_4, window_bounds = array<i64: 512, 1024>}, {pipeline_mode = #tpu.pipeline_mode<synchronous>, transform_indices = @transform_5, window_bounds = array<i64: 1024, 784>}, {pipeline_mode = #tpu.pipeline_mode<synchronous>, transform_indices = @transform_6, window_bounds = array<i64: 1, 6288>}, {transform_indices = @transform_7, window_bounds = array<i64: 1, 8, 784>}]} {
    %c0 = arith.constant 0 : index
    %c0_0 = arith.constant 0 : index
    %c0_1 = arith.constant 0 : index
    %0 = vector.load %arg1[%c0, %c0_0, %c0_1] : memref<1x8x128xf32, #tpu.memory_space<vmem>>, vector<1x8x128xf32>
    %1 = vector.shape_cast %0 : vector<1x8x128xf32> to vector<8x128xf32>
    %2 = arith.truncf %1 : vector<8x128xf32> to vector<8x128xbf16>
    %c0_2 = arith.constant 0 : index
    %c0_3 = arith.constant 0 : index
    %3 = vector.load %arg2[%c0_2, %c0_3] : memref<128x128xbf16, #tpu.memory_space<vmem>>, vector<128x128xbf16>
    %cst = arith.constant dense<0.000000e+00> : vector<8x128xf32>
    %4 = tpu.matmul %2, %3, %cst {dimension_numbers = #tpu.dot_dimension_numbers<[1], [0], [0], [1], [0, 0, 1, 1], [], []>} : vector<8x128xbf16>, vector<128x128xbf16>, vector<8x128xf32> -> vector<8x128xf32>
    %c0_4 = arith.constant 0 : index
    %c0_5 = arith.constant 0 : index
    %5 = vector.load %arg7[%c0_4, %c0_5] : memref<1x6288xf32, #tpu.memory_space<vmem>>, vector<1x128xf32>
    %6 = vector.broadcast %5 : vector<1x128xf32> to vector<8x128xf32>
    %7 = arith.addf %4, %6 : vector<8x128xf32>
    %cst_6 = arith.constant 0.000000e+00 : f32
    %8 = vector.broadcast %cst_6 : f32 to vector<8x128xf32>
    %9 = arith.cmpf ogt, %7, %8 : vector<8x128xf32>
    %cst_7 = arith.constant 2.000000e-01 : f32
    %10 = vector.broadcast %cst_7 : f32 to vector<8x128xf32>
    %11 = arith.mulf %10, %7 : vector<8x128xf32>
    %12 = arith.select %9, %7, %11 : vector<8x128xi1>, vector<8x128xf32>
    %13 = arith.truncf %12 : vector<8x128xf32> to vector<8x128xbf16>
    %c0_8 = arith.constant 0 : index
    %c0_9 = arith.constant 0 : index
    %14 = vector.load %arg3[%c0_8, %c0_9] : memref<128x256xbf16, #tpu.memory_space<vmem>>, vector<128x256xbf16>
    %cst_10 = arith.constant dense<0.000000e+00> : vector<8x256xf32>
    %15 = tpu.matmul %13, %14, %cst_10 {dimension_numbers = #tpu.dot_dimension_numbers<[1], [0], [0], [1], [0, 0, 1, 1], [], []>} : vector<8x128xbf16>, vector<128x256xbf16>, vector<8x256xf32> -> vector<8x256xf32>
    %c0_11 = arith.constant 0 : index
    %c128 = arith.constant 128 : index
    %16 = vector.load %arg7[%c0_11, %c128] : memref<1x6288xf32, #tpu.memory_space<vmem>>, vector<1x256xf32>
    %17 = vector.broadcast %16 : vector<1x256xf32> to vector<8x256xf32>
    %18 = arith.addf %15, %17 : vector<8x256xf32>
    %c0_12 = arith.constant 0 : index
    %c384 = arith.constant 384 : index
    %19 = vector.load %arg7[%c0_12, %c384] : memref<1x6288xf32, #tpu.memory_space<vmem>>, vector<1x256xf32>
    %c0_13 = arith.constant 0 : index
    %c640 = arith.constant 640 : index
    %20 = vector.load %arg7[%c0_13, %c640] : memref<1x6288xf32, #tpu.memory_space<vmem>>, vector<1x256xf32>
    %cst_14 = arith.constant dense<0.000000e+00> : vector<256xf32>
    %21 = vector.multi_reduction <add>, %18, %cst_14 [0] : vector<8x256xf32> to vector<256xf32>
    %22 = vector.shape_cast %21 : vector<256xf32> to vector<1x256xf32>
    %cst_15 = arith.constant 8.000000e+00 : f32
    %23 = vector.broadcast %cst_15 : f32 to vector<1x256xf32>
    %24 = arith.divf %22, %23 : vector<1x256xf32>
    %25 = arith.mulf %18, %18 : vector<8x256xf32>
    %cst_16 = arith.constant dense<0.000000e+00> : vector<256xf32>
    %26 = vector.multi_reduction <add>, %25, %cst_16 [0] : vector<8x256xf32> to vector<256xf32>
    %27 = vector.shape_cast %26 : vector<256xf32> to vector<1x256xf32>
    %cst_17 = arith.constant 8.000000e+00 : f32
    %28 = vector.broadcast %cst_17 : f32 to vector<1x256xf32>
    %29 = arith.divf %27, %28 : vector<1x256xf32>
    %30 = arith.mulf %24, %24 : vector<1x256xf32>
    %31 = arith.subf %29, %30 : vector<1x256xf32>
    %cst_18 = arith.constant 0.000000e+00 : f32
    %32 = vector.broadcast %cst_18 : f32 to vector<1x256xf32>
    %33 = arith.maximumf %31, %32 : vector<1x256xf32>
    %cst_19 = arith.constant 9.99999974E-6 : f32
    %34 = vector.broadcast %cst_19 : f32 to vector<1x256xf32>
    %35 = arith.addf %33, %34 : vector<1x256xf32>
    %36 = math.rsqrt %35 : vector<1x256xf32>
    %37 = vector.broadcast %24 : vector<1x256xf32> to vector<8x256xf32>
    %38 = arith.subf %18, %37 : vector<8x256xf32>
    %39 = vector.broadcast %36 : vector<1x256xf32> to vector<8x256xf32>
    %40 = arith.mulf %38, %39 : vector<8x256xf32>
    %41 = vector.broadcast %19 : vector<1x256xf32> to vector<8x256xf32>
    %42 = arith.mulf %40, %41 : vector<8x256xf32>
    %43 = vector.broadcast %20 : vector<1x256xf32> to vector<8x256xf32>
    %44 = arith.addf %42, %43 : vector<8x256xf32>
    %cst_20 = arith.constant 0.000000e+00 : f32
    %45 = vector.broadcast %cst_20 : f32 to vector<8x256xf32>
    %46 = arith.cmpf ogt, %44, %45 : vector<8x256xf32>
    %cst_21 = arith.constant 2.000000e-01 : f32
    %47 = vector.broadcast %cst_21 : f32 to vector<8x256xf32>
    %48 = arith.mulf %47, %44 : vector<8x256xf32>
    %49 = arith.select %46, %44, %48 : vector<8x256xi1>, vector<8x256xf32>
    %50 = arith.truncf %49 : vector<8x256xf32> to vector<8x256xbf16>
    %c0_22 = arith.constant 0 : index
    %c0_23 = arith.constant 0 : index
    %51 = vector.load %arg4[%c0_22, %c0_23] : memref<256x512xbf16, #tpu.memory_space<vmem>>, vector<256x512xbf16>
    %cst_24 = arith.constant dense<0.000000e+00> : vector<8x512xf32>
    %52 = tpu.matmul %50, %51, %cst_24 {dimension_numbers = #tpu.dot_dimension_numbers<[1], [0], [0], [1], [0, 0, 1, 1], [], []>} : vector<8x256xbf16>, vector<256x512xbf16>, vector<8x512xf32> -> vector<8x512xf32>
    %c0_25 = arith.constant 0 : index
    %c896 = arith.constant 896 : index
    %53 = vector.load %arg7[%c0_25, %c896] : memref<1x6288xf32, #tpu.memory_space<vmem>>, vector<1x512xf32>
    %54 = vector.broadcast %53 : vector<1x512xf32> to vector<8x512xf32>
    %55 = arith.addf %52, %54 : vector<8x512xf32>
    %c0_26 = arith.constant 0 : index
    %c1408 = arith.constant 1408 : index
    %56 = vector.load %arg7[%c0_26, %c1408] : memref<1x6288xf32, #tpu.memory_space<vmem>>, vector<1x512xf32>
    %c0_27 = arith.constant 0 : index
    %c1920 = arith.constant 1920 : index
    %57 = vector.load %arg7[%c0_27, %c1920] : memref<1x6288xf32, #tpu.memory_space<vmem>>, vector<1x512xf32>
    %cst_28 = arith.constant dense<0.000000e+00> : vector<512xf32>
    %58 = vector.multi_reduction <add>, %55, %cst_28 [0] : vector<8x512xf32> to vector<512xf32>
    %59 = vector.shape_cast %58 : vector<512xf32> to vector<1x512xf32>
    %cst_29 = arith.constant 8.000000e+00 : f32
    %60 = vector.broadcast %cst_29 : f32 to vector<1x512xf32>
    %61 = arith.divf %59, %60 : vector<1x512xf32>
    %62 = arith.mulf %55, %55 : vector<8x512xf32>
    %cst_30 = arith.constant dense<0.000000e+00> : vector<512xf32>
    %63 = vector.multi_reduction <add>, %62, %cst_30 [0] : vector<8x512xf32> to vector<512xf32>
    %64 = vector.shape_cast %63 : vector<512xf32> to vector<1x512xf32>
    %cst_31 = arith.constant 8.000000e+00 : f32
    %65 = vector.broadcast %cst_31 : f32 to vector<1x512xf32>
    %66 = arith.divf %64, %65 : vector<1x512xf32>
    %67 = arith.mulf %61, %61 : vector<1x512xf32>
    %68 = arith.subf %66, %67 : vector<1x512xf32>
    %cst_32 = arith.constant 0.000000e+00 : f32
    %69 = vector.broadcast %cst_32 : f32 to vector<1x512xf32>
    %70 = arith.maximumf %68, %69 : vector<1x512xf32>
    %cst_33 = arith.constant 9.99999974E-6 : f32
    %71 = vector.broadcast %cst_33 : f32 to vector<1x512xf32>
    %72 = arith.addf %70, %71 : vector<1x512xf32>
    %73 = math.rsqrt %72 : vector<1x512xf32>
    %74 = vector.broadcast %61 : vector<1x512xf32> to vector<8x512xf32>
    %75 = arith.subf %55, %74 : vector<8x512xf32>
    %76 = vector.broadcast %73 : vector<1x512xf32> to vector<8x512xf32>
    %77 = arith.mulf %75, %76 : vector<8x512xf32>
    %78 = vector.broadcast %56 : vector<1x512xf32> to vector<8x512xf32>
    %79 = arith.mulf %77, %78 : vector<8x512xf32>
    %80 = vector.broadcast %57 : vector<1x512xf32> to vector<8x512xf32>
    %81 = arith.addf %79, %80 : vector<8x512xf32>
    %cst_34 = arith.constant 0.000000e+00 : f32
    %82 = vector.broadcast %cst_34 : f32 to vector<8x512xf32>
    %83 = arith.cmpf ogt, %81, %82 : vector<8x512xf32>
    %cst_35 = arith.constant 2.000000e-01 : f32
    %84 = vector.broadcast %cst_35 : f32 to vector<8x512xf32>
    %85 = arith.mulf %84, %81 : vector<8x512xf32>
    %86 = arith.select %83, %81, %85 : vector<8x512xi1>, vector<8x512xf32>
    %87 = arith.truncf %86 : vector<8x512xf32> to vector<8x512xbf16>
    %c0_36 = arith.constant 0 : index
    %c0_37 = arith.constant 0 : index
    %88 = vector.load %arg5[%c0_36, %c0_37] : memref<512x1024xbf16, #tpu.memory_space<vmem>>, vector<512x1024xbf16>
    %cst_38 = arith.constant dense<0.000000e+00> : vector<8x1024xf32>
    %89 = tpu.matmul %87, %88, %cst_38 {dimension_numbers = #tpu.dot_dimension_numbers<[1], [0], [0], [1], [0, 0, 1, 1], [], []>} : vector<8x512xbf16>, vector<512x1024xbf16>, vector<8x1024xf32> -> vector<8x1024xf32>
    %c0_39 = arith.constant 0 : index
    %c2432 = arith.constant 2432 : index
    %90 = vector.load %arg7[%c0_39, %c2432] : memref<1x6288xf32, #tpu.memory_space<vmem>>, vector<1x1024xf32>
    %91 = vector.broadcast %90 : vector<1x1024xf32> to vector<8x1024xf32>
    %92 = arith.addf %89, %91 : vector<8x1024xf32>
    %c0_40 = arith.constant 0 : index
    %c3456 = arith.constant 3456 : index
    %93 = vector.load %arg7[%c0_40, %c3456] : memref<1x6288xf32, #tpu.memory_space<vmem>>, vector<1x1024xf32>
    %c0_41 = arith.constant 0 : index
    %c4480 = arith.constant 4480 : index
    %94 = vector.load %arg7[%c0_41, %c4480] : memref<1x6288xf32, #tpu.memory_space<vmem>>, vector<1x1024xf32>
    %cst_42 = arith.constant dense<0.000000e+00> : vector<1024xf32>
    %95 = vector.multi_reduction <add>, %92, %cst_42 [0] : vector<8x1024xf32> to vector<1024xf32>
    %96 = vector.shape_cast %95 : vector<1024xf32> to vector<1x1024xf32>
    %cst_43 = arith.constant 8.000000e+00 : f32
    %97 = vector.broadcast %cst_43 : f32 to vector<1x1024xf32>
    %98 = arith.divf %96, %97 : vector<1x1024xf32>
    %99 = arith.mulf %92, %92 : vector<8x1024xf32>
    %cst_44 = arith.constant dense<0.000000e+00> : vector<1024xf32>
    %100 = vector.multi_reduction <add>, %99, %cst_44 [0] : vector<8x1024xf32> to vector<1024xf32>
    %101 = vector.shape_cast %100 : vector<1024xf32> to vector<1x1024xf32>
    %cst_45 = arith.constant 8.000000e+00 : f32
    %102 = vector.broadcast %cst_45 : f32 to vector<1x1024xf32>
    %103 = arith.divf %101, %102 : vector<1x1024xf32>
    %104 = arith.mulf %98, %98 : vector<1x1024xf32>
    %105 = arith.subf %103, %104 : vector<1x1024xf32>
    %cst_46 = arith.constant 0.000000e+00 : f32
    %106 = vector.broadcast %cst_46 : f32 to vector<1x1024xf32>
    %107 = arith.maximumf %105, %106 : vector<1x1024xf32>
    %cst_47 = arith.constant 9.99999974E-6 : f32
    %108 = vector.broadcast %cst_47 : f32 to vector<1x1024xf32>
    %109 = arith.addf %107, %108 : vector<1x1024xf32>
    %110 = math.rsqrt %109 : vector<1x1024xf32>
    %111 = vector.broadcast %98 : vector<1x1024xf32> to vector<8x1024xf32>
    %112 = arith.subf %92, %111 : vector<8x1024xf32>
    %113 = vector.broadcast %110 : vector<1x1024xf32> to vector<8x1024xf32>
    %114 = arith.mulf %112, %113 : vector<8x1024xf32>
    %115 = vector.broadcast %93 : vector<1x1024xf32> to vector<8x1024xf32>
    %116 = arith.mulf %114, %115 : vector<8x1024xf32>
    %117 = vector.broadcast %94 : vector<1x1024xf32> to vector<8x1024xf32>
    %118 = arith.addf %116, %117 : vector<8x1024xf32>
    %cst_48 = arith.constant 0.000000e+00 : f32
    %119 = vector.broadcast %cst_48 : f32 to vector<8x1024xf32>
    %120 = arith.cmpf ogt, %118, %119 : vector<8x1024xf32>
    %cst_49 = arith.constant 2.000000e-01 : f32
    %121 = vector.broadcast %cst_49 : f32 to vector<8x1024xf32>
    %122 = arith.mulf %121, %118 : vector<8x1024xf32>
    %123 = arith.select %120, %118, %122 : vector<8x1024xi1>, vector<8x1024xf32>
    %124 = arith.truncf %123 : vector<8x1024xf32> to vector<8x1024xbf16>
    %c0_50 = arith.constant 0 : index
    %c0_51 = arith.constant 0 : index
    %125 = vector.load %arg6[%c0_50, %c0_51] : memref<1024x784xbf16, #tpu.memory_space<vmem>>, vector<1024x784xbf16>
    %cst_52 = arith.constant dense<0.000000e+00> : vector<8x784xf32>
    %126 = tpu.matmul %124, %125, %cst_52 {dimension_numbers = #tpu.dot_dimension_numbers<[1], [0], [0], [1], [0, 0, 1, 1], [], []>} : vector<8x1024xbf16>, vector<1024x784xbf16>, vector<8x784xf32> -> vector<8x784xf32>
    %c0_53 = arith.constant 0 : index
    %c5504 = arith.constant 5504 : index
    %127 = vector.load %arg7[%c0_53, %c5504] : memref<1x6288xf32, #tpu.memory_space<vmem>>, vector<1x784xf32>
    %128 = vector.broadcast %127 : vector<1x784xf32> to vector<8x784xf32>
    %129 = arith.addf %126, %128 : vector<8x784xf32>
    %130 = math.tanh %129 : vector<8x784xf32>
    %c0_54 = arith.constant 0 : index
    %c0_55 = arith.constant 0 : index
    %c0_56 = arith.constant 0 : index
    %131 = vector.load %arg8[%c0_54, %c0_55, %c0_56] : memref<1x8x784xf32, #tpu.memory_space<vmem>>, vector<1x8x784xf32>
    %132 = vector.shape_cast %131 : vector<1x8x784xf32> to vector<8x784xf32>
    %133 = vector.shape_cast %130 : vector<8x784xf32> to vector<1x8x784xf32>
    tpu.vector_store %arg8[%c0_54, %c0_55, %c0_56], %133 {strides = array<i32>} : memref<1x8x784xf32, #tpu.memory_space<vmem>>, vector<1x8x784xf32>,
    return
  }
  func.func @transform_0(%arg0: i32) -> (i32, i32, i32) {
    %c0_i32 = arith.constant 0 : i32
    %c0_i32_0 = arith.constant 0 : i32
    %c0_i32_1 = arith.constant 0 : i32
    return %arg0, %c0_i32, %c0_i32_0 : i32, i32, i32
  }
  func.func @transform_1(%arg0: i32) -> (i32, i32) {
    %c0_i32 = arith.constant 0 : i32
    %c0_i32_0 = arith.constant 0 : i32
    %c0_i32_1 = arith.constant 0 : i32
    return %c0_i32, %c0_i32_0 : i32, i32
  }
  func.func @transform_2(%arg0: i32) -> (i32, i32) {
    %c0_i32 = arith.constant 0 : i32
    %c0_i32_0 = arith.constant 0 : i32
    %c0_i32_1 = arith.constant 0 : i32
    return %c0_i32, %c0_i32_0 : i32, i32
  }
  func.func @transform_3(%arg0: i32) -> (i32, i32) {
    %c0_i32 = arith.constant 0 : i32
    %c0_i32_0 = arith.constant 0 : i32
    %c0_i32_1 = arith.constant 0 : i32
    return %c0_i32, %c0_i32_0 : i32, i32
  }
  func.func @transform_4(%arg0: i32) -> (i32, i32) {
    %c0_i32 = arith.constant 0 : i32
    %c0_i32_0 = arith.constant 0 : i32
    %c0_i32_1 = arith.constant 0 : i32
    return %c0_i32, %c0_i32_0 : i32, i32
  }
  func.func @transform_5(%arg0: i32) -> (i32, i32) {
    %c0_i32 = arith.constant 0 : i32
    %c0_i32_0 = arith.constant 0 : i32
    %c0_i32_1 = arith.constant 0 : i32
    return %c0_i32, %c0_i32_0 : i32, i32
  }
  func.func @transform_6(%arg0: i32) -> (i32, i32) {
    %c0_i32 = arith.constant 0 : i32
    %c0_i32_0 = arith.constant 0 : i32
    %c0_i32_1 = arith.constant 0 : i32
    return %c0_i32, %c0_i32_0 : i32, i32
  }
  func.func @transform_7(%arg0: i32) -> (i32, i32, i32) {
    %c0_i32 = arith.constant 0 : i32
    %c0_i32_0 = arith.constant 0 : i32
    %c0_i32_1 = arith.constant 0 : i32
    return %arg0, %c0_i32, %c0_i32_0 : i32, i32, i32
  }
}

</mosaic_0001>

<bundles_post_ra>
// kernel: _generator_forward_batched.1
= control target key start
LH: loop header
LB: loop body
LE: loop exit
PB: predicated region body
PF: predicated region fallthrough
CT: control target
= control target key end

     0   :  { %v8547_v0 = vmov 0.0   ;;  %vm8548_vm0 = vmmov 0   ;;  %v8549_v27 = vmov 0   ;;  %s11368_s1 = inlined_call_operand.vmem [shape: bf16[128,128], index: 1, kind: input, shape index: {}]   ;;  %s11369_s2 = inlined_call_operand.vmem [shape: bf16[128,256], index: 2, kind: input, shape index: {}]   ;;  %s11370_s0 = inlined_call_operand.vmem [shape: f32[1,8,128], index: 0, kind: input, shape index: {}]   ;;  %s11371_s3 = inlined_call_operand.vmem [shape: bf16[256,512], index: 3, kind: input, shape index: {}]   ;;  %s11372_s6 = inlined_call_operand.vmem [shape: f32[1,6288], index: 6, kind: input, shape index: {}]   ;;  %s11373_s4 = inlined_call_operand.vmem [shape: bf16[512,1024], index: 4, kind: input, shape index: {}]   ;;  %s11374_s5 = inlined_call_operand.vmem [shape: bf16[1024,784], index: 5, kind: input, shape index: {}]   ;;  %s11375_s7 = inlined_call_operand.vmem [shape: f32[1,8,784], index: 7, kind: output, shape index: {}]  }
   0x1   :  { %7646 = vmatprep.subr.bf16.mxu0 %v8547_v0  ;;  %v7735_v1 = vld [vmem:[%s11368_s1] sm:$0xff]   ;;  %7662 = vmatprep.mubr.msk.bf16.mxu0 %vm8548_vm0, %v8547_v0  ;;  %v7736_v2 = vld [vmem:[%s11368_s1 + $0x8] sm:$0xff]   ;;  %v7737_v3 = vld [vmem:[%s11368_s1 + $0x10] sm:$0xff]   ;;  %vm6750_vm0 = vcmask 130048  }
   0x2   :  { %7647 = vmatpush3.bf16.msra.mxu0 %v7735_v1  ;;  %v7743_v4 = vld [vmem:[%s11369_s2 + $0x4] ss:$8 sps:$4 sm:$0xff]   ;;  %v7745_v5 = vld [vmem:[%s11369_s2] ss:$8 sps:$4 sm:$0xff]   ;;  %v7738_v6 = vld [vmem:[%s11368_s1 + $0x18] sm:$0xff]   ;;  %284 = vmatprep.mubr.bf16.mxu1 %v8549_v27 }
   0x3   :  { %7648 = vmatprep.subr.bf16.mxu0 %v8547_v0  ;;  %v7746_v7 = vld [vmem:[%s11369_s2 + $0x14] ss:$8 sps:$4 sm:$0xff]   ;;  %252 = vmatprep.subr.bf16.mxu1 %v7743_v4  ;;  %v7748_v8 = vld [vmem:[%s11369_s2 + $0x10] ss:$8 sps:$4 sm:$0xff]   ;;  %v7749_v9 = vld [vmem:[%s11369_s2 + $0x24] ss:$8 sps:$4 sm:$0xff]  }
   0x4   :  { %253 = vmatpush1.bf16.msra.mxu1 %v7745_v5  ;;  %v7739_v10 = vld [vmem:[%s11368_s1 + $0x20] sm:$0xff]   ;;  %v7752_v12 = vld [vmem:[%s11369_s2 + $0x34] ss:$8 sps:$4 sm:$0xff]   ;;  %v7740_v13 = vld [vmem:[%s11368_s1 + $0x28] sm:$0xff]  }
   0x5   :  { %254 = vmatprep.subr.bf16.mxu1 %v7746_v7  ;;  %v7751_v11 = vld [vmem:[%s11369_s2 + $0x20] ss:$8 sps:$4 sm:$0xff]   ;;  %v7754_v14 = vld [vmem:[%s11369_s2 + $0x30] ss:$8 sps:$4 sm:$0xff]   ;;  %v7755_v15 = vld [vmem:[%s11369_s2 + $0x44] ss:$8 sps:$4 sm:$0xff]  }
   0x6   :  { %7649 = vmatpush3.bf16.msra.mxu0 %v7736_v2  ;;  %v7741_v16 = vld [vmem:[%s11368_s1 + $0x30] sm:$0xff]   ;;  %v7757_v17 = vld [vmem:[%s11369_s2 + $0x40] ss:$8 sps:$4 sm:$0xff]   ;;  %v7742_v19 = vld [vmem:[%s11368_s1 + $0x38] sm:$0xff]  }
   0x7   :  { %7650 = vmatprep.subr.bf16.mxu0 %v8547_v0  ;;  %v7758_v18 = vld [vmem:[%s11369_s2 + $0x54] ss:$8 sps:$4 sm:$0xff]   ;;  %v27_v20 = vld [vmem:[%s11370_s0] sm:$0xff]  ;;  %v7760_v21 = vld [vmem:[%s11369_s2 + $0x50] ss:$8 sps:$4 sm:$0xff]  }
   0x8   :  { %255 = vmatpush1.bf16.msra.mxu1 %v7748_v8  ;;  %v28_v22 = vpack.c.bf16 %v27_v20, %v27_v20  ;;  %v7761_v23 = vld [vmem:[%s11369_s2 + $0x64] ss:$8 sps:$4 sm:$0xff]   ;;  %v7763_v24 = vld [vmem:[%s11369_s2 + $0x60] ss:$8 sps:$4 sm:$0xff]   ;;  %v7764_v25 = vld [vmem:[%s11369_s2 + $0x74] ss:$8 sps:$4 sm:$0xff]  }
   0x9   :  { %256 = vmatprep.subr.bf16.mxu1 %v7749_v9  ;;  %v7766_v26 = vld [vmem:[%s11369_s2 + $0x70] ss:$8 sps:$4 sm:$0xff]   ;;  %v7769_v28 = vld [vmem:[%s11371_s3 + $0x4] ss:$16 sps:$4 sm:$0xff]   ;;  %v6756_v29 = vld [vmem:[%s11372_s6] ss:$0 sm:$0xff] }
   0xa   :  { %7651 = vmatpush3.bf16.msra.mxu0 %v7737_v3  ;;  %v7767_v37 = vld [vmem:[%s11371_s3] ss:$16 sps:$4 sm:$0xff]   ;;  %v7772_v39 = vld [vmem:[%s11371_s3 + $0x24] ss:$16 sps:$4 sm:$0xff]   ;;  %v7817_v5 = vld [vmem:[%s11371_s3 + $0xc] ss:$16 sps:$4 sm:$0xff]  }
   0xb   :  { %7652 = vmatprep.subr.bf16.mxu0 %v8547_v0  ;;  %v7770_v40 = vld [vmem:[%s11371_s3 + $0x20] ss:$16 sps:$4 sm:$0xff]   ;;  %v7775_v41 = vld [vmem:[%s11371_s3 + $0x44] ss:$16 sps:$4 sm:$0xff]  }
   0xc   :  { %257 = vmatpush1.bf16.msra.mxu1 %v7751_v11  ;;  %v7773_v42 = vld [vmem:[%s11371_s3 + $0x40] ss:$16 sps:$4 sm:$0xff]   ;;  %v7778_v43 = vld [vmem:[%s11371_s3 + $0x64] ss:$16 sps:$4 sm:$0xff]  }
   0xd   :  { %258 = vmatprep.subr.bf16.mxu1 %v7752_v12  ;;  %v7776_v44 = vld [vmem:[%s11371_s3 + $0x60] ss:$16 sps:$4 sm:$0xff]   ;;  %v7781_v45 = vld [vmem:[%s11371_s3 + $0x84] ss:$16 sps:$4 sm:$0xff]  }
   0xe   :  { %7653 = vmatpush3.bf16.msra.mxu0 %v7738_v6  ;;  %v7779_v46 = vld [vmem:[%s11371_s3 + $0x80] ss:$16 sps:$4 sm:$0xff]   ;;  %v7784_v47 = vld [vmem:[%s11371_s3 + $0xa4] ss:$16 sps:$4 sm:$0xff]   ;;  %v162_v6 = vlaneseq }
   0xf   :  { %7654 = vmatprep.subr.bf16.mxu0 %v8547_v0  ;;  %v7782_v48 = vld [vmem:[%s11371_s3 + $0xa0] ss:$16 sps:$4 sm:$0xff]   ;;  %v7787_v49 = vld [vmem:[%s11371_s3 + $0xc4] ss:$16 sps:$4 sm:$0xff]  }
  0x10   :  { %259 = vmatpush1.bf16.msra.mxu1 %v7754_v14  ;;  %v7785_v50 = vld [vmem:[%s11371_s3 + $0xc0] ss:$16 sps:$4 sm:$0xff]   ;;  %v7790_v51 = vld [vmem:[%s11371_s3 + $0xe4] ss:$16 sps:$4 sm:$0xff]   ;;  %v8779_v14 = vshrl.u32 %v162_v6, 7 }
  0x11   :  { %260 = vmatprep.subr.bf16.mxu1 %v7755_v15  ;;  %v7788_v52 = vld [vmem:[%s11371_s3 + $0xe0] ss:$16 sps:$4 sm:$0xff]   ;;  %v7793_v53 = vld [vmem:[%s11371_s3 + $0x104] ss:$16 sps:$4 sm:$0xff]  }
  0x12   :  { %7655 = vmatpush3.bf16.msra.mxu0 %v7739_v10  ;;  %v7791_v54 = vld [vmem:[%s11371_s3 + $0x100] ss:$16 sps:$4 sm:$0xff]   ;;  %v7796_v55 = vld [vmem:[%s11371_s3 + $0x124] ss:$16 sps:$4 sm:$0xff]  }
  0x13   :  { %7656 = vmatprep.subr.bf16.mxu0 %v8547_v0  ;;  %v7794_v56 = vld [vmem:[%s11371_s3 + $0x120] ss:$16 sps:$4 sm:$0xff]   ;;  %v7799_v57 = vld [vmem:[%s11371_s3 + $0x144] ss:$16 sps:$4 sm:$0xff]  }
  0x14   :  { %261 = vmatpush1.bf16.msra.mxu1 %v7757_v17  ;;  %v7797_v58 = vld [vmem:[%s11371_s3 + $0x140] ss:$16 sps:$4 sm:$0xff]   ;;  %v7802_v59 = vld [vmem:[%s11371_s3 + $0x164] ss:$16 sps:$4 sm:$0xff]  }
  0x15   :  { %262 = vmatprep.subr.bf16.mxu1 %v7758_v18  ;;  %v7800_v60 = vld [vmem:[%s11371_s3 + $0x160] ss:$16 sps:$4 sm:$0xff]   ;;  %v7805_v61 = vld [vmem:[%s11371_s3 + $0x184] ss:$16 sps:$4 sm:$0xff]  }
  0x16   :  { %7657 = vmatpush3.bf16.msra.mxu0 %v7740_v13  ;;  %v7803_v62 = vld [vmem:[%s11371_s3 + $0x180] ss:$16 sps:$4 sm:$0xff]   ;;  %v7808_v63 = vld [vmem:[%s11371_s3 + $0x1a4] ss:$16 sps:$4 sm:$0xff]  }
  0x17   :  { %7658 = vmatprep.subr.bf16.mxu0 %v8547_v0  ;;  %v7809_v1 = vld [vmem:[%s11371_s3 + $0x1c0] ss:$16 sps:$4 sm:$0xff]   ;;  %v7811_v2 = vld [vmem:[%s11371_s3 + $0x1c4] ss:$16 sps:$4 sm:$0xff]  }
  0x18   :  { %263 = vmatpush1.bf16.msra.mxu1 %v7760_v21  ;;  %v7814_v3 = vld [vmem:[%s11371_s3 + $0x1e4] ss:$16 sps:$4 sm:$0xff]   ;;  %v7812_v4 = vld [vmem:[%s11371_s3 + $0x1e0] ss:$16 sps:$4 sm:$0xff]   ;;  %v8794_v21 = vsub.s32 1, %v8779_v14 }
  0x19   :  { %264 = vmatprep.subr.bf16.mxu1 %v7761_v23  ;;  %v1018_v7 = vld [vmem:[%s11373_s4] sm:$0xff] }
  0x1a   :  { %7659 = vmatpush3.bf16.msra.mxu0 %v7741_v16  ;;  %v1022_v8 = vld [vmem:[%s11373_s4 + $0x20] sm:$0xff] }
  0x1b   :  { %7660 = vmatprep.subr.bf16.mxu0 %v8547_v0  ;;  %v7806_v0 = vld [vmem:[%s11371_s3 + $0x1a0] ss:$16 sps:$4 sm:$0xff]   ;;  %v6845_v9 = vcombine.low %v1018_v7, %v1022_v8  ;;  %v6846_v10 = vcombine.high %v1018_v7, %v1022_v8 }
  0x1c   :  { %265 = vmatpush1.bf16.msra.mxu1 %v7763_v24  ;;  %v1026_v11 = vld [vmem:[%s11373_s4 + $0x40] sm:$0xff] }
  0x1d   :  { %266 = vmatprep.subr.bf16.mxu1 %v7764_v25  ;;  %v1030_v12 = vld [vmem:[%s11373_s4 + $0x60] sm:$0xff] }
  0x1e   :  { %7661 = vmatpush3.bf16.msra.mxu0 %v7742_v19  ;;  %v6854_v13 = vcombine.high %v1026_v11, %v1030_v12  ;;  %v6853_v15 = vcombine.low %v1026_v11, %v1030_v12  ;;  %v1034_v16 = vld [vmem:[%s11373_s4 + $0x80] sm:$0xff]  ;;  %v8788_v19 = vsub.s32 0, %v8779_v14 }
  0x1f   :  { %2596 = vmatprep.subr.bf16.mxu0 %v6846_v10  ;;  %v1038_v17 = vld [vmem:[%s11373_s4 + $0xa0] sm:$0xff] }
  0x20   :  { %267 = vmatpush1.bf16.msra.mxu1 %v7766_v26  ;;  %v6862_v18 = vcombine.high %v1034_v16, %v1038_v17  ;;  %v160_v20 = vld [vmem:[%s11372_s6 + $0x1] sm:$0x3]  ;;  %v294_v10 = vld [vmem:[%s11372_s6 + $0x5] sm:$0x3] }
  0x21   :  { %7663 = vmatmul.mubr.bf16.vlgmr.msra.gmra.mrb[0].mxu0 %v28_v22  ;;  %780 = vmatprep.subr.bf16.mxu1 %v7769_v28  ;;  %v6861_v22 = vcombine.low %v1034_v16, %v1038_v17  ;;  %v1042_v23 = vld [vmem:[%s11373_s4 + $0xc0] sm:$0xff]  ;;  %v165_v26 = vrot.slane %v160_v20, %v8788_v19  ;;  %v169_v27 = vrot.slane %v160_v20, %v8794_v21 }
  0x22   :  { %2597 = vmatpush1.bf16.msra.mxu0 %v6845_v9  ;;  %v1046_v24 = vld [vmem:[%s11373_s4 + $0xe0] sm:$0xff]  ;;  %v357_v20 = vrot.slane %v294_v10, %v8788_v19 }
  0x23   :  { %2598 = vmatprep.subr.bf16.mxu0 %v6854_v13  ;;  %v6870_v25 = vcombine.high %v1042_v23, %v1046_v24  ;;  %v6869_v28 = vcombine.low %v1042_v23, %v1046_v24  ;;  %v293_v9 = vld [vmem:[%s11372_s6 + $0x3] sm:$0x3]  ;;  %v361_v23 = vrot.slane %v294_v10, %v8794_v21 }
  0x24   :  { %v344_v12 = vrot.slane %v293_v9, %v8788_v19  ;;  %v348_v16 = vrot.slane %v293_v9, %v8794_v21  ;;  %v1039_v9 = vld [vmem:[%s11373_s4 + $0xa8] sm:$0xff] }
  0x26   :  { %2599 = vmatpush1.bf16.msra.mxu0 %v6853_v15 }
  0x27   :  { %2600 = vmatprep.subr.bf16.mxu0 %v6862_v18 }
  0x2a   :  { %2601 = vmatpush1.bf16.msra.mxu0 %v6861_v22 }
  0x2b   :  { %2602 = vmatprep.subr.bf16.mxu0 %v6870_v25 }
  0x2e   :  { %2603 = vmatpush1.bf16.msra.mxu0 %v6869_v28 }
  0xf4   :  { %v134_v30 = vpop.f32.mrb[0].mxu0 }
  0xf5   :  { %v135_v31 = vadd.f32 %v6756_v29, %v134_v30  ;;  %v7664_v32 = vpop.f32.mrb[1].mxu0 }
  0xf6   :  { %v137_v33 = vpop.f32.mrb[2].mxu0 }
  0xf7   :  { %vm140_vm1 = vcmp.gt.f32.partialorder %v135_v31, 0.0  ;;  %v141_v34 = vmul.f32 0.2, %v135_v31  ;;  %v7665_v35 = vpop.f32.mrb[3].mxu0 }
  0xf9   :  { %v142_v36 = vsel %vm140_vm1, %v135_v31, %v141_v34 }
  0xfa   :  { %v143_v38 = vpack.c.bf16 %v142_v36, %v142_v36 }
  0xfc   :  { %285 = vmatmul.mubr.bf16.vlgmr.msra.gmra.mrb[0].mxu1 %v143_v38 }
  0xfd   :  { %781 = vmatpush1.bf16.msra.mxu1 %v7767_v37 }
  0xfe   :  { %782 = vmatprep.subr.bf16.mxu1 %v7772_v39 }
 0x101   :  { %783 = vmatpush1.bf16.msra.mxu1 %v7770_v40 }
 0x102   :  { %784 = vmatprep.subr.bf16.mxu1 %v7775_v41 }
 0x105   :  { %785 = vmatpush1.bf16.msra.mxu1 %v7773_v42 }
 0x106   :  { %786 = vmatprep.subr.bf16.mxu1 %v7778_v43 }
 0x109   :  { %787 = vmatpush1.bf16.msra.mxu1 %v7776_v44 }
 0x10a   :  { %788 = vmatprep.subr.bf16.mxu1 %v7781_v45 }
 0x10d   :  { %789 = vmatpush1.bf16.msra.mxu1 %v7779_v46 }
 0x10e   :  { %790 = vmatprep.subr.bf16.mxu1 %v7784_v47 }
 0x111   :  { %791 = vmatpush1.bf16.msra.mxu1 %v7782_v48 }
 0x112   :  { %792 = vmatprep.subr.bf16.mxu1 %v7787_v49 }
 0x115   :  { %793 = vmatpush1.bf16.msra.mxu1 %v7785_v50 }
 0x116   :  { %794 = vmatprep.subr.bf16.mxu1 %v7790_v51 }
 0x119   :  { %795 = vmatpush1.bf16.msra.mxu1 %v7788_v52 }
 0x11a   :  { %796 = vmatprep.subr.bf16.mxu1 %v7793_v53 }
 0x11d   :  { %797 = vmatpush1.bf16.msra.mxu1 %v7791_v54 }
 0x11e   :  { %798 = vmatprep.subr.bf16.mxu1 %v7796_v55 }
 0x121   :  { %799 = vmatpush1.bf16.msra.mxu1 %v7794_v56 }
 0x122   :  { %800 = vmatprep.subr.bf16.mxu1 %v7799_v57 }
 0x125   :  { %801 = vmatpush1.bf16.msra.mxu1 %v7797_v58 }
 0x126   :  { %802 = vmatprep.subr.bf16.mxu1 %v7802_v59 }
 0x129   :  { %803 = vmatpush1.bf16.msra.mxu1 %v7800_v60 }
 0x12a   :  { %804 = vmatprep.subr.bf16.mxu1 %v7805_v61 }
 0x12d   :  { %805 = vmatpush1.bf16.msra.mxu1 %v7803_v62 }
 0x12e   :  { %806 = vmatprep.subr.bf16.mxu1 %v7808_v63 }
 0x131   :  { %807 = vmatpush1.bf16.msra.mxu1 %v7806_v0 }
 0x132   :  { %808 = vmatprep.subr.bf16.mxu1 %v7811_v2 }
 0x135   :  { %809 = vmatpush1.bf16.msra.mxu1 %v7809_v1 }
 0x136   :  { %810 = vmatprep.subr.bf16.mxu1 %v7814_v3 }
 0x139   :  { %811 = vmatpush1.bf16.msra.mxu1 %v7812_v4 }
 0x13a   :  { %821 = vmatprep.subr.bf16.mxu1 %v7817_v5 }
 0x1cf   :  { %v286_v29 = vpop.f32.mrb[0].mxu1 }
 0x1d0   :  { %v287_v30 = vadd.f32 %v286_v29, %v165_v26  ;;  %v288_v31 = vpop.f32.mrb[1].mxu1 }
 0x1d1   :  { %v289_v32 = vadd.f32 %v288_v31, %v169_v27  ;;  %v290_v33 = vpop.f32.mrb[2].mxu1 }
 0x1d2   :  { %v295_v34 = vrot.slane %v287_v30, 4  ;;  %v310_v35 = vmul.f32 %v287_v30, %v287_v30  ;;  %v291_v36 = vpop.f32.mrb[3].mxu1  ;;  %v7815_v33 = vld [vmem:[%s11371_s3 + $0x8] ss:$16 sps:$4 sm:$0xff]  }
 0x1d3   :  { %v301_v37 = vrot.slane %v289_v32, 4  ;;  %v311_v38 = vmul.f32 %v289_v32, %v289_v32  ;;  %v7818_v36 = vld [vmem:[%s11371_s3 + $0x28] ss:$16 sps:$4 sm:$0xff]  }
 0x1d4   :  { %v296_v39 = vadd.f32 %v295_v34, %v287_v30  ;;  %v312_v40 = vrot.slane %v310_v35, 4 }
 0x1d5   :  { %v302_v41 = vadd.f32 %v301_v37, %v289_v32  ;;  %v318_v42 = vrot.slane %v311_v38, 4  ;;  %v7823_v37 = vld [vmem:[%s11371_s3 + $0x4c] ss:$16 sps:$4 sm:$0xff]  }
 0x1d6   :  { %v297_v43 = vrot.slane %v296_v39, 2  ;;  %v313_v44 = vadd.f32 %v312_v40, %v310_v35  ;;  %v7820_v35 = vld [vmem:[%s11371_s3 + $0x2c] ss:$16 sps:$4 sm:$0xff]   ;;  %v7824_v40 = vld [vmem:[%s11371_s3 + $0x68] ss:$16 sps:$4 sm:$0xff]  }
 0x1d7   :  { %v303_v45 = vrot.slane %v302_v41, 2  ;;  %v319_v46 = vadd.f32 %v318_v42, %v311_v38  ;;  %v7821_v38 = vld [vmem:[%s11371_s3 + $0x48] ss:$16 sps:$4 sm:$0xff]  }
 0x1d8   :  { %v298_v47 = vadd.f32 %v297_v43, %v296_v39  ;;  %v314_v48 = vrot.slane %v313_v44, 2  ;;  %v7826_v39 = vld [vmem:[%s11371_s3 + $0x6c] ss:$16 sps:$4 sm:$0xff]   ;;  %v7827_v42 = vld [vmem:[%s11371_s3 + $0x88] ss:$16 sps:$4 sm:$0xff]  }
 0x1d9   :  { %v304_v49 = vadd.f32 %v303_v45, %v302_v41  ;;  %v320_v50 = vrot.slane %v319_v46, 2  ;;  %v7829_v41 = vld [vmem:[%s11371_s3 + $0x8c] ss:$16 sps:$4 sm:$0xff]  }
 0x1da   :  { %v299_v51 = vrot.slane %v298_v47, 1  ;;  %v315_v52 = vadd.f32 %v314_v48, %v313_v44  ;;  %v7832_v43 = vld [vmem:[%s11371_s3 + $0xac] ss:$16 sps:$4 sm:$0xff]   ;;  %v7830_v44 = vld [vmem:[%s11371_s3 + $0xa8] ss:$16 sps:$4 sm:$0xff]  }
 0x1db   :  { %v305_v53 = vrot.slane %v304_v49, 1  ;;  %v321_v54 = vadd.f32 %v320_v50, %v319_v46  ;;  %v7835_v45 = vld [vmem:[%s11371_s3 + $0xcc] ss:$16 sps:$4 sm:$0xff]   ;;  %v7833_v46 = vld [vmem:[%s11371_s3 + $0xc8] ss:$16 sps:$4 sm:$0xff]  }
 0x1dc   :  { %v300_v55 = vadd.f32 %v299_v51, %v298_v47  ;;  %v316_v56 = vrot.slane %v315_v52, 1  ;;  %v7838_v47 = vld [vmem:[%s11371_s3 + $0xec] ss:$16 sps:$4 sm:$0xff]   ;;  %v7836_v48 = vld [vmem:[%s11371_s3 + $0xe8] ss:$16 sps:$4 sm:$0xff]  }
 0x1dd   :  { %v306_v57 = vadd.f32 %v305_v53, %v304_v49  ;;  %v322_v58 = vrot.slane %v321_v54, 1  ;;  %v7841_v49 = vld [vmem:[%s11371_s3 + $0x10c] ss:$16 sps:$4 sm:$0xff]   ;;  %v7839_v50 = vld [vmem:[%s11371_s3 + $0x108] ss:$16 sps:$4 sm:$0xff]  }
 0x1de   :  { %v308_v59 = vmul.f32 0.125, %v300_v55  ;;  %v317_v60 = vadd.f32 %v316_v56, %v315_v52  ;;  %v7844_v51 = vld [vmem:[%s11371_s3 + $0x12c] ss:$16 sps:$4 sm:$0xff]   ;;  %v7842_v52 = vld [vmem:[%s11371_s3 + $0x128] ss:$16 sps:$4 sm:$0xff]  }
 0x1df   :  { %v309_v61 = vmul.f32 0.125, %v306_v57  ;;  %v323_v62 = vadd.f32 %v322_v58, %v321_v54  ;;  %v7847_v53 = vld [vmem:[%s11371_s3 + $0x14c] ss:$16 sps:$4 sm:$0xff]   ;;  %v7845_v54 = vld [vmem:[%s11371_s3 + $0x148] ss:$16 sps:$4 sm:$0xff]  }
 0x1e0   :  { %v324_v63 = vmul.f32 0.125, %v317_v60  ;;  %v326_v0 = vmul.f32 %v308_v59, %v308_v59  ;;  %v336_v11 = vsub.f32 %v287_v30, %v308_v59  ;;  %v7850_v55 = vld [vmem:[%s11371_s3 + $0x16c] ss:$16 sps:$4 sm:$0xff]   ;;  %v7848_v56 = vld [vmem:[%s11371_s3 + $0x168] ss:$16 sps:$4 sm:$0xff]  }
 0x1e1   :  { %v325_v1 = vmul.f32 0.125, %v323_v62  ;;  %v327_v2 = vmul.f32 %v309_v61, %v309_v61  ;;  %v337_v15 = vsub.f32 %v289_v32, %v309_v61  ;;  %v7853_v57 = vld [vmem:[%s11371_s3 + $0x18c] ss:$16 sps:$4 sm:$0xff]   ;;  %v7851_v58 = vld [vmem:[%s11371_s3 + $0x188] ss:$16 sps:$4 sm:$0xff]  }
 0x1e2   :  { %v328_v3 = vsub.f32 %v324_v63, %v326_v0  ;;  %v7856_v59 = vld [vmem:[%s11371_s3 + $0x1ac] ss:$16 sps:$4 sm:$0xff]   ;;  %v7854_v60 = vld [vmem:[%s11371_s3 + $0x1a8] ss:$16 sps:$4 sm:$0xff]  }
 0x1e3   :  { %v329_v4 = vsub.f32 %v325_v1, %v327_v2  ;;  %v7859_v61 = vld [vmem:[%s11371_s3 + $0x1cc] ss:$16 sps:$4 sm:$0xff]   ;;  %v7857_v62 = vld [vmem:[%s11371_s3 + $0x1c8] ss:$16 sps:$4 sm:$0xff]  }
 0x1e4   :  { %v330_v5 = vmax.f32 %v328_v3, 0.0  ;;  %v7862_v63 = vld [vmem:[%s11371_s3 + $0x1ec] ss:$16 sps:$4 sm:$0xff]   ;;  %v7860_v2 = vld [vmem:[%s11371_s3 + $0x1e8] ss:$16 sps:$4 sm:$0xff]  }
 0x1e5   :  { %v331_v6 = vmax.f32 %v329_v4, 0.0  ;;  %v1019_v0 = vld [vmem:[%s11373_s4 + $0x8] sm:$0xff] }
 0x1e6   :  { %v332_v7 = vadd.f32 1e-05, %v330_v5  ;;  %v1023_v1 = vld [vmem:[%s11373_s4 + $0x28] sm:$0xff] }
 0x1e7   :  { %v333_v8 = vadd.f32 1e-05, %v331_v6  ;;  %v6848_v3 = vcombine.high %v1019_v0, %v1023_v1  ;;  %v1027_v4 = vld [vmem:[%s11373_s4 + $0x48] sm:$0xff]  ;;  %v6847_v6 = vcombine.low %v1019_v0, %v1023_v1 }
 0x1e8   :  { %8503 = vrsqrt.f32 %v332_v7  ;;  %v1031_v5 = vld [vmem:[%s11373_s4 + $0x68] sm:$0xff] }
 0x1e9   :  { %8505 = vrsqrt.f32 %v333_v8  ;;  %v6856_v7 = vcombine.high %v1027_v4, %v1031_v5  ;;  %v1035_v8 = vld [vmem:[%s11373_s4 + $0x88] sm:$0xff]  ;;  %v6855_v10 = vcombine.low %v1027_v4, %v1031_v5  ;;  %v1098_v4 = vld [vmem:[%s11373_s4 + $0x280] sm:$0xff] }
 0x1ea   :  { %v1095_v0 = vld [vmem:[%s11373_s4 + $0x268] sm:$0xff]  ;;  %v1102_v5 = vld [vmem:[%s11373_s4 + $0x2a0] sm:$0xff] }
 0x1f2   :  { %v8504_v13 = vpop.eup %8503 }
 0x1f3   :  { %v8506_v17 = vpop.eup %8505  ;;  %v338_v18 = vmul.f32 %v8504_v13, %v336_v11  ;;  %v6864_v11 = vcombine.high %v1035_v8, %v1039_v9  ;;  %v1047_v13 = vld [vmem:[%s11373_s4 + $0xe8] sm:$0xff] }
 0x1f4   :  { %v339_v22 = vmul.f32 %v8506_v17, %v337_v15  ;;  %v6863_v15 = vcombine.low %v1035_v8, %v1039_v9  ;;  %v1103_v8 = vld [vmem:[%s11373_s4 + $0x2a8] sm:$0xff]  ;;  %v6925_v9 = vcombine.low %v1098_v4, %v1102_v5 }
 0x1f5   :  { %v351_v24 = vmul.f32 %v344_v12, %v338_v18  ;;  %v1043_v12 = vld [vmem:[%s11373_s4 + $0xc8] sm:$0xff]  ;;  %v1050_v18 = vld [vmem:[%s11373_s4 + $0x100] sm:$0xff] }
 0x1f6   :  { %v352_v25 = vmul.f32 %v348_v16, %v339_v22  ;;  %v6872_v16 = vcombine.high %v1043_v12, %v1047_v13  ;;  %v6871_v17 = vcombine.low %v1043_v12, %v1047_v13  ;;  %v1051_v22 = vld [vmem:[%s11373_s4 + $0x108] sm:$0xff]  ;;  %v1106_v12 = vld [vmem:[%s11373_s4 + $0x2c0] sm:$0xff] }
 0x1f7   :  { %v364_v26 = vadd.f32 %v357_v20, %v351_v24  ;;  %v1054_v20 = vld [vmem:[%s11373_s4 + $0x120] sm:$0xff]  ;;  %v1055_v24 = vld [vmem:[%s11373_s4 + $0x128] sm:$0xff] }
 0x1f8   :  { %v365_v27 = vadd.f32 %v361_v23, %v352_v25  ;;  %v6878_v23 = vcombine.high %v1050_v18, %v1054_v20  ;;  %v6877_v25 = vcombine.low %v1050_v18, %v1054_v20  ;;  %v1110_v13 = vld [vmem:[%s11373_s4 + $0x2e0] sm:$0xff] }
 0x1f9   :  { %vm366_vm2 = vcmp.gt.f32.partialorder %v364_v26, 0.0  ;;  %v368_v28 = vmul.f32 0.2, %v364_v26  ;;  %v6933_v18 = vcombine.low %v1106_v12, %v1110_v13 }
 0x1fa   :  { %vm367_vm3 = vcmp.gt.f32.partialorder %v365_v27, 0.0  ;;  %v369_v29 = vmul.f32 0.2, %v365_v27  ;;  %2604 = vmatprep.subr.bf16.mxu0 %v6878_v23  ;;  %v1114_v23 = vld [vmem:[%s11373_s4 + $0x300] sm:$0xff] }
 0x1fb   :  { %v370_v30 = vsel %vm366_vm2, %v364_v26, %v368_v28  ;;  %v6879_v26 = vcombine.low %v1051_v22, %v1055_v24  ;;  %2605 = vmatpush1.bf16.msra.mxu0 %v6877_v25  ;;  %v1058_v28 = vld [vmem:[%s11373_s4 + $0x140] sm:$0xff]  ;;  %v1115_v25 = vld [vmem:[%s11373_s4 + $0x308] sm:$0xff] }
 0x1fc   :  { %v371_v31 = vsel %vm367_vm3, %v365_v27, %v369_v29  ;;  %v8817_v34 = vpack.c.bf16 %v370_v30, %v370_v30  ;;  %v6880_v27 = vcombine.high %v1051_v22, %v1055_v24  ;;  %v1062_v29 = vld [vmem:[%s11373_s4 + $0x160] sm:$0xff]  ;;  %v1059_v30 = vld [vmem:[%s11373_s4 + $0x148] sm:$0xff] }
 0x1fd   :  { %v373_v32 = vpack.c.bf16 %v371_v31, %v371_v31  ;;  %v6886_v31 = vcombine.high %v1058_v28, %v1062_v29  ;;  %v1118_v24 = vld [vmem:[%s11373_s4 + $0x320] sm:$0xff] }
 0x1ff   :  { %812 = vmatprep.mubr.bf16.mxu1 %v373_v32  ;;  %2606 = vmatprep.subr.bf16.mxu0 %v6886_v31  ;;  %v1122_v31 = vld [vmem:[%s11373_s4 + $0x340] sm:$0xff] }
 0x200   :  { %813 = vmatmul.mubr.bf16.vlgmr.msra.gmra.mrb[4].mxu1 %v8817_v34 }
 0x201   :  { %822 = vmatpush1.bf16.msra.mxu1 %v7815_v33  ;;  %853 = vmatprep.mubr.bf16.mxu1 %v373_v32  ;;  %v1063_v32 = vld [vmem:[%s11373_s4 + $0x168] sm:$0xff]  ;;  %v6885_v33 = vcombine.low %v1058_v28, %v1062_v29  ;;  %v6941_v28 = vcombine.low %v1114_v23, %v1118_v24 }
 0x202   :  { %823 = vmatprep.subr.bf16.mxu1 %v7820_v35  ;;  %v6888_v35 = vcombine.high %v1059_v30, %v1063_v32 }
 0x203   :  { %2607 = vmatpush1.bf16.msra.mxu0 %v6885_v33  ;;  %v1123_v33 = vld [vmem:[%s11373_s4 + $0x348] sm:$0xff] }
 0x205   :  { %824 = vmatpush1.bf16.msra.mxu1 %v7818_v36  ;;  %v1066_v36 = vld [vmem:[%s11373_s4 + $0x180] sm:$0xff] }
 0x206   :  { %825 = vmatprep.subr.bf16.mxu1 %v7823_v37  ;;  %v1070_v37 = vld [vmem:[%s11373_s4 + $0x1a0] sm:$0xff] }
 0x209   :  { %826 = vmatpush1.bf16.msra.mxu1 %v7821_v38  ;;  %v1067_v38 = vld [vmem:[%s11373_s4 + $0x188] sm:$0xff] }
 0x20a   :  { %827 = vmatprep.subr.bf16.mxu1 %v7826_v39  ;;  %v6894_v39 = vcombine.high %v1066_v36, %v1070_v37 }
 0x20c   :  { %2608 = vmatprep.subr.bf16.mxu0 %v6894_v39  ;;  %v1130_v39 = vld [vmem:[%s11373_s4 + $0x380] sm:$0xff] }
 0x20d   :  { %828 = vmatpush1.bf16.msra.mxu1 %v7824_v40  ;;  %v1071_v40 = vld [vmem:[%s11373_s4 + $0x1a8] sm:$0xff] }
 0x20e   :  { %829 = vmatprep.subr.bf16.mxu1 %v7829_v41  ;;  %v6893_v41 = vcombine.low %v1066_v36, %v1070_v37 }
 0x210   :  { %2609 = vmatpush1.bf16.msra.mxu0 %v6893_v41  ;;  %v1131_v41 = vld [vmem:[%s11373_s4 + $0x388] sm:$0xff] }
 0x211   :  { %830 = vmatpush1.bf16.msra.mxu1 %v7827_v42  ;;  %v6895_v42 = vcombine.low %v1067_v38, %v1071_v40 }
 0x212   :  { %831 = vmatprep.subr.bf16.mxu1 %v7832_v43  ;;  %v6896_v43 = vcombine.high %v1067_v38, %v1071_v40  ;;  %v1134_v40 = vld [vmem:[%s11373_s4 + $0x3a0] sm:$0xff] }
 0x215   :  { %832 = vmatpush1.bf16.msra.mxu1 %v7830_v44  ;;  %v1074_v44 = vld [vmem:[%s11373_s4 + $0x1c0] sm:$0xff] }
 0x216   :  { %833 = vmatprep.subr.bf16.mxu1 %v7835_v45  ;;  %v1078_v45 = vld [vmem:[%s11373_s4 + $0x1e0] sm:$0xff] }
 0x219   :  { %834 = vmatpush1.bf16.msra.mxu1 %v7833_v46  ;;  %v1075_v46 = vld [vmem:[%s11373_s4 + $0x1c8] sm:$0xff] }
 0x21a   :  { %835 = vmatprep.subr.bf16.mxu1 %v7838_v47  ;;  %v6902_v47 = vcombine.high %v1074_v44, %v1078_v45 }
 0x21c   :  { %2610 = vmatprep.subr.bf16.mxu0 %v6902_v47 }
 0x21d   :  { %836 = vmatpush1.bf16.msra.mxu1 %v7836_v48  ;;  %v1079_v48 = vld [vmem:[%s11373_s4 + $0x1e8] sm:$0xff] }
 0x21e   :  { %837 = vmatprep.subr.bf16.mxu1 %v7841_v49  ;;  %v6901_v49 = vcombine.low %v1074_v44, %v1078_v45  ;;  %v1135_v44 = vld [vmem:[%s11373_s4 + $0x3a8] sm:$0xff]  ;;  %v1138_v45 = vld [vmem:[%s11373_s4 + $0x3c0] sm:$0xff] }
 0x21f   :  { %v6959_v47 = vcombine.low %v1131_v41, %v1135_v44 }
 0x220   :  { %2611 = vmatpush1.bf16.msra.mxu0 %v6901_v49 }
 0x221   :  { %838 = vmatpush1.bf16.msra.mxu1 %v7839_v50  ;;  %v6903_v50 = vcombine.low %v1075_v46, %v1079_v48 }
 0x222   :  { %839 = vmatprep.subr.bf16.mxu1 %v7844_v51  ;;  %v6904_v51 = vcombine.high %v1075_v46, %v1079_v48  ;;  %v1142_v46 = vld [vmem:[%s11373_s4 + $0x3e0] sm:$0xff]  ;;  %v6960_v48 = vcombine.high %v1131_v41, %v1135_v44 }
 0x223   :  { %v6966_v49 = vcombine.high %v1138_v45, %v1142_v46 }
 0x225   :  { %840 = vmatpush1.bf16.msra.mxu1 %v7842_v52  ;;  %v1082_v52 = vld [vmem:[%s11373_s4 + $0x200] sm:$0xff] }
 0x226   :  { %841 = vmatprep.subr.bf16.mxu1 %v7847_v53  ;;  %v1086_v53 = vld [vmem:[%s11373_s4 + $0x220] sm:$0xff] }
 0x229   :  { %842 = vmatpush1.bf16.msra.mxu1 %v7845_v54  ;;  %v1083_v54 = vld [vmem:[%s11373_s4 + $0x208] sm:$0xff] }
 0x22a   :  { %843 = vmatprep.subr.bf16.mxu1 %v7850_v55  ;;  %v6910_v55 = vcombine.high %v1082_v52, %v1086_v53 }
 0x22c   :  { %2612 = vmatprep.subr.bf16.mxu0 %v6910_v55  ;;  %v9082_v55 = vld [vmem:[%s11373_s4 + $0x400] sm:$0xff] }
 0x22d   :  { %844 = vmatpush1.bf16.msra.mxu1 %v7848_v56  ;;  %v1087_v56 = vld [vmem:[%s11373_s4 + $0x228] sm:$0xff] }
 0x22e   :  { %845 = vmatprep.subr.bf16.mxu1 %v7853_v57  ;;  %v6909_v57 = vcombine.low %v1082_v52, %v1086_v53  ;;  %v6965_v53 = vcombine.low %v1138_v45, %v1142_v46 }
 0x230   :  { %2613 = vmatpush1.bf16.msra.mxu0 %v6909_v57  ;;  %v9092_v57 = vld [vmem:[%s11373_s4 + $0x408] sm:$0xff] }
 0x231   :  { %846 = vmatpush1.bf16.msra.mxu1 %v7851_v58  ;;  %v6911_v58 = vcombine.low %v1083_v54, %v1087_v56 }
 0x232   :  { %847 = vmatprep.subr.bf16.mxu1 %v7856_v59  ;;  %v6912_v59 = vcombine.high %v1083_v54, %v1087_v56  ;;  %v9087_v56 = vld [vmem:[%s11373_s4 + $0x420] sm:$0xff] }
 0x235   :  { %848 = vmatpush1.bf16.msra.mxu1 %v7854_v60  ;;  %v1090_v60 = vld [vmem:[%s11373_s4 + $0x240] sm:$0xff] }
 0x236   :  { %849 = vmatprep.subr.bf16.mxu1 %v7859_v61  ;;  %v1094_v61 = vld [vmem:[%s11373_s4 + $0x260] sm:$0xff] }
 0x237   :  { %v6917_v1 = vcombine.low %v1090_v60, %v1094_v61 }
 0x239   :  { %850 = vmatpush1.bf16.msra.mxu1 %v7857_v62  ;;  %v1091_v62 = vld [vmem:[%s11373_s4 + $0x248] sm:$0xff] }
 0x23a   :  { %851 = vmatprep.subr.bf16.mxu1 %v7862_v63  ;;  %v6918_v63 = vcombine.high %v1090_v60, %v1094_v61  ;;  %v6973_v60 = vcombine.low %v9082_v55, %v9087_v56 }
 0x23c   :  { %2614 = vmatprep.subr.bf16.mxu0 %v6918_v63  ;;  %v9110_v63 = vld [vmem:[%s11372_s6 + $0x7] sm:$0xf] }
 0x23d   :  { %852 = vmatpush1.bf16.msra.mxu1 %v7860_v2  ;;  %v6919_v2 = vcombine.low %v1091_v62, %v1095_v0  ;;  %2615 = vmatpush1.bf16.msra.mxu0 %v6917_v1  ;;  %v447_v1 = vrot.slane %v9110_v63, %v8794_v21 }
 0x23e   :  { %2678 = vmatprep.subr.bf16.mxu1 %v6848_v3  ;;  %v6920_v3 = vcombine.high %v1091_v62, %v1095_v0  ;;  %v443_v0 = vrot.slane %v9110_v63, %v8788_v19 }
 0x240   :  { %854 = vmatmul.mubr.bf16.vlgmr.msra.gmra.mrb[8].mxu1 %v8817_v34  ;;  %v6887_v34 = vcombine.low %v1059_v30, %v1063_v32  ;;  %v1126_v32 = vld [vmem:[%s11373_s4 + $0x360] sm:$0xff] }
 0x241   :  { %2679 = vmatpush1.bf16.msra.mxu1 %v6847_v6  ;;  %v1099_v6 = vld [vmem:[%s11373_s4 + $0x288] sm:$0xff]  ;;  %v6949_v36 = vcombine.low %v1122_v31, %v1126_v32 }
 0x242   :  { %2680 = vmatprep.subr.bf16.mxu1 %v6856_v7  ;;  %v6926_v7 = vcombine.high %v1098_v4, %v1102_v5 }
 0x244   :  { %2616 = vmatprep.subr.bf16.mxu0 %v6926_v7 }
 0x245   :  { %2681 = vmatpush1.bf16.msra.mxu1 %v6855_v10  ;;  %v6927_v10 = vcombine.low %v1099_v6, %v1103_v8  ;;  %2617 = vmatpush1.bf16.msra.mxu0 %v6925_v9 }
 0x246   :  { %2682 = vmatprep.subr.bf16.mxu1 %v6864_v11  ;;  %v6928_v11 = vcombine.high %v1099_v6, %v1103_v8 }
 0x249   :  { %2683 = vmatpush1.bf16.msra.mxu1 %v6863_v15  ;;  %v1107_v15 = vld [vmem:[%s11373_s4 + $0x2c8] sm:$0xff] }
 0x24a   :  { %2684 = vmatprep.subr.bf16.mxu1 %v6872_v16  ;;  %v6934_v16 = vcombine.high %v1106_v12, %v1110_v13 }
 0x24c   :  { %2618 = vmatprep.subr.bf16.mxu0 %v6934_v16 }
 0x24d   :  { %2685 = vmatpush1.bf16.msra.mxu1 %v6871_v17  ;;  %v1111_v17 = vld [vmem:[%s11373_s4 + $0x2e8] sm:$0xff]  ;;  %2619 = vmatpush1.bf16.msra.mxu0 %v6933_v18 }
 0x24e   :  { %2686 = vmatprep.subr.bf16.mxu1 %v6880_v27  ;;  %v6935_v20 = vcombine.low %v1107_v15, %v1111_v17  ;;  %v6936_v22 = vcombine.high %v1107_v15, %v1111_v17  ;;  %v1119_v27 = vld [vmem:[%s11373_s4 + $0x328] sm:$0xff] }
 0x24f   :  { %v6943_v29 = vcombine.low %v1115_v25, %v1119_v27  ;;  %v6944_v30 = vcombine.high %v1115_v25, %v1119_v27 }
 0x251   :  { %2687 = vmatpush1.bf16.msra.mxu1 %v6879_v26  ;;  %v6942_v26 = vcombine.high %v1114_v23, %v1118_v24 }
 0x252   :  { %2688 = vmatprep.subr.bf16.mxu1 %v6888_v35  ;;  %v1127_v35 = vld [vmem:[%s11373_s4 + $0x368] sm:$0xff] }
 0x253   :  { %2620 = vmatprep.subr.bf16.mxu0 %v6942_v26  ;;  %v6951_v37 = vcombine.low %v1123_v33, %v1127_v35  ;;  %v6952_v38 = vcombine.high %v1123_v33, %v1127_v35 }
 0x254   :  { %2621 = vmatpush1.bf16.msra.mxu0 %v6941_v28 }
 0x255   :  { %2689 = vmatpush1.bf16.msra.mxu1 %v6887_v34  ;;  %v6950_v34 = vcombine.high %v1122_v31, %v1126_v32 }
 0x256   :  { %2690 = vmatprep.subr.bf16.mxu1 %v6896_v43  ;;  %v6958_v43 = vcombine.high %v1130_v39, %v1134_v40 }
 0x257   :  { %2622 = vmatprep.subr.bf16.mxu0 %v6950_v34 }
 0x258   :  { %2623 = vmatpush1.bf16.msra.mxu0 %v6949_v36 }
 0x259   :  { %2691 = vmatpush1.bf16.msra.mxu1 %v6895_v42  ;;  %v6957_v42 = vcombine.low %v1130_v39, %v1134_v40  ;;  %2624 = vmatprep.subr.bf16.mxu0 %v6958_v43 }
 0x25a   :  { %2692 = vmatprep.subr.bf16.mxu1 %v6904_v51  ;;  %v1143_v51 = vld [vmem:[%s11373_s4 + $0x3e8] sm:$0xff] }
 0x25c   :  { %2625 = vmatpush1.bf16.msra.mxu0 %v6957_v42 }
 0x25d   :  { %2693 = vmatpush1.bf16.msra.mxu1 %v6903_v50  ;;  %v1139_v50 = vld [vmem:[%s11373_s4 + $0x3c8] sm:$0xff]  ;;  %2626 = vmatprep.subr.bf16.mxu0 %v6966_v49 }
 0x25e   :  { %2694 = vmatprep.subr.bf16.mxu1 %v6912_v59  ;;  %v6968_v52 = vcombine.high %v1139_v50, %v1143_v51  ;;  %v6967_v54 = vcombine.low %v1139_v50, %v1143_v51  ;;  %v9099_v59 = vld [vmem:[%s11373_s4 + $0x428] sm:$0xff] }
 0x25f   :  { %v6975_v61 = vcombine.low %v9092_v57, %v9099_v59  ;;  %v6976_v62 = vcombine.high %v9092_v57, %v9099_v59  ;;  %v9119_v49 = vld [vmem:[%s11372_s6 + $0xb] sm:$0xf]  ;;  %v9124_v50 = vld [vmem:[%s11372_s6 + $0xf] sm:$0xf] }
 0x260   :  { %2627 = vmatpush1.bf16.msra.mxu0 %v6965_v53 }
 0x261   :  { %2695 = vmatpush1.bf16.msra.mxu1 %v6911_v58  ;;  %v6974_v58 = vcombine.high %v9082_v55, %v9087_v56  ;;  %v1171_v55 = vld [vmem:[%s11373_s4 + $0x4c8] sm:$0xff] }
 0x262   :  { %2696 = vmatprep.subr.bf16.mxu1 %v6920_v3  ;;  %v1175_v56 = vld [vmem:[%s11373_s4 + $0x4e8] sm:$0xff] }
 0x263   :  { %2637 = vmatprep.subr.bf16.mxu0 %v6974_v58  ;;  %v960_v58 = vrot.slane %v9119_v49, %v8794_v21 }
 0x265   :  { %2697 = vmatpush1.bf16.msra.mxu1 %v6919_v2 }
 0x266   :  { %2698 = vmatprep.subr.bf16.mxu1 %v6928_v11 }
 0x269   :  { %2699 = vmatpush1.bf16.msra.mxu1 %v6927_v10 }
 0x26a   :  { %2700 = vmatprep.subr.bf16.mxu1 %v6936_v22 }
 0x26d   :  { %2701 = vmatpush1.bf16.msra.mxu1 %v6935_v20 }
 0x26e   :  { %2702 = vmatprep.subr.bf16.mxu1 %v6944_v30 }
 0x271   :  { %2703 = vmatpush1.bf16.msra.mxu1 %v6943_v29 }
 0x272   :  { %2704 = vmatprep.subr.bf16.mxu1 %v6952_v38 }
 0x275   :  { %2705 = vmatpush1.bf16.msra.mxu1 %v6951_v37 }
 0x276   :  { %2706 = vmatprep.subr.bf16.mxu1 %v6960_v48 }
 0x279   :  { %2707 = vmatpush1.bf16.msra.mxu1 %v6959_v47 }
 0x27a   :  { %2708 = vmatprep.subr.bf16.mxu1 %v6968_v52  ;;  %v956_v52 = vrot.slane %v9119_v49, %v8788_v19 }
 0x27d   :  { %2709 = vmatpush1.bf16.msra.mxu1 %v6967_v54 }
 0x27e   :  { %2719 = vmatprep.subr.bf16.mxu1 %v6976_v62 }
 0x2d3   :  { %v814_v2 = vpop.f32.mrb[4].mxu1 }
 0x2d4   :  { %v815_v3 = vadd.f32 %v814_v2, %v443_v0  ;;  %v816_v4 = vpop.f32.mrb[5].mxu1 }
 0x2d5   :  { %v817_v5 = vadd.f32 %v816_v4, %v447_v1  ;;  %v818_v6 = vpop.f32.mrb[6].mxu1  ;;  %v981_v1 = vrot.slane %v9124_v50, %v8788_v19  ;;  %v985_v4 = vrot.slane %v9124_v50, %v8794_v21 }
 0x2d6   :  { %v864_v7 = vrot.slane %v815_v3, 4  ;;  %v892_v8 = vmul.f32 %v815_v3, %v815_v3  ;;  %v819_v9 = vpop.f32.mrb[7].mxu1 }
 0x2d7   :  { %v870_v10 = vrot.slane %v817_v5, 4  ;;  %v893_v11 = vmul.f32 %v817_v5, %v817_v5 }
 0x2d8   :  { %v865_v12 = vadd.f32 %v864_v7, %v815_v3  ;;  %v896_v13 = vrot.slane %v892_v8, 4 }
 0x2d9   :  { %v871_v15 = vadd.f32 %v870_v10, %v817_v5  ;;  %v902_v16 = vrot.slane %v893_v11, 4  ;;  %v1154_v10 = vld [vmem:[%s11373_s4 + $0x440] sm:$0xff] }
 0x2da   :  { %v866_v17 = vrot.slane %v865_v12, 2  ;;  %v897_v18 = vadd.f32 %v896_v13, %v892_v8  ;;  %v1155_v13 = vld [vmem:[%s11373_s4 + $0x448] sm:$0xff] }
 0x2db   :  { %v872_v20 = vrot.slane %v871_v15, 2  ;;  %v903_v22 = vadd.f32 %v902_v16, %v893_v11 }
 0x2dc   :  { %v867_v23 = vadd.f32 %v866_v17, %v865_v12  ;;  %v898_v24 = vrot.slane %v897_v18, 2  ;;  %v1158_v12 = vld [vmem:[%s11373_s4 + $0x460] sm:$0xff] }
 0x2dd   :  { %v873_v25 = vadd.f32 %v872_v20, %v871_v15  ;;  %v904_v26 = vrot.slane %v903_v22, 2  ;;  %v1159_v15 = vld [vmem:[%s11373_s4 + $0x468] sm:$0xff]  ;;  %v6982_v20 = vcombine.high %v1154_v10, %v1158_v12 }
 0x2de   :  { %v868_v27 = vrot.slane %v867_v23, 1  ;;  %v899_v28 = vadd.f32 %v898_v24, %v897_v18  ;;  %v1166_v24 = vld [vmem:[%s11373_s4 + $0x4a0] sm:$0xff] }
 0x2df   :  { %v874_v29 = vrot.slane %v873_v25, 1  ;;  %v905_v30 = vadd.f32 %v904_v26, %v903_v22  ;;  %v6984_v22 = vcombine.high %v1155_v13, %v1159_v15  ;;  %v1167_v26 = vld [vmem:[%s11373_s4 + $0x4a8] sm:$0xff] }
 0x2e0   :  { %v869_v31 = vadd.f32 %v868_v27, %v867_v23  ;;  %v900_v32 = vrot.slane %v899_v28, 1  ;;  %v1162_v23 = vld [vmem:[%s11373_s4 + $0x480] sm:$0xff]  ;;  %v6981_v27 = vcombine.low %v1154_v10, %v1158_v12 }
 0x2e1   :  { %v875_v33 = vadd.f32 %v874_v29, %v873_v25  ;;  %v906_v34 = vrot.slane %v905_v30, 1  ;;  %v1163_v25 = vld [vmem:[%s11373_s4 + $0x488] sm:$0xff]  ;;  %v6990_v29 = vcombine.high %v1162_v23, %v1166_v24  ;;  %v6989_v57 = vcombine.low %v1162_v23, %v1166_v24 }
 0x2e2   :  { %v888_v35 = vmul.f32 0.125, %v869_v31  ;;  %v901_v36 = vadd.f32 %v900_v32, %v899_v28  ;;  %v6983_v28 = vcombine.low %v1155_v13, %v1159_v15  ;;  %v1170_v31 = vld [vmem:[%s11373_s4 + $0x4c0] sm:$0xff]  ;;  %v6991_v59 = vcombine.low %v1163_v25, %v1167_v26  ;;  %v1207_v23 = vld [vmem:[%s11373_s4 + $0x5e8] sm:$0xff] }
 0x2e3   :  { %v889_v37 = vmul.f32 0.125, %v875_v33  ;;  %v907_v38 = vadd.f32 %v906_v34, %v905_v30  ;;  %v6992_v30 = vcombine.high %v1163_v25, %v1167_v26  ;;  %v1174_v32 = vld [vmem:[%s11373_s4 + $0x4e0] sm:$0xff] }
 0x2e4   :  { %v920_v39 = vmul.f32 0.125, %v901_v36  ;;  %v924_v40 = vmul.f32 %v888_v35, %v888_v35  ;;  %v944_v51 = vsub.f32 %v815_v3, %v888_v35  ;;  %v1178_v33 = vld [vmem:[%s11373_s4 + $0x500] sm:$0xff]  ;;  %v1179_v35 = vld [vmem:[%s11373_s4 + $0x508] sm:$0xff] }
 0x2e5   :  { %v921_v41 = vmul.f32 0.125, %v907_v38  ;;  %v925_v42 = vmul.f32 %v889_v37, %v889_v37  ;;  %v945_v54 = vsub.f32 %v817_v5, %v889_v37  ;;  %v1182_v34 = vld [vmem:[%s11373_s4 + $0x520] sm:$0xff]  ;;  %v1183_v36 = vld [vmem:[%s11373_s4 + $0x528] sm:$0xff]  ;;  %v9197_v37 = vsub.s32 2, %v8779_v14 }
 0x2e6   :  { %v928_v43 = vsub.f32 %v920_v39, %v924_v40  ;;  %v6997_v38 = vcombine.low %v1170_v31, %v1174_v32  ;;  %v6999_v39 = vcombine.low %v1171_v55, %v1175_v56  ;;  %v9200_v40 = vsub.s32 3, %v8779_v14  ;;  %v1202_v13 = vld [vmem:[%s11373_s4 + $0x5c0] sm:$0xff] }
 0x2e7   :  { %v929_v44 = vsub.f32 %v921_v41, %v925_v42  ;;  %v7006_v41 = vcombine.high %v1178_v33, %v1182_v34  ;;  %v7008_v42 = vcombine.high %v1179_v35, %v1183_v36 }
 0x2e8   :  { %v932_v45 = vmax.f32 %v928_v43, 0.0  ;;  %v1186_v43 = vld [vmem:[%s11373_s4 + $0x540] sm:$0xff] }
 0x2e9   :  { %v933_v46 = vmax.f32 %v929_v44, 0.0  ;;  %v1190_v44 = vld [vmem:[%s11373_s4 + $0x560] sm:$0xff] }
 0x2ea   :  { %v936_v47 = vadd.f32 1e-05, %v932_v45  ;;  %v1187_v45 = vld [vmem:[%s11373_s4 + $0x548] sm:$0xff] }
 0x2eb   :  { %v937_v48 = vadd.f32 1e-05, %v933_v46  ;;  %v1191_v46 = vld [vmem:[%s11373_s4 + $0x568] sm:$0xff] }
 0x2ec   :  { %8507 = vrsqrt.f32 %v936_v47  ;;  %v451_v47 = vrot.slane %v9110_v63, %v9197_v37 }
 0x2ed   :  { %8509 = vrsqrt.f32 %v937_v48  ;;  %v455_v48 = vrot.slane %v9110_v63, %v9200_v40  ;;  %v1199_v63 = vld [vmem:[%s11373_s4 + $0x5a8] sm:$0xff] }
 0x2f6   :  { %v8508_v53 = vpop.eup %8507 }
 0x2f7   :  { %v8510_v62 = vpop.eup %8509  ;;  %v948_v0 = vmul.f32 %v8508_v53, %v944_v51  ;;  %v7005_v51 = vcombine.low %v1178_v33, %v1182_v34  ;;  %v7014_v53 = vcombine.high %v1186_v43, %v1190_v44  ;;  %v1215_v33 = vld [vmem:[%s11373_s4 + $0x628] sm:$0xff] }
 0x2f8   :  { %v949_v2 = vmul.f32 %v8510_v62, %v945_v54  ;;  %v7016_v54 = vcombine.high %v1187_v45, %v1191_v46 }
 0x2f9   :  { %v973_v6 = vmul.f32 %v956_v52, %v948_v0  ;;  %v7007_v52 = vcombine.low %v1179_v35, %v1183_v36  ;;  %v1198_v0 = vld [vmem:[%s11373_s4 + $0x5a0] sm:$0xff] }
 0x2fa   :  { %v974_v7 = vmul.f32 %v960_v58, %v949_v2  ;;  %v1194_v58 = vld [vmem:[%s11373_s4 + $0x580] sm:$0xff] }
 0x2fb   :  { %v998_v3 = vadd.f32 %v981_v1, %v973_v6  ;;  %v1195_v1 = vld [vmem:[%s11373_s4 + $0x588] sm:$0xff] }
 0x2fc   :  { %v999_v8 = vadd.f32 %v985_v4, %v974_v7  ;;  %v7024_v12 = vcombine.high %v1195_v1, %v1199_v63 }
 0x2fd   :  { %vm1002_vm4 = vcmp.gt.f32.partialorder %v998_v3, 0.0  ;;  %v1006_v9 = vmul.f32 0.2, %v998_v3 }
 0x2fe   :  { %vm1003_vm5 = vcmp.gt.f32.partialorder %v999_v8, 0.0  ;;  %v1007_v5 = vmul.f32 0.2, %v999_v8 }
 0x2ff   :  { %v1010_v11 = vsel %vm1002_vm4, %v998_v3, %v1006_v9  ;;  %v7013_v3 = vcombine.low %v1186_v43, %v1190_v44 }
 0x300   :  { %v1011_v16 = vsel %vm1003_vm5, %v999_v8, %v1007_v5  ;;  %v9148_v18 = vpack.c.bf16 %v1010_v11, %v1010_v11  ;;  %v7015_v8 = vcombine.low %v1187_v45, %v1191_v46  ;;  %v7022_v11 = vcombine.high %v1194_v58, %v1198_v0  ;;  %v1218_v46 = vld [vmem:[%s11373_s4 + $0x640] sm:$0xff] }
 0x301   :  { %v9146_v17 = vpack.c.bf16 %v1011_v16, %v1011_v16 }
 0x303   :  { %2628 = vmatprep.mubr.bf16.mxu0 %v9146_v17  ;;  %2710 = vmatprep.mubr.bf16.mxu1 %v9146_v17 }
 0x304   :  { %2629 = vmatmul.mubr.bf16.vlgmr.msra.gmra.mrb[4].mxu0 %v9148_v18  ;;  %2711 = vmatmul.mubr.bf16.vlgmr.msra.gmra.mrb[12].mxu1 %v9148_v18 }
 0x305   :  { %2638 = vmatpush1.bf16.msra.mxu0 %v6973_v60  ;;  %2720 = vmatpush1.bf16.msra.mxu1 %v6975_v61  ;;  %v6998_v60 = vcombine.high %v1170_v31, %v1174_v32  ;;  %v7000_v61 = vcombine.high %v1171_v55, %v1175_v56  ;;  %v1210_v56 = vld [vmem:[%s11373_s4 + $0x600] sm:$0xff] }
 0x306   :  { %2639 = vmatprep.subr.bf16.mxu0 %v6982_v20  ;;  %2721 = vmatprep.subr.bf16.mxu1 %v6984_v22  ;;  %v1206_v20 = vld [vmem:[%s11373_s4 + $0x5e0] sm:$0xff]  ;;  %v1203_v22 = vld [vmem:[%s11373_s4 + $0x5c8] sm:$0xff] }
 0x307   :  { %v7030_v32 = vcombine.high %v1202_v13, %v1206_v20  ;;  %v7032_v55 = vcombine.high %v1203_v22, %v1207_v23 }
 0x309   :  { %2640 = vmatpush1.bf16.msra.mxu0 %v6981_v27  ;;  %2722 = vmatpush1.bf16.msra.mxu1 %v6983_v28  ;;  %v7021_v28 = vcombine.low %v1194_v58, %v1198_v0 }
 0x30a   :  { %2641 = vmatprep.subr.bf16.mxu0 %v6990_v29  ;;  %2723 = vmatprep.subr.bf16.mxu1 %v6992_v30  ;;  %v7023_v29 = vcombine.low %v1195_v1, %v1199_v63 }
 0x30d   :  { %2642 = vmatpush1.bf16.msra.mxu0 %v6989_v57  ;;  %2724 = vmatpush1.bf16.msra.mxu1 %v6991_v59 }
 0x30e   :  { %2643 = vmatprep.subr.bf16.mxu0 %v6998_v60  ;;  %2725 = vmatprep.subr.bf16.mxu1 %v7000_v61  ;;  %v1214_v60 = vld [vmem:[%s11373_s4 + $0x620] sm:$0xff]  ;;  %v1211_v61 = vld [vmem:[%s11373_s4 + $0x608] sm:$0xff] }
 0x30f   :  { %v7038_v44 = vcombine.high %v1210_v56, %v1214_v60  ;;  %v7040_v45 = vcombine.high %v1211_v61, %v1215_v33  ;;  %v7037_v1 = vcombine.low %v1210_v56, %v1214_v60  ;;  %v7039_v63 = vcombine.low %v1211_v61, %v1215_v33 }
 0x311   :  { %2644 = vmatpush1.bf16.msra.mxu0 %v6997_v38  ;;  %2726 = vmatpush1.bf16.msra.mxu1 %v6999_v39  ;;  %v7029_v39 = vcombine.low %v1202_v13, %v1206_v20  ;;  %v1231_v13 = vld [vmem:[%s11373_s4 + $0x6a8] sm:$0xff] }
 0x312   :  { %2645 = vmatprep.subr.bf16.mxu0 %v7006_v41  ;;  %2727 = vmatprep.subr.bf16.mxu1 %v7008_v42  ;;  %v7031_v41 = vcombine.low %v1203_v22, %v1207_v23 }
 0x313   :  { %v855_v62 = vpop.f32.mrb[8].mxu1 }
 0x314   :  { %v9230_v2 = vadd.f32 %v855_v62, %v451_v47  ;;  %v857_v4 = vpop.f32.mrb[9].mxu1 }
 0x315   :  { %v9232_v6 = vadd.f32 %v857_v4, %v455_v48  ;;  %v859_v7 = vpop.f32.mrb[10].mxu1  ;;  %2646 = vmatpush1.bf16.msra.mxu0 %v7005_v51  ;;  %2728 = vmatpush1.bf16.msra.mxu1 %v7007_v52  ;;  %v1222_v51 = vld [vmem:[%s11373_s4 + $0x660] sm:$0xff]  ;;  %v1219_v52 = vld [vmem:[%s11373_s4 + $0x648] sm:$0xff] }
 0x316   :  { %v876_v9 = vrot.slane %v9230_v2, 4  ;;  %v894_v5 = vmul.f32 %v9230_v2, %v9230_v2  ;;  %v860_v10 = vpop.f32.mrb[11].mxu1  ;;  %2647 = vmatprep.subr.bf16.mxu0 %v7014_v53  ;;  %2729 = vmatprep.subr.bf16.mxu1 %v7016_v54  ;;  %v1223_v53 = vld [vmem:[%s11373_s4 + $0x668] sm:$0xff]  ;;  %v7045_v23 = vcombine.low %v1218_v46, %v1222_v51 }
 0x317   :  { %v882_v15 = vrot.slane %v9232_v6, 4  ;;  %v895_v16 = vmul.f32 %v9232_v6, %v9232_v6 }
 0x318   :  { %v877_v24 = vadd.f32 %v876_v9, %v9230_v2  ;;  %v908_v25 = vrot.slane %v894_v5, 4  ;;  %v1226_v9 = vld [vmem:[%s11373_s4 + $0x680] sm:$0xff] }
 0x319   :  { %v883_v26 = vadd.f32 %v882_v15, %v9232_v6  ;;  %v914_v27 = vrot.slane %v895_v16, 4  ;;  %2648 = vmatpush1.bf16.msra.mxu0 %v7013_v3  ;;  %2730 = vmatpush1.bf16.msra.mxu1 %v7015_v8  ;;  %v7046_v3 = vcombine.high %v1218_v46, %v1222_v51  ;;  %v7048_v8 = vcombine.high %v1219_v52, %v1223_v53  ;;  %v1254_v46 = vld [vmem:[%s11373_s4 + $0x760] sm:$0xff] }
 0x31a   :  { %v878_v30 = vrot.slane %v877_v24, 2  ;;  %v909_v31 = vadd.f32 %v908_v25, %v894_v5  ;;  %2649 = vmatprep.subr.bf16.mxu0 %v7022_v11  ;;  %2731 = vmatprep.subr.bf16.mxu1 %v7024_v12  ;;  %v1230_v11 = vld [vmem:[%s11373_s4 + $0x6a0] sm:$0xff]  ;;  %v1227_v12 = vld [vmem:[%s11373_s4 + $0x688] sm:$0xff] }
 0x31b   :  { %v884_v57 = vrot.slane %v883_v26, 2  ;;  %v915_v59 = vadd.f32 %v914_v27, %v895_v16  ;;  %v7056_v27 = vcombine.high %v1227_v12, %v1231_v13 }
 0x31c   :  { %v879_v34 = vadd.f32 %v878_v30, %v877_v24  ;;  %v910_v35 = vrot.slane %v909_v31, 2  ;;  %v7047_v24 = vcombine.low %v1219_v52, %v1223_v53  ;;  %v1238_v30 = vld [vmem:[%s11373_s4 + $0x6e0] sm:$0xff] }
 0x31d   :  { %v885_v36 = vadd.f32 %v884_v57, %v883_v26  ;;  %v916_v38 = vrot.slane %v915_v59, 2  ;;  %2650 = vmatpush1.bf16.msra.mxu0 %v7021_v28  ;;  %2732 = vmatpush1.bf16.msra.mxu1 %v7023_v29  ;;  %v7054_v26 = vcombine.high %v1226_v9, %v1230_v11  ;;  %v1234_v28 = vld [vmem:[%s11373_s4 + $0x6c0] sm:$0xff]  ;;  %v7053_v57 = vcombine.low %v1226_v9, %v1230_v11 }
 0x31e   :  { %v880_v42 = vrot.slane %v879_v34, 1  ;;  %v911_v43 = vadd.f32 %v910_v35, %v909_v31  ;;  %2651 = vmatprep.subr.bf16.mxu0 %v7030_v32  ;;  %2733 = vmatprep.subr.bf16.mxu1 %v7032_v55  ;;  %v1235_v31 = vld [vmem:[%s11373_s4 + $0x6c8] sm:$0xff]  ;;  %v7062_v61 = vcombine.high %v1234_v28, %v1238_v30 }
 0x31f   :  { %v886_v47 = vrot.slane %v885_v36, 1  ;;  %v917_v48 = vadd.f32 %v916_v38, %v915_v59  ;;  %v1239_v32 = vld [vmem:[%s11373_s4 + $0x6e8] sm:$0xff]  ;;  %v7055_v59 = vcombine.low %v1227_v12, %v1231_v13 }
 0x320   :  { %v881_v54 = vadd.f32 %v880_v42, %v879_v34  ;;  %v912_v58 = vrot.slane %v911_v43, 1  ;;  %v7064_v33 = vcombine.high %v1235_v31, %v1239_v32  ;;  %v1242_v34 = vld [vmem:[%s11373_s4 + $0x700] sm:$0xff]  ;;  %v1243_v38 = vld [vmem:[%s11373_s4 + $0x708] sm:$0xff]  ;;  %v7063_v42 = vcombine.low %v1235_v31, %v1239_v32  ;;  %v1024_v31 = vld [vmem:[%s11373_s4 + $0x30] sm:$0xff] }
 0x321   :  { %v887_v62 = vadd.f32 %v886_v47, %v885_v36  ;;  %v918_v0 = vrot.slane %v917_v48, 1  ;;  %2652 = vmatpush1.bf16.msra.mxu0 %v7029_v39  ;;  %2734 = vmatpush1.bf16.msra.mxu1 %v7031_v41  ;;  %v1246_v36 = vld [vmem:[%s11373_s4 + $0x720] sm:$0xff]  ;;  %v1247_v39 = vld [vmem:[%s11373_s4 + $0x728] sm:$0xff]  ;;  %v7061_v41 = vcombine.low %v1234_v28, %v1238_v30  ;;  %v1025_v32 = vld [vmem:[%s11373_s4 + $0x38] sm:$0xff] }
 0x322   :  { %v9278_v4 = vmul.f32 0.125, %v881_v54  ;;  %v913_v7 = vadd.f32 %v912_v58, %v911_v43  ;;  %2653 = vmatprep.subr.bf16.mxu0 %v7038_v44  ;;  %2735 = vmatprep.subr.bf16.mxu1 %v7040_v45  ;;  %v7070_v43 = vcombine.high %v1242_v34, %v1246_v36  ;;  %v7072_v44 = vcombine.high %v1243_v38, %v1247_v39  ;;  %v1250_v45 = vld [vmem:[%s11373_s4 + $0x740] sm:$0xff]  ;;  %v1251_v47 = vld [vmem:[%s11373_s4 + $0x748] sm:$0xff] }
 0x323   :  { %v9283_v5 = vmul.f32 0.125, %v887_v62  ;;  %v919_v10 = vadd.f32 %v918_v0, %v917_v48  ;;  %v1255_v48 = vld [vmem:[%s11373_s4 + $0x768] sm:$0xff]  ;;  %v7069_v51 = vcombine.low %v1242_v34, %v1246_v36  ;;  %v7071_v52 = vcombine.low %v1243_v38, %v1247_v39  ;;  %v1258_v58 = vld [vmem:[%s11373_s4 + $0x780] sm:$0xff]  ;;  %v1032_v38 = vld [vmem:[%s11373_s4 + $0x70] sm:$0xff] }
 0x324   :  { %v922_v15 = vmul.f32 0.125, %v913_v7  ;;  %v926_v16 = vmul.f32 %v9278_v4, %v9278_v4  ;;  %v7078_v53 = vcombine.high %v1250_v45, %v1254_v46  ;;  %v7080_v54 = vcombine.high %v1251_v47, %v1255_v48  ;;  %v1262_v62 = vld [vmem:[%s11373_s4 + $0x7a0] sm:$0xff]  ;;  %v1259_v0 = vld [vmem:[%s11373_s4 + $0x788] sm:$0xff]  ;;  %v1029_v39 = vld [vmem:[%s11373_s4 + $0x58] sm:$0xff] }
 0x325   :  { %v923_v20 = vmul.f32 0.125, %v919_v10  ;;  %v927_v22 = vmul.f32 %v9283_v5, %v9283_v5  ;;  %2654 = vmatpush1.bf16.msra.mxu0 %v7037_v1  ;;  %2736 = vmatpush1.bf16.msra.mxu1 %v7039_v63  ;;  %v1263_v1 = vld [vmem:[%s11373_s4 + $0x7a8] sm:$0xff]  ;;  %v964_v63 = vrot.slane %v9119_v49, %v9197_v37  ;;  %v7077_v7 = vcombine.low %v1250_v45, %v1254_v46 }
 0x326   :  { %v930_v25 = vsub.f32 %v922_v15, %v926_v16  ;;  %2655 = vmatprep.subr.bf16.mxu0 %v7046_v3  ;;  %2737 = vmatprep.subr.bf16.mxu1 %v7048_v8  ;;  %v946_v3 = vsub.f32 %v9230_v2, %v9278_v4  ;;  %v968_v8 = vrot.slane %v9119_v49, %v9200_v40  ;;  %v1266_v15 = vld [vmem:[%s11373_s4 + $0x7c0] sm:$0xff]  ;;  %v1267_v4 = vld [vmem:[%s11373_s4 + $0x7c8] sm:$0xff] }
 0x327   :  { %v931_v29 = vsub.f32 %v923_v20, %v927_v22  ;;  %v7079_v9 = vcombine.low %v1251_v47, %v1255_v48  ;;  %v947_v11 = vsub.f32 %v9232_v6, %v9283_v5  ;;  %v7086_v12 = vcombine.high %v1258_v58, %v1262_v62  ;;  %v1270_v49 = vld [vmem:[%s11373_s4 + $0x7e0] sm:$0xff]  ;;  %v1271_v6 = vld [vmem:[%s11373_s4 + $0x7e8] sm:$0xff]  ;;  %v1036_v48 = vld [vmem:[%s11373_s4 + $0x90] sm:$0xff] }
 0x328   :  { %v934_v55 = vmax.f32 %v930_v25, 0.0  ;;  %v7088_v13 = vcombine.high %v1259_v0, %v1263_v1  ;;  %v989_v5 = vrot.slane %v9124_v50, %v9197_v37  ;;  %v993_v22 = vrot.slane %v9124_v50, %v9200_v40  ;;  %v1021_v50 = vld [vmem:[%s11373_s4 + $0x18] sm:$0xff] }
 0x329   :  { %v935_v56 = vmax.f32 %v931_v29, 0.0  ;;  %2656 = vmatpush1.bf16.msra.mxu0 %v7045_v23  ;;  %2738 = vmatpush1.bf16.msra.mxu1 %v7047_v24  ;;  %v7085_v24 = vcombine.low %v1258_v58, %v1262_v62  ;;  %v7087_v25 = vcombine.low %v1259_v0, %v1263_v1  ;;  %v7096_v28 = vcombine.high %v1267_v4, %v1271_v6  ;;  %v1020_v29 = vld [vmem:[%s11373_s4 + $0x10] sm:$0xff] }
 0x32a   :  { %v938_v60 = vadd.f32 1e-05, %v934_v55  ;;  %2657 = vmatprep.subr.bf16.mxu0 %v7054_v26  ;;  %2739 = vmatprep.subr.bf16.mxu1 %v7056_v27  ;;  %v7094_v27 = vcombine.high %v1266_v15, %v1270_v49  ;;  %v6851_v45 = vcombine.low %v1021_v50, %v1025_v32  ;;  %v1044_v0 = vld [vmem:[%s11373_s4 + $0xd0] sm:$0xff] }
 0x32b   :  { %v939_v35 = vadd.f32 1e-05, %v935_v56  ;;  %v7093_v56 = vcombine.low %v1266_v15, %v1270_v49  ;;  %v1057_v15 = vld [vmem:[%s11373_s4 + $0x138] sm:$0xff] }
 0x32c   :  { %8511 = vrsqrt.f32 %v938_v60 }
 0x32d   :  { %8513 = vrsqrt.f32 %v939_v35  ;;  %2658 = vmatpush1.bf16.msra.mxu0 %v7053_v57  ;;  %2740 = vmatpush1.bf16.msra.mxu1 %v7055_v59  ;;  %v7095_v57 = vcombine.low %v1267_v4, %v1271_v6  ;;  %v1028_v35 = vld [vmem:[%s11373_s4 + $0x50] sm:$0xff] }
 0x32e   :  { %2659 = vmatprep.subr.bf16.mxu0 %v7062_v61  ;;  %2741 = vmatprep.subr.bf16.mxu1 %v7064_v33  ;;  %v6850_v61 = vcombine.high %v1020_v29, %v1024_v31  ;;  %v6852_v33 = vcombine.high %v1021_v50, %v1025_v32  ;;  %v6858_v46 = vcombine.high %v1028_v35, %v1032_v38  ;;  %v1060_v4 = vld [vmem:[%s11373_s4 + $0x150] sm:$0xff] }
 0x32f   :  { %v1076_v50 = vld [vmem:[%s11373_s4 + $0x1d0] sm:$0xff] }
 0x330   :  { %v1080_v32 = vld [vmem:[%s11373_s4 + $0x1f0] sm:$0xff] }
 0x331   :  { %2660 = vmatpush1.bf16.msra.mxu0 %v7061_v41  ;;  %2742 = vmatpush1.bf16.msra.mxu1 %v7063_v42  ;;  %v1033_v41 = vld [vmem:[%s11373_s4 + $0x78] sm:$0xff] }
 0x332   :  { %2661 = vmatprep.subr.bf16.mxu0 %v7070_v43  ;;  %2743 = vmatprep.subr.bf16.mxu1 %v7072_v44  ;;  %v6849_v43 = vcombine.low %v1020_v29, %v1024_v31  ;;  %v6860_v47 = vcombine.high %v1029_v39, %v1033_v41  ;;  %v6859_v58 = vcombine.low %v1029_v39, %v1033_v41  ;;  %v1073_v29 = vld [vmem:[%s11373_s4 + $0x1b8] sm:$0xff] }
 0x333   :  { %v1089_v39 = vld [vmem:[%s11373_s4 + $0x238] sm:$0xff] }
 0x335   :  { %2662 = vmatpush1.bf16.msra.mxu0 %v7069_v51  ;;  %2744 = vmatpush1.bf16.msra.mxu1 %v7071_v52  ;;  %v1040_v51 = vld [vmem:[%s11373_s4 + $0xb0] sm:$0xff]  ;;  %v1037_v52 = vld [vmem:[%s11373_s4 + $0x98] sm:$0xff] }
 0x336   :  { %v8512_v10 = vpop.eup %8511  ;;  %2663 = vmatprep.subr.bf16.mxu0 %v7078_v53  ;;  %2745 = vmatprep.subr.bf16.mxu1 %v7080_v54  ;;  %v1041_v53 = vld [vmem:[%s11373_s4 + $0xb8] sm:$0xff]  ;;  %v6857_v54 = vcombine.low %v1028_v35, %v1032_v38  ;;  %v6866_v62 = vcombine.high %v1036_v48, %v1040_v51 }
 0x337   :  { %v8514_v16 = vpop.eup %8513  ;;  %v950_v2 = vmul.f32 %v8512_v10, %v946_v3  ;;  %v6868_v1 = vcombine.high %v1037_v52, %v1041_v53  ;;  %v6865_v3 = vcombine.low %v1036_v48, %v1040_v51  ;;  %v1052_v10 = vld [vmem:[%s11373_s4 + $0x110] sm:$0xff]  ;;  %v1085_v38 = vld [vmem:[%s11373_s4 + $0x218] sm:$0xff] }
 0x338   :  { %v951_v20 = vmul.f32 %v8514_v16, %v947_v11  ;;  %v1093_v51 = vld [vmem:[%s11373_s4 + $0x258] sm:$0xff] }
 0x339   :  { %v975_v23 = vmul.f32 %v964_v63, %v950_v2  ;;  %2664 = vmatpush1.bf16.msra.mxu0 %v7077_v7  ;;  %2746 = vmatpush1.bf16.msra.mxu1 %v7079_v9  ;;  %v1048_v63 = vld [vmem:[%s11373_s4 + $0xf0] sm:$0xff]  ;;  %v1045_v7 = vld [vmem:[%s11373_s4 + $0xd8] sm:$0xff] }
 0x33a   :  { %v976_v26 = vmul.f32 %v968_v8, %v951_v20  ;;  %2665 = vmatprep.subr.bf16.mxu0 %v7086_v12  ;;  %2747 = vmatprep.subr.bf16.mxu1 %v7088_v13  ;;  %v6867_v8 = vcombine.low %v1037_v52, %v1041_v53  ;;  %v6874_v9 = vcombine.high %v1044_v0, %v1048_v63  ;;  %v1056_v12 = vld [vmem:[%s11373_s4 + $0x130] sm:$0xff]  ;;  %v1053_v13 = vld [vmem:[%s11373_s4 + $0x118] sm:$0xff] }
 0x33b   :  { %v1000_v30 = vadd.f32 %v989_v5, %v975_v23  ;;  %v6873_v16 = vcombine.low %v1044_v0, %v1048_v63  ;;  %v6882_v49 = vcombine.high %v1052_v10, %v1056_v12  ;;  %v6884_v6 = vcombine.high %v1053_v13, %v1057_v15  ;;  %v1064_v5 = vld [vmem:[%s11373_s4 + $0x170] sm:$0xff]  ;;  %v1061_v20 = vld [vmem:[%s11373_s4 + $0x158] sm:$0xff] }
 0x33c   :  { %v1001_v55 = vadd.f32 %v993_v22, %v976_v26  ;;  %v1065_v22 = vld [vmem:[%s11373_s4 + $0x178] sm:$0xff]  ;;  %v6881_v23 = vcombine.low %v1052_v10, %v1056_v12  ;;  %v6883_v26 = vcombine.low %v1053_v13, %v1057_v15  ;;  %v6889_v31 = vcombine.low %v1060_v4, %v1064_v5 }
 0x33d   :  { %2666 = vmatpush1.bf16.msra.mxu0 %v7085_v24  ;;  %2748 = vmatpush1.bf16.msra.mxu1 %v7087_v25  ;;  %vm1004_vm6 = vcmp.gt.f32.partialorder %v1000_v30, 0.0  ;;  %v1008_v59 = vmul.f32 0.2, %v1000_v30  ;;  %v1068_v24 = vld [vmem:[%s11373_s4 + $0x190] sm:$0xff]  ;;  %v1097_v52 = vld [vmem:[%s11373_s4 + $0x278] sm:$0xff]  ;;  %v6916_v53 = vcombine.high %v1085_v38, %v1089_v39  ;;  %v6915_v0 = vcombine.low %v1085_v38, %v1089_v39 }
 0x33e   :  { %2667 = vmatprep.subr.bf16.mxu0 %v7094_v27  ;;  %2749 = vmatprep.subr.bf16.mxu1 %v7096_v28  ;;  %vm1005_vm7 = vcmp.gt.f32.partialorder %v1001_v55, 0.0  ;;  %v1009_v60 = vmul.f32 0.2, %v1001_v55  ;;  %v1072_v25 = vld [vmem:[%s11373_s4 + $0x1b0] sm:$0xff]  ;;  %v6890_v27 = vcombine.high %v1060_v4, %v1064_v5  ;;  %v1069_v28 = vld [vmem:[%s11373_s4 + $0x198] sm:$0xff]  ;;  %v6923_v10 = vcombine.low %v1093_v51, %v1097_v52 }
 0x33f   :  { %v1012_v34 = vsel %vm1004_vm6, %v1000_v30, %v1008_v59  ;;  %v6892_v30 = vcombine.high %v1061_v20, %v1065_v22  ;;  %v1081_v59 = vld [vmem:[%s11373_s4 + $0x1f8] sm:$0xff]  ;;  %v6899_v35 = vcombine.low %v1069_v28, %v1073_v29 }
 0x340   :  { %v1013_v36 = vsel %vm1005_vm7, %v1001_v55, %v1009_v60  ;;  %v9396_v44 = vpack.c.bf16 %v1012_v34, %v1012_v34  ;;  %v6891_v55 = vcombine.low %v1061_v20, %v1065_v22  ;;  %v6900_v60 = vcombine.high %v1069_v28, %v1073_v29  ;;  %v1088_v34 = vld [vmem:[%s11373_s4 + $0x230] sm:$0xff]  ;;  %v1101_v63 = vld [vmem:[%s11373_s4 + $0x298] sm:$0xff] }
 0x341   :  { %2668 = vmatpush1.bf16.msra.mxu0 %v7093_v56  ;;  %2750 = vmatpush1.bf16.msra.mxu1 %v7095_v57  ;;  %v9394_v42 = vpack.c.bf16 %v1013_v36, %v1013_v36  ;;  %v6898_v56 = vcombine.high %v1068_v24, %v1072_v25  ;;  %v1077_v57 = vld [vmem:[%s11373_s4 + $0x1d8] sm:$0xff]  ;;  %v6906_v36 = vcombine.high %v1076_v50, %v1080_v32 }
 0x342   :  { %2760 = vmatprep.subr.bf16.mxu0 %v6850_v61  ;;  %2842 = vmatprep.subr.bf16.mxu1 %v6852_v33  ;;  %v6897_v61 = vcombine.low %v1068_v24, %v1072_v25  ;;  %v1084_v33 = vld [vmem:[%s11373_s4 + $0x210] sm:$0xff]  ;;  %v6908_v41 = vcombine.high %v1077_v57, %v1081_v59  ;;  %v1109_v12 = vld [vmem:[%s11373_s4 + $0x2d8] sm:$0xff] }
 0x343   :  { %2669 = vmatprep.mubr.bf16.mxu0 %v9394_v42  ;;  %2751 = vmatprep.mubr.bf16.mxu1 %v9394_v42  ;;  %v6914_v48 = vcombine.high %v1084_v33, %v1088_v34  ;;  %v1113_v13 = vld [vmem:[%s11373_s4 + $0x2f8] sm:$0xff]  ;;  %v1124_v24 = vld [vmem:[%s11373_s4 + $0x350] sm:$0xff] }
 0x344   :  { %2670 = vmatmul.mubr.bf16.vlgmr.msra.gmra.mrb[4].mxu0 %v9396_v44  ;;  %2752 = vmatmul.mubr.bf16.vlgmr.msra.gmra.mrb[12].mxu1 %v9396_v44  ;;  %v1117_v5 = vld [vmem:[%s11373_s4 + $0x318] sm:$0xff]  ;;  %v6940_v22 = vcombine.high %v1109_v12, %v1113_v13  ;;  %v1128_v25 = vld [vmem:[%s11373_s4 + $0x370] sm:$0xff] }
 0x345   :  { %2761 = vmatpush1.bf16.msra.mxu0 %v6849_v43  ;;  %2792 = vmatprep.mubr.bf16.mxu0 %v9146_v17  ;;  %v6905_v43 = vcombine.low %v1076_v50, %v1080_v32  ;;  %v1121_v20 = vld [vmem:[%s11373_s4 + $0x338] sm:$0xff]  ;;  %v1132_v50 = vld [vmem:[%s11373_s4 + $0x390] sm:$0xff] }
 0x346   :  { %2843 = vmatpush1.bf16.msra.mxu1 %v6851_v45  ;;  %2874 = vmatprep.mubr.bf16.mxu1 %v9146_v17  ;;  %v1049_v17 = vld [vmem:[%s11373_s4 + $0xf8] sm:$0xff]  ;;  %v1092_v45 = vld [vmem:[%s11373_s4 + $0x250] sm:$0xff] }
 0x347   :  { %2762 = vmatprep.subr.bf16.mxu0 %v6858_v46  ;;  %2844 = vmatprep.subr.bf16.mxu1 %v6860_v47  ;;  %v6876_v11 = vcombine.high %v1045_v7, %v1049_v17  ;;  %v6875_v2 = vcombine.low %v1045_v7, %v1049_v17  ;;  %v1096_v46 = vld [vmem:[%s11373_s4 + $0x270] sm:$0xff]  ;;  %v6907_v47 = vcombine.low %v1077_v57, %v1081_v59  ;;  %v1105_v7 = vld [vmem:[%s11373_s4 + $0x2b8] sm:$0xff] }
 0x348   :  { %v6924_v17 = vcombine.high %v1093_v51, %v1097_v52  ;;  %v6932_v15 = vcombine.high %v1101_v63, %v1105_v7  ;;  %v6931_v4 = vcombine.low %v1101_v63, %v1105_v7  ;;  %v1125_v28 = vld [vmem:[%s11373_s4 + $0x358] sm:$0xff]  ;;  %v1136_v32 = vld [vmem:[%s11373_s4 + $0x3b0] sm:$0xff] }
 0x349   :  { %2763 = vmatpush1.bf16.msra.mxu0 %v6857_v54  ;;  %v6913_v54 = vcombine.low %v1084_v33, %v1088_v34  ;;  %v1129_v29 = vld [vmem:[%s11373_s4 + $0x378] sm:$0xff]  ;;  %v1140_v33 = vld [vmem:[%s11373_s4 + $0x3d0] sm:$0xff] }
 0x34a   :  { %2845 = vmatpush1.bf16.msra.mxu1 %v6859_v58  ;;  %2764 = vmatprep.subr.bf16.mxu0 %v6866_v62  ;;  %v1100_v58 = vld [vmem:[%s11373_s4 + $0x290] sm:$0xff]  ;;  %v1133_v57 = vld [vmem:[%s11373_s4 + $0x398] sm:$0xff] }
 0x34b   :  { %2846 = vmatprep.subr.bf16.mxu1 %v6868_v1  ;;  %v1104_v62 = vld [vmem:[%s11373_s4 + $0x2b0] sm:$0xff]  ;;  %v6922_v1 = vcombine.high %v1092_v45, %v1096_v46  ;;  %v1137_v59 = vld [vmem:[%s11373_s4 + $0x3b8] sm:$0xff] }
 0x34c   :  { %v1144_v34 = vld [vmem:[%s11373_s4 + $0x3f0] sm:$0xff]  ;;  %v1141_v38 = vld [vmem:[%s11373_s4 + $0x3d8] sm:$0xff] }
 0x34d   :  { %2765 = vmatpush1.bf16.msra.mxu0 %v6865_v3  ;;  %v6921_v3 = vcombine.low %v1092_v45, %v1096_v46  ;;  %v1145_v39 = vld [vmem:[%s11373_s4 + $0x3f8] sm:$0xff]  ;;  %v1148_v45 = vld [vmem:[%s11373_s4 + $0x410] sm:$0xff] }
 0x34e   :  { %2847 = vmatpush1.bf16.msra.mxu1 %v6867_v8  ;;  %2766 = vmatprep.subr.bf16.mxu0 %v6874_v9  ;;  %v1108_v8 = vld [vmem:[%s11373_s4 + $0x2d0] sm:$0xff]  ;;  %v1149_v51 = vld [vmem:[%s11373_s4 + $0x418] sm:$0xff] }
 0x34f   :  { %2848 = vmatprep.subr.bf16.mxu1 %v6876_v11  ;;  %v1112_v9 = vld [vmem:[%s11373_s4 + $0x2f0] sm:$0xff]  ;;  %v6930_v11 = vcombine.high %v1100_v58, %v1104_v62  ;;  %v1153_v52 = vld [vmem:[%s11373_s4 + $0x438] sm:$0xff] }
 0x350   :  { %v1152_v46 = vld [vmem:[%s11373_s4 + $0x430] sm:$0xff]  ;;  %v6980_v63 = vcombine.high %v1149_v51, %v1153_v52  ;;  %v1157_v7 = vld [vmem:[%s11373_s4 + $0x458] sm:$0xff] }
 0x351   :  { %2767 = vmatpush1.bf16.msra.mxu0 %v6873_v16  ;;  %v6929_v16 = vcombine.low %v1100_v58, %v1104_v62  ;;  %v6971_v58 = vcombine.low %v1141_v38, %v1145_v39  ;;  %v6978_v62 = vcombine.high %v1148_v45, %v1152_v46 }
 0x352   :  { %2849 = vmatpush1.bf16.msra.mxu1 %v6875_v2  ;;  %2768 = vmatprep.subr.bf16.mxu0 %v6882_v49  ;;  %v1116_v2 = vld [vmem:[%s11373_s4 + $0x310] sm:$0xff] }
 0x353   :  { %2850 = vmatprep.subr.bf16.mxu1 %v6884_v6  ;;  %v1120_v49 = vld [vmem:[%s11373_s4 + $0x330] sm:$0xff]  ;;  %v6938_v6 = vcombine.high %v1108_v8, %v1112_v9 }
 0x355   :  { %2769 = vmatpush1.bf16.msra.mxu0 %v6881_v23  ;;  %v6937_v23 = vcombine.low %v1108_v8, %v1112_v9  ;;  %v1164_v8 = vld [vmem:[%s11373_s4 + $0x490] sm:$0xff] }
 0x356   :  { %2851 = vmatpush1.bf16.msra.mxu1 %v6883_v26  ;;  %2770 = vmatprep.subr.bf16.mxu0 %v6890_v27  ;;  %v6939_v26 = vcombine.low %v1109_v12, %v1113_v13  ;;  %v6946_v27 = vcombine.high %v1116_v2, %v1120_v49  ;;  %v1168_v9 = vld [vmem:[%s11373_s4 + $0x4b0] sm:$0xff]  ;;  %v1169_v12 = vld [vmem:[%s11373_s4 + $0x4b8] sm:$0xff] }
 0x357   :  { %2852 = vmatprep.subr.bf16.mxu1 %v6892_v30  ;;  %v6948_v30 = vcombine.high %v1117_v5, %v1121_v20 }
 0x359   :  { %2771 = vmatpush1.bf16.msra.mxu0 %v6889_v31  ;;  %v6945_v31 = vcombine.low %v1116_v2, %v1120_v49  ;;  %v1172_v2 = vld [vmem:[%s11373_s4 + $0x4d0] sm:$0xff] }
 0x35a   :  { %2853 = vmatpush1.bf16.msra.mxu1 %v6891_v55  ;;  %2772 = vmatprep.subr.bf16.mxu0 %v6898_v56  ;;  %v6947_v55 = vcombine.low %v1117_v5, %v1121_v20  ;;  %v6954_v56 = vcombine.high %v1124_v24, %v1128_v25  ;;  %v1176_v49 = vld [vmem:[%s11373_s4 + $0x4f0] sm:$0xff]  ;;  %v1173_v5 = vld [vmem:[%s11373_s4 + $0x4d8] sm:$0xff] }
 0x35b   :  { %2854 = vmatprep.subr.bf16.mxu1 %v6900_v60  ;;  %v6956_v60 = vcombine.high %v1125_v28, %v1129_v29 }
 0x35d   :  { %2773 = vmatpush1.bf16.msra.mxu0 %v6897_v61  ;;  %v6953_v61 = vcombine.low %v1124_v24, %v1128_v25  ;;  %v1184_v24 = vld [vmem:[%s11373_s4 + $0x530] sm:$0xff] }
 0x35e   :  { %2855 = vmatpush1.bf16.msra.mxu1 %v6899_v35  ;;  %2774 = vmatprep.subr.bf16.mxu0 %v6906_v36  ;;  %v6955_v35 = vcombine.low %v1125_v28, %v1129_v29  ;;  %v6962_v36 = vcombine.high %v1132_v50, %v1136_v32  ;;  %v7001_v29 = vcombine.low %v1172_v2, %v1176_v49 }
 0x35f   :  { %2856 = vmatprep.subr.bf16.mxu1 %v6908_v41  ;;  %v6964_v41 = vcombine.high %v1133_v57, %v1137_v59 }
 0x361   :  { %2775 = vmatpush1.bf16.msra.mxu0 %v6905_v43  ;;  %v6961_v43 = vcombine.low %v1132_v50, %v1136_v32 }
 0x362   :  { %2857 = vmatpush1.bf16.msra.mxu1 %v6907_v47  ;;  %2776 = vmatprep.subr.bf16.mxu0 %v6914_v48  ;;  %v6963_v47 = vcombine.low %v1133_v57, %v1137_v59  ;;  %v6970_v48 = vcombine.high %v1140_v33, %v1144_v34 }
 0x363   :  { %2858 = vmatprep.subr.bf16.mxu1 %v6916_v53  ;;  %v6972_v53 = vcombine.high %v1141_v38, %v1145_v39 }
 0x365   :  { %2777 = vmatpush1.bf16.msra.mxu0 %v6913_v54  ;;  %v6969_v54 = vcombine.low %v1140_v33, %v1144_v34 }
 0x366   :  { %2859 = vmatpush1.bf16.msra.mxu1 %v6915_v0  ;;  %2778 = vmatprep.subr.bf16.mxu0 %v6922_v1  ;;  %v1156_v0 = vld [vmem:[%s11373_s4 + $0x450] sm:$0xff] }
 0x367   :  { %2860 = vmatprep.subr.bf16.mxu1 %v6924_v17  ;;  %v1160_v1 = vld [vmem:[%s11373_s4 + $0x470] sm:$0xff]  ;;  %v1161_v17 = vld [vmem:[%s11373_s4 + $0x478] sm:$0xff] }
 0x368   :  { %v6986_v13 = vcombine.high %v1156_v0, %v1160_v1 }
 0x369   :  { %2779 = vmatpush1.bf16.msra.mxu0 %v6921_v3  ;;  %v6977_v3 = vcombine.low %v1148_v45, %v1152_v46  ;;  %v1204_v46 = vld [vmem:[%s11373_s4 + $0x5d0] sm:$0xff] }
 0x36a   :  { %2861 = vmatpush1.bf16.msra.mxu1 %v6923_v10  ;;  %2780 = vmatprep.subr.bf16.mxu0 %v6930_v11  ;;  %v6979_v10 = vcombine.low %v1149_v51, %v1153_v52  ;;  %v1165_v11 = vld [vmem:[%s11373_s4 + $0x498] sm:$0xff] }
 0x36b   :  { %2862 = vmatprep.subr.bf16.mxu1 %v6932_v15  ;;  %v6988_v15 = vcombine.high %v1157_v7, %v1161_v17  ;;  %v6996_v20 = vcombine.high %v1165_v11, %v1169_v12  ;;  %v6995_v25 = vcombine.low %v1165_v11, %v1169_v12  ;;  %v1209_v51 = vld [vmem:[%s11373_s4 + $0x5f8] sm:$0xff] }
 0x36c   :  { %v1221_v11 = vld [vmem:[%s11373_s4 + $0x658] sm:$0xff] }
 0x36d   :  { %2781 = vmatpush1.bf16.msra.mxu0 %v6929_v16  ;;  %v6985_v16 = vcombine.low %v1156_v0, %v1160_v1  ;;  %v1216_v0 = vld [vmem:[%s11373_s4 + $0x630] sm:$0xff]  ;;  %v1213_v1 = vld [vmem:[%s11373_s4 + $0x618] sm:$0xff] }
 0x36e   :  { %2863 = vmatpush1.bf16.msra.mxu1 %v6931_v4  ;;  %2782 = vmatprep.subr.bf16.mxu0 %v6938_v6  ;;  %v6987_v4 = vcombine.low %v1157_v7, %v1161_v17  ;;  %v6994_v6 = vcombine.high %v1164_v8, %v1168_v9  ;;  %v1225_v12 = vld [vmem:[%s11373_s4 + $0x678] sm:$0xff] }
 0x36f   :  { %2864 = vmatprep.subr.bf16.mxu1 %v6940_v22  ;;  %v6993_v22 = vcombine.low %v1164_v8, %v1168_v9  ;;  %v1220_v9 = vld [vmem:[%s11373_s4 + $0x650] sm:$0xff] }
 0x371   :  { %2783 = vmatpush1.bf16.msra.mxu0 %v6937_v23  ;;  %v1180_v23 = vld [vmem:[%s11373_s4 + $0x510] sm:$0xff] }
 0x372   :  { %2865 = vmatpush1.bf16.msra.mxu1 %v6939_v26  ;;  %2784 = vmatprep.subr.bf16.mxu0 %v6946_v27  ;;  %v7002_v26 = vcombine.high %v1172_v2, %v1176_v49  ;;  %v1185_v27 = vld [vmem:[%s11373_s4 + $0x538] sm:$0xff]  ;;  %v7010_v32 = vcombine.high %v1180_v23, %v1184_v24  ;;  %v7009_v59 = vcombine.low %v1180_v23, %v1184_v24  ;;  %v1228_v49 = vld [vmem:[%s11373_s4 + $0x690] sm:$0xff] }
 0x373   :  { %2866 = vmatprep.subr.bf16.mxu1 %v6948_v30  ;;  %v1188_v30 = vld [vmem:[%s11373_s4 + $0x550] sm:$0xff]  ;;  %v7052_v2 = vcombine.high %v1221_v11, %v1225_v12 }
 0x374   :  { %v1236_v24 = vld [vmem:[%s11373_s4 + $0x6d0] sm:$0xff] }
 0x375   :  { %2785 = vmatpush1.bf16.msra.mxu0 %v6945_v31  ;;  %v1192_v31 = vld [vmem:[%s11373_s4 + $0x570] sm:$0xff] }
 0x376   :  { %2867 = vmatpush1.bf16.msra.mxu1 %v6947_v55  ;;  %2786 = vmatprep.subr.bf16.mxu0 %v6954_v56  ;;  %v1189_v55 = vld [vmem:[%s11373_s4 + $0x558] sm:$0xff]  ;;  %v7018_v34 = vcombine.high %v1188_v30, %v1192_v31  ;;  %v7017_v39 = vcombine.low %v1188_v30, %v1192_v31  ;;  %v1244_v31 = vld [vmem:[%s11373_s4 + $0x710] sm:$0xff] }
 0x377   :  { %2868 = vmatprep.subr.bf16.mxu1 %v6956_v60  ;;  %v1193_v56 = vld [vmem:[%s11373_s4 + $0x578] sm:$0xff]  ;;  %v1196_v60 = vld [vmem:[%s11373_s4 + $0x590] sm:$0xff] }
 0x378   :  { %v7020_v38 = vcombine.high %v1189_v55, %v1193_v56 }
 0x379   :  { %2787 = vmatpush1.bf16.msra.mxu0 %v6953_v61  ;;  %v1200_v61 = vld [vmem:[%s11373_s4 + $0x5b0] sm:$0xff] }
 0x37a   :  { %2869 = vmatpush1.bf16.msra.mxu1 %v6955_v35  ;;  %2788 = vmatprep.subr.bf16.mxu0 %v6962_v36  ;;  %v1197_v35 = vld [vmem:[%s11373_s4 + $0x598] sm:$0xff]  ;;  %v7025_v52 = vcombine.low %v1196_v60, %v1200_v61 }
 0x37b   :  { %2870 = vmatprep.subr.bf16.mxu1 %v6964_v41  ;;  %v1201_v36 = vld [vmem:[%s11373_s4 + $0x5b8] sm:$0xff]  ;;  %v7019_v41 = vcombine.low %v1189_v55, %v1193_v56 }
 0x37c   :  { %v7028_v45 = vcombine.high %v1197_v35, %v1201_v36  ;;  %v1249_v55 = vld [vmem:[%s11373_s4 + $0x738] sm:$0xff] }
 0x37d   :  { %2789 = vmatpush1.bf16.msra.mxu0 %v6961_v43  ;;  %v7026_v43 = vcombine.high %v1196_v60, %v1200_v61  ;;  %v1252_v61 = vld [vmem:[%s11373_s4 + $0x750] sm:$0xff] }
 0x37e   :  { %2871 = vmatpush1.bf16.msra.mxu1 %v6963_v47  ;;  %2790 = vmatprep.subr.bf16.mxu0 %v6970_v48  ;;  %v1208_v47 = vld [vmem:[%s11373_s4 + $0x5f0] sm:$0xff]  ;;  %v1205_v48 = vld [vmem:[%s11373_s4 + $0x5d8] sm:$0xff] }
 0x37f   :  { %2872 = vmatprep.subr.bf16.mxu1 %v6972_v53  ;;  %v7027_v53 = vcombine.low %v1197_v35, %v1201_v36  ;;  %v7033_v7 = vcombine.low %v1204_v46, %v1208_v47  ;;  %v7035_v17 = vcombine.low %v1205_v48, %v1209_v51  ;;  %v1257_v35 = vld [vmem:[%s11373_s4 + $0x778] sm:$0xff] }
 0x381   :  { %2791 = vmatpush1.bf16.msra.mxu0 %v6969_v54  ;;  %v7034_v54 = vcombine.high %v1204_v46, %v1208_v47  ;;  %v1261_v46 = vld [vmem:[%s11373_s4 + $0x798] sm:$0xff] }
 0x382   :  { %2873 = vmatpush1.bf16.msra.mxu1 %v6971_v58  ;;  %2801 = vmatprep.subr.bf16.mxu0 %v6978_v62  ;;  %v7036_v58 = vcombine.high %v1205_v48, %v1209_v51  ;;  %v1212_v62 = vld [vmem:[%s11373_s4 + $0x610] sm:$0xff]  ;;  %v1265_v47 = vld [vmem:[%s11373_s4 + $0x7b8] sm:$0xff] }
 0x383   :  { %2883 = vmatprep.subr.bf16.mxu1 %v6980_v63  ;;  %v1217_v63 = vld [vmem:[%s11373_s4 + $0x638] sm:$0xff] }
 0x384   :  { %2793 = vmatmul.mubr.bf16.vlgmr.msra.gmra.mrb[8].mxu0 %v9148_v18  ;;  %v7044_v8 = vcombine.high %v1213_v1, %v1217_v63 }
 0x385   :  { %2875 = vmatmul.mubr.bf16.vlgmr.msra.gmra.mrb[16].mxu1 %v9148_v18  ;;  %2802 = vmatpush1.bf16.msra.mxu0 %v6977_v3  ;;  %v1177_v18 = vld [vmem:[%s11373_s4 + $0x4f8] sm:$0xff]  ;;  %v7042_v3 = vcombine.high %v1212_v62, %v1216_v0 }
 0x386   :  { %2833 = vmatprep.mubr.bf16.mxu0 %v9394_v42  ;;  %2884 = vmatpush1.bf16.msra.mxu1 %v6979_v10  ;;  %v7004_v28 = vcombine.high %v1173_v5, %v1177_v18  ;;  %v7003_v50 = vcombine.low %v1173_v5, %v1177_v18  ;;  %v1224_v10 = vld [vmem:[%s11373_s4 + $0x670] sm:$0xff]  ;;  %v1233_v5 = vld [vmem:[%s11373_s4 + $0x6b8] sm:$0xff] }
 0x387   :  { %2915 = vmatprep.mubr.bf16.mxu1 %v9394_v42  ;;  %2803 = vmatprep.subr.bf16.mxu0 %v6986_v13  ;;  %v1181_v42 = vld [vmem:[%s11373_s4 + $0x518] sm:$0xff]  ;;  %v7041_v13 = vcombine.low %v1212_v62, %v1216_v0  ;;  %v7049_v18 = vcombine.low %v1220_v9, %v1224_v10 }
 0x388   :  { %2885 = vmatprep.subr.bf16.mxu1 %v6988_v15  ;;  %v7012_v57 = vcombine.high %v1181_v42, %v1185_v27  ;;  %v7011_v33 = vcombine.low %v1181_v42, %v1185_v27  ;;  %v7043_v15 = vcombine.low %v1213_v1, %v1217_v63  ;;  %v1241_v42 = vld [vmem:[%s11373_s4 + $0x6f8] sm:$0xff]  ;;  %v7091_v63 = vcombine.low %v1261_v46, %v1265_v47 }
 0x389   :  { %2804 = vmatpush1.bf16.msra.mxu0 %v6985_v16  ;;  %v7050_v16 = vcombine.high %v1220_v9, %v1224_v10  ;;  %v1269_v62 = vld [vmem:[%s11373_s4 + $0x7d8] sm:$0xff]  ;;  %v7865_v9 = vld [vmem:[%s11374_s5 + $0x4] ss:$28 sps:$4 sm:$0xff]   ;;  %v7868_v10 = vld [vmem:[%s11374_s5 + $0xc] ss:$28 sps:$4 sm:$0xff]  }
 0x38a   :  { %2886 = vmatpush1.bf16.msra.mxu1 %v6987_v4  ;;  %2805 = vmatprep.subr.bf16.mxu0 %v6994_v6  ;;  %v1232_v4 = vld [vmem:[%s11373_s4 + $0x6b0] sm:$0xff]  ;;  %v1229_v6 = vld [vmem:[%s11373_s4 + $0x698] sm:$0xff] }
 0x38b   :  { %2887 = vmatprep.subr.bf16.mxu1 %v6996_v20  ;;  %v7051_v20 = vcombine.low %v1221_v11, %v1225_v12  ;;  %v7060_v23 = vcombine.high %v1229_v6, %v1233_v5  ;;  %v7057_v27 = vcombine.low %v1228_v49, %v1232_v4  ;;  %v1273_v0 = vld [vmem:[%s11373_s4 + $0x7f8] sm:$0xff]  ;;  %v7866_v12 = vld [vmem:[%s11374_s5 + $0x8] ss:$28 sps:$4 sm:$0xff]  }
 0x38c   :  { %v7863_v11 = vld [vmem:[%s11374_s5] ss:$28 sps:$4 sm:$0xff]  }
 0x38d   :  { %2806 = vmatpush1.bf16.msra.mxu0 %v6993_v22  ;;  %v7058_v22 = vcombine.high %v1228_v49, %v1232_v4  ;;  %v7877_v49 = vld [vmem:[%s11374_s5 + $0x74] ss:$28 sps:$4 sm:$0xff]  }
 0x38e   :  { %2888 = vmatpush1.bf16.msra.mxu1 %v6995_v25  ;;  %2807 = vmatprep.subr.bf16.mxu0 %v7002_v26  ;;  %v1240_v25 = vld [vmem:[%s11373_s4 + $0x6f0] sm:$0xff]  ;;  %v1237_v26 = vld [vmem:[%s11373_s4 + $0x6d8] sm:$0xff] }
 0x38f   :  { %2889 = vmatprep.subr.bf16.mxu1 %v7004_v28  ;;  %v7059_v28 = vcombine.low %v1229_v6, %v1233_v5  ;;  %v7068_v30 = vcombine.high %v1237_v26, %v1241_v42  ;;  %v7065_v56 = vcombine.low %v1236_v24, %v1240_v25  ;;  %v7875_v4 = vld [vmem:[%s11374_s5 + $0x70] ss:$28 sps:$4 sm:$0xff]   ;;  %v7880_v6 = vld [vmem:[%s11374_s5 + $0x7c] ss:$28 sps:$4 sm:$0xff]  }
 0x390   :  { %v7878_v5 = vld [vmem:[%s11374_s5 + $0x78] ss:$28 sps:$4 sm:$0xff]  }
 0x391   :  { %2808 = vmatpush1.bf16.msra.mxu0 %v7001_v29  ;;  %v7066_v29 = vcombine.high %v1236_v24, %v1240_v25  ;;  %v7887_v24 = vld [vmem:[%s11374_s5 + $0xe0] ss:$28 sps:$4 sm:$0xff]   ;;  %v7892_v25 = vld [vmem:[%s11374_s5 + $0xec] ss:$28 sps:$4 sm:$0xff]  }
 0x392   :  { %2890 = vmatpush1.bf16.msra.mxu1 %v7003_v50  ;;  %2809 = vmatprep.subr.bf16.mxu0 %v7010_v32  ;;  %v1248_v50 = vld [vmem:[%s11373_s4 + $0x730] sm:$0xff]  ;;  %v1245_v32 = vld [vmem:[%s11373_s4 + $0x718] sm:$0xff] }
 0x393   :  { %2891 = vmatprep.subr.bf16.mxu1 %v7012_v57  ;;  %v7067_v57 = vcombine.low %v1237_v26, %v1241_v42  ;;  %v7076_v60 = vcombine.high %v1245_v32, %v1249_v55  ;;  %v7073_v36 = vcombine.low %v1244_v31, %v1248_v50  ;;  %v7890_v26 = vld [vmem:[%s11374_s5 + $0xe8] ss:$28 sps:$4 sm:$0xff]   ;;  %v7895_v42 = vld [vmem:[%s11374_s5 + $0x11c] ss:$28 sps:$4 sm:$0xff]  }
 0x395   :  { %2810 = vmatpush1.bf16.msra.mxu0 %v7009_v59  ;;  %v7074_v59 = vcombine.high %v1244_v31, %v1248_v50  ;;  %v7899_v31 = vld [vmem:[%s11374_s5 + $0x150] ss:$28 sps:$4 sm:$0xff]   ;;  %v7904_v50 = vld [vmem:[%s11374_s5 + $0x15c] ss:$28 sps:$4 sm:$0xff]  }
 0x396   :  { %2892 = vmatpush1.bf16.msra.mxu1 %v7011_v33  ;;  %2811 = vmatprep.subr.bf16.mxu0 %v7018_v34  ;;  %v1256_v33 = vld [vmem:[%s11373_s4 + $0x770] sm:$0xff]  ;;  %v1253_v34 = vld [vmem:[%s11373_s4 + $0x758] sm:$0xff] }
 0x397   :  { %2893 = vmatprep.subr.bf16.mxu1 %v7020_v38  ;;  %v7075_v38 = vcombine.low %v1245_v32, %v1249_v55  ;;  %v7081_v48 = vcombine.low %v1252_v61, %v1256_v33  ;;  %v7083_v51 = vcombine.low %v1253_v34, %v1257_v35  ;;  %v7902_v32 = vld [vmem:[%s11374_s5 + $0x158] ss:$28 sps:$4 sm:$0xff]   ;;  %v7907_v55 = vld [vmem:[%s11374_s5 + $0x18c] ss:$28 sps:$4 sm:$0xff]  }
 0x399   :  { %2812 = vmatpush1.bf16.msra.mxu0 %v7017_v39  ;;  %v7082_v39 = vcombine.high %v1252_v61, %v1256_v33  ;;  %v7911_v61 = vld [vmem:[%s11374_s5 + $0x1c0] ss:$28 sps:$4 sm:$0xff]   ;;  %v7916_v33 = vld [vmem:[%s11374_s5 + $0x1cc] ss:$28 sps:$4 sm:$0xff]  }
 0x39a   :  { %2894 = vmatpush1.bf16.msra.mxu1 %v7019_v41  ;;  %2813 = vmatprep.subr.bf16.mxu0 %v7026_v43  ;;  %v7084_v41 = vcombine.high %v1253_v34, %v1257_v35  ;;  %v1260_v43 = vld [vmem:[%s11373_s4 + $0x790] sm:$0xff]  ;;  %v7914_v34 = vld [vmem:[%s11374_s5 + $0x1c8] ss:$28 sps:$4 sm:$0xff]   ;;  %v7919_v35 = vld [vmem:[%s11374_s5 + $0x1fc] ss:$28 sps:$4 sm:$0xff]  }
 0x39b   :  { %2895 = vmatprep.subr.bf16.mxu1 %v7028_v45  ;;  %v1264_v45 = vld [vmem:[%s11373_s4 + $0x7b0] sm:$0xff] }
 0x39c   :  { %v7089_v1 = vcombine.low %v1260_v43, %v1264_v45 }
 0x39d   :  { %2814 = vmatpush1.bf16.msra.mxu0 %v7025_v52  ;;  %v7090_v52 = vcombine.high %v1260_v43, %v1264_v45  ;;  %v7923_v43 = vld [vmem:[%s11374_s5 + $0x230] ss:$28 sps:$4 sm:$0xff]   ;;  %v7928_v45 = vld [vmem:[%s11374_s5 + $0x23c] ss:$28 sps:$4 sm:$0xff]  }
 0x39e   :  { %2896 = vmatpush1.bf16.msra.mxu1 %v7027_v53  ;;  %2815 = vmatprep.subr.bf16.mxu0 %v7034_v54  ;;  %v7092_v53 = vcombine.high %v1261_v46, %v1265_v47  ;;  %v1268_v54 = vld [vmem:[%s11373_s4 + $0x7d0] sm:$0xff]  ;;  %v7931_v47 = vld [vmem:[%s11374_s5 + $0x26c] ss:$28 sps:$4 sm:$0xff]  }
 0x39f   :  { %2897 = vmatprep.subr.bf16.mxu1 %v7036_v58  ;;  %v1272_v58 = vld [vmem:[%s11373_s4 + $0x7f0] sm:$0xff] }
 0x3a0   :  { %v7926_v46 = vld [vmem:[%s11374_s5 + $0x238] ss:$28 sps:$4 sm:$0xff]  }
 0x3a1   :  { %2816 = vmatpush1.bf16.msra.mxu0 %v7033_v7  ;;  %v7098_v7 = vcombine.high %v1268_v54, %v1272_v58 }
 0x3a2   :  { %2898 = vmatpush1.bf16.msra.mxu1 %v7035_v17  ;;  %2817 = vmatprep.subr.bf16.mxu0 %v7042_v3  ;;  %v7100_v17 = vcombine.high %v1269_v62, %v1273_v0  ;;  %v7097_v3 = vcombine.low %v1268_v54, %v1272_v58  ;;  %v7935_v54 = vld [vmem:[%s11374_s5 + $0x2a0] ss:$28 sps:$4 sm:$0xff]   ;;  %v7940_v58 = vld [vmem:[%s11374_s5 + $0x2ac] ss:$28 sps:$4 sm:$0xff]  }
 0x3a3   :  { %2899 = vmatprep.subr.bf16.mxu1 %v7044_v8  ;;  %v7099_v8 = vcombine.low %v1269_v62, %v1273_v0  ;;  %v7938_v62 = vld [vmem:[%s11374_s5 + $0x2a8] ss:$28 sps:$4 sm:$0xff]   ;;  %v7943_v0 = vld [vmem:[%s11374_s5 + $0x2dc] ss:$28 sps:$4 sm:$0xff]  }
 0x3a5   :  { %2818 = vmatpush1.bf16.msra.mxu0 %v7041_v13  ;;  %v7871_v13 = vld [vmem:[%s11374_s5 + $0x3c] ss:$28 sps:$4 sm:$0xff]  }
 0x3a6   :  { %2900 = vmatpush1.bf16.msra.mxu1 %v7043_v15  ;;  %2819 = vmatprep.subr.bf16.mxu0 %v7050_v16  ;;  %v7874_v15 = vld [vmem:[%s11374_s5 + $0x44] ss:$28 sps:$4 sm:$0xff]   ;;  %v7869_v16 = vld [vmem:[%s11374_s5 + $0x38] ss:$28 sps:$4 sm:$0xff]  }
 0x3a7   :  { %2901 = vmatprep.subr.bf16.mxu1 %v7052_v2  ;;  %v7872_v2 = vld [vmem:[%s11374_s5 + $0x40] ss:$28 sps:$4 sm:$0xff]  }
 0x3a9   :  { %2820 = vmatpush1.bf16.msra.mxu0 %v7049_v18  ;;  %v7886_v18 = vld [vmem:[%s11374_s5 + $0xb4] ss:$28 sps:$4 sm:$0xff]  }
 0x3aa   :  { %2902 = vmatpush1.bf16.msra.mxu1 %v7051_v20  ;;  %2821 = vmatprep.subr.bf16.mxu0 %v7058_v22  ;;  %v7881_v20 = vld [vmem:[%s11374_s5 + $0xa8] ss:$28 sps:$4 sm:$0xff]   ;;  %v7884_v22 = vld [vmem:[%s11374_s5 + $0xb0] ss:$28 sps:$4 sm:$0xff]  }
 0x3ab   :  { %2903 = vmatprep.subr.bf16.mxu1 %v7060_v23  ;;  %v7889_v23 = vld [vmem:[%s11374_s5 + $0xe4] ss:$28 sps:$4 sm:$0xff]  }
 0x3ad   :  { %2822 = vmatpush1.bf16.msra.mxu0 %v7057_v27  ;;  %v7893_v27 = vld [vmem:[%s11374_s5 + $0x118] ss:$28 sps:$4 sm:$0xff]  }
 0x3ae   :  { %2904 = vmatpush1.bf16.msra.mxu1 %v7059_v28  ;;  %2823 = vmatprep.subr.bf16.mxu0 %v7066_v29  ;;  %v7898_v28 = vld [vmem:[%s11374_s5 + $0x124] ss:$28 sps:$4 sm:$0xff]  }
 0x3af   :  { %2905 = vmatprep.subr.bf16.mxu1 %v7068_v30  ;;  %v7896_v29 = vld [vmem:[%s11374_s5 + $0x120] ss:$28 sps:$4 sm:$0xff]   ;;  %v7901_v30 = vld [vmem:[%s11374_s5 + $0x154] ss:$28 sps:$4 sm:$0xff]  }
 0x3b1   :  { %2824 = vmatpush1.bf16.msra.mxu0 %v7065_v56  ;;  %v7905_v56 = vld [vmem:[%s11374_s5 + $0x188] ss:$28 sps:$4 sm:$0xff]  }
 0x3b2   :  { %2906 = vmatpush1.bf16.msra.mxu1 %v7067_v57  ;;  %2825 = vmatprep.subr.bf16.mxu0 %v7074_v59  ;;  %v7910_v57 = vld [vmem:[%s11374_s5 + $0x194] ss:$28 sps:$4 sm:$0xff]  }
 0x3b3   :  { %2907 = vmatprep.subr.bf16.mxu1 %v7076_v60  ;;  %v7908_v59 = vld [vmem:[%s11374_s5 + $0x190] ss:$28 sps:$4 sm:$0xff]   ;;  %v7913_v60 = vld [vmem:[%s11374_s5 + $0x1c4] ss:$28 sps:$4 sm:$0xff]  }
 0x3b5   :  { %2826 = vmatpush1.bf16.msra.mxu0 %v7073_v36  ;;  %v7917_v36 = vld [vmem:[%s11374_s5 + $0x1f8] ss:$28 sps:$4 sm:$0xff]  }
 0x3b6   :  { %2908 = vmatpush1.bf16.msra.mxu1 %v7075_v38  ;;  %2827 = vmatprep.subr.bf16.mxu0 %v7082_v39  ;;  %v7922_v38 = vld [vmem:[%s11374_s5 + $0x204] ss:$28 sps:$4 sm:$0xff]  }
 0x3b7   :  { %2909 = vmatprep.subr.bf16.mxu1 %v7084_v41  ;;  %v7920_v39 = vld [vmem:[%s11374_s5 + $0x200] ss:$28 sps:$4 sm:$0xff]   ;;  %v7925_v41 = vld [vmem:[%s11374_s5 + $0x234] ss:$28 sps:$4 sm:$0xff]  }
 0x3b9   :  { %2828 = vmatpush1.bf16.msra.mxu0 %v7081_v48  ;;  %v7929_v48 = vld [vmem:[%s11374_s5 + $0x268] ss:$28 sps:$4 sm:$0xff]  }
 0x3ba   :  { %2910 = vmatpush1.bf16.msra.mxu1 %v7083_v51  ;;  %2829 = vmatprep.subr.bf16.mxu0 %v7090_v52  ;;  %v7934_v51 = vld [vmem:[%s11374_s5 + $0x274] ss:$28 sps:$4 sm:$0xff]  }
 0x3bb   :  { %2911 = vmatprep.subr.bf16.mxu1 %v7092_v53  ;;  %v7932_v52 = vld [vmem:[%s11374_s5 + $0x270] ss:$28 sps:$4 sm:$0xff]   ;;  %v7937_v53 = vld [vmem:[%s11374_s5 + $0x2a4] ss:$28 sps:$4 sm:$0xff]  }
 0x3bd   :  { %2830 = vmatpush1.bf16.msra.mxu0 %v7089_v1  ;;  %v7941_v1 = vld [vmem:[%s11374_s5 + $0x2d8] ss:$28 sps:$4 sm:$0xff]  }
 0x3be   :  { %2912 = vmatpush1.bf16.msra.mxu1 %v7091_v63  ;;  %2831 = vmatprep.subr.bf16.mxu0 %v7098_v7  ;;  %v7946_v63 = vld [vmem:[%s11374_s5 + $0x2e4] ss:$28 sps:$4 sm:$0xff]  }
 0x3bf   :  { %2913 = vmatprep.subr.bf16.mxu1 %v7100_v17  ;;  %v7944_v7 = vld [vmem:[%s11374_s5 + $0x2e0] ss:$28 sps:$4 sm:$0xff]   ;;  %v7949_v17 = vld [vmem:[%s11374_s5 + $0x314] ss:$28 sps:$4 sm:$0xff]  }
 0x3c1   :  { %2832 = vmatpush1.bf16.msra.mxu0 %v7097_v3  ;;  %v7947_v3 = vld [vmem:[%s11374_s5 + $0x310] ss:$28 sps:$4 sm:$0xff]  }
 0x3c2   :  { %2914 = vmatpush1.bf16.msra.mxu1 %v7099_v8  ;;  %6085 = vmatprep.subr.bf16.mxu0 %v7865_v9  ;;  %v7952_v8 = vld [vmem:[%s11374_s5 + $0x31c] ss:$28 sps:$4 sm:$0xff]  }
 0x3c3   :  { %6249 = vmatprep.subr.bf16.mxu1 %v7868_v10  ;;  %v7950_v9 = vld [vmem:[%s11374_s5 + $0x318] ss:$28 sps:$4 sm:$0xff]   ;;  %v7955_v10 = vld [vmem:[%s11374_s5 + $0x34c] ss:$28 sps:$4 sm:$0xff]  }
 0x3c4   :  { %2834 = vmatmul.mubr.bf16.vlgmr.msra.gmra.mrb[8].mxu0 %v9396_v44 }
 0x3c5   :  { %2916 = vmatmul.mubr.bf16.vlgmr.msra.gmra.mrb[16].mxu1 %v9396_v44  ;;  %6086 = vmatpush1.bf16.msra.mxu0 %v7863_v11  ;;  %v7883_v44 = vld [vmem:[%s11374_s5 + $0xac] ss:$28 sps:$4 sm:$0xff]  }
 0x3c6   :  { %6250 = vmatpush1.bf16.msra.mxu1 %v7866_v12  ;;  %6087 = vmatprep.subr.bf16.mxu0 %v7871_v13  ;;  %v7953_v11 = vld [vmem:[%s11374_s5 + $0x348] ss:$28 sps:$4 sm:$0xff]   ;;  %v7958_v12 = vld [vmem:[%s11374_s5 + $0x354] ss:$28 sps:$4 sm:$0xff]  }
 0x3c7   :  { %6251 = vmatprep.subr.bf16.mxu1 %v7874_v15  ;;  %v7956_v13 = vld [vmem:[%s11374_s5 + $0x350] ss:$28 sps:$4 sm:$0xff]   ;;  %v7961_v15 = vld [vmem:[%s11374_s5 + $0x384] ss:$28 sps:$4 sm:$0xff]  }
 0x3c9   :  { %6088 = vmatpush1.bf16.msra.mxu0 %v7869_v16  ;;  %v7964_v16 = vld [vmem:[%s11374_s5 + $0x38c] ss:$28 sps:$4 sm:$0xff]  }
 0x3ca   :  { %6252 = vmatpush1.bf16.msra.mxu1 %v7872_v2  ;;  %6089 = vmatprep.subr.bf16.mxu0 %v7877_v49  ;;  %v9971_v2 = vld [vmem:[%s11372_s6 + $0x13] sm:$0xff] }
 0x3cb   :  { %6253 = vmatprep.subr.bf16.mxu1 %v7880_v6  ;;  %v1279_v49 = vrot.slane %v9971_v2, %v8788_v19  ;;  %v1291_v6 = vrot.slane %v9971_v2, %v9200_v40 }
 0x3cd   :  { %6090 = vmatpush1.bf16.msra.mxu0 %v7875_v4  ;;  %v1283_v4 = vrot.slane %v9971_v2, %v8794_v21 }
 0x3ce   :  { %6254 = vmatpush1.bf16.msra.mxu1 %v7878_v5  ;;  %6091 = vmatprep.subr.bf16.mxu0 %v7883_v44 }
 0x3cf   :  { %6255 = vmatprep.subr.bf16.mxu1 %v7886_v18 }
 0x3d1   :  { %6092 = vmatpush1.bf16.msra.mxu0 %v7881_v20 }
 0x3d2   :  { %6256 = vmatpush1.bf16.msra.mxu1 %v7884_v22  ;;  %6093 = vmatprep.subr.bf16.mxu0 %v7889_v23 }
 0x3d3   :  { %6257 = vmatprep.subr.bf16.mxu1 %v7892_v25 }
 0x3d5   :  { %6094 = vmatpush1.bf16.msra.mxu0 %v7887_v24 }
 0x3d6   :  { %6258 = vmatpush1.bf16.msra.mxu1 %v7890_v26  ;;  %6095 = vmatprep.subr.bf16.mxu0 %v7895_v42 }
 0x3d7   :  { %6259 = vmatprep.subr.bf16.mxu1 %v7898_v28 }
 0x3d9   :  { %6096 = vmatpush1.bf16.msra.mxu0 %v7893_v27 }
 0x3da   :  { %6260 = vmatpush1.bf16.msra.mxu1 %v7896_v29  ;;  %6097 = vmatprep.subr.bf16.mxu0 %v7901_v30 }
 0x3db   :  { %6261 = vmatprep.subr.bf16.mxu1 %v7904_v50 }
 0x3dd   :  { %6098 = vmatpush1.bf16.msra.mxu0 %v7899_v31 }
 0x3de   :  { %6262 = vmatpush1.bf16.msra.mxu1 %v7902_v32  ;;  %6099 = vmatprep.subr.bf16.mxu0 %v7907_v55 }
 0x3df   :  { %6263 = vmatprep.subr.bf16.mxu1 %v7910_v57 }
 0x3e1   :  { %6100 = vmatpush1.bf16.msra.mxu0 %v7905_v56 }
 0x3e2   :  { %6264 = vmatpush1.bf16.msra.mxu1 %v7908_v59  ;;  %6101 = vmatprep.subr.bf16.mxu0 %v7913_v60 }
 0x3e3   :  { %6265 = vmatprep.subr.bf16.mxu1 %v7916_v33 }
 0x3e5   :  { %6102 = vmatpush1.bf16.msra.mxu0 %v7911_v61 }
 0x3e6   :  { %6266 = vmatpush1.bf16.msra.mxu1 %v7914_v34  ;;  %6103 = vmatprep.subr.bf16.mxu0 %v7919_v35 }
 0x3e7   :  { %6267 = vmatprep.subr.bf16.mxu1 %v7922_v38 }
 0x3e9   :  { %6104 = vmatpush1.bf16.msra.mxu0 %v7917_v36 }
 0x3ea   :  { %6268 = vmatpush1.bf16.msra.mxu1 %v7920_v39  ;;  %6105 = vmatprep.subr.bf16.mxu0 %v7925_v41 }
 0x3eb   :  { %6269 = vmatprep.subr.bf16.mxu1 %v7928_v45 }
 0x3ed   :  { %6106 = vmatpush1.bf16.msra.mxu0 %v7923_v43 }
 0x3ee   :  { %6270 = vmatpush1.bf16.msra.mxu1 %v7926_v46  ;;  %6107 = vmatprep.subr.bf16.mxu0 %v7931_v47 }
 0x3ef   :  { %6271 = vmatprep.subr.bf16.mxu1 %v7934_v51 }
 0x3f1   :  { %6108 = vmatpush1.bf16.msra.mxu0 %v7929_v48 }
 0x3f2   :  { %6272 = vmatpush1.bf16.msra.mxu1 %v7932_v52  ;;  %6109 = vmatprep.subr.bf16.mxu0 %v7937_v53 }
 0x3f3   :  { %6273 = vmatprep.subr.bf16.mxu1 %v7940_v58 }
 0x3f5   :  { %6110 = vmatpush1.bf16.msra.mxu0 %v7935_v54 }
 0x3f6   :  { %6274 = vmatpush1.bf16.msra.mxu1 %v7938_v62  ;;  %6111 = vmatprep.subr.bf16.mxu0 %v7943_v0 }
 0x3f7   :  { %6275 = vmatprep.subr.bf16.mxu1 %v7946_v63 }
 0x3f9   :  { %6112 = vmatpush1.bf16.msra.mxu0 %v7941_v1 }
 0x3fa   :  { %6276 = vmatpush1.bf16.msra.mxu1 %v7944_v7  ;;  %6113 = vmatprep.subr.bf16.mxu0 %v7949_v17 }
 0x3fb   :  { %6277 = vmatprep.subr.bf16.mxu1 %v7952_v8 }
 0x3fd   :  { %6114 = vmatpush1.bf16.msra.mxu0 %v7947_v3 }
 0x3fe   :  { %6278 = vmatpush1.bf16.msra.mxu1 %v7950_v9  ;;  %6115 = vmatprep.subr.bf16.mxu0 %v7955_v10 }
 0x3ff   :  { %6279 = vmatprep.subr.bf16.mxu1 %v7958_v12 }
 0x401   :  { %6116 = vmatpush1.bf16.msra.mxu0 %v7953_v11 }
 0x402   :  { %6280 = vmatpush1.bf16.msra.mxu1 %v7956_v13  ;;  %6126 = vmatprep.subr.bf16.mxu0 %v7961_v15 }
 0x403   :  { %6290 = vmatprep.subr.bf16.mxu1 %v7964_v16 }
 0x417   :  { %v2671_v5 = vpop.f32.mrb[4].mxu0  ;;  %v9979_v44 = vpop.f32.mrb[12].mxu1 }
 0x418   :  { %v9981_v18 = vadd.f32 %v2671_v5, %v1279_v49  ;;  %v2673_v20 = vpop.f32.mrb[5].mxu0  ;;  %v2755_v22 = vpop.f32.mrb[13].mxu1 }
 0x419   :  { %v9983_v23 = vadd.f32 %v2673_v20, %v1283_v4  ;;  %v9985_v24 = vadd.f32 %v2755_v22, %v1291_v6  ;;  %v2675_v25 = vpop.f32.mrb[6].mxu0  ;;  %v2757_v26 = vpop.f32.mrb[14].mxu1 }
 0x41a   :  { %v2926_v42 = vrot.slane %v9981_v18, 4  ;;  %v2982_v27 = vmul.f32 %v9981_v18, %v9981_v18  ;;  %v2676_v28 = vpop.f32.mrb[7].mxu0  ;;  %v2758_v29 = vpop.f32.mrb[15].mxu1 }
 0x41b   :  { %v2932_v30 = vrot.slane %v9983_v23, 4  ;;  %v2983_v31 = vmul.f32 %v9983_v23, %v9983_v23  ;;  %v2944_v50 = vrot.slane %v9985_v24, 4  ;;  %v2985_v32 = vmul.f32 %v9985_v24, %v9985_v24 }
 0x41c   :  { %v2927_v55 = vadd.f32 %v9981_v18, %v2926_v42  ;;  %v2990_v56 = vrot.slane %v2982_v27, 4 }
 0x41d   :  { %v2933_v57 = vadd.f32 %v9983_v23, %v2932_v30  ;;  %v2996_v59 = vrot.slane %v2983_v31, 4  ;;  %v2945_v60 = vadd.f32 %v9985_v24, %v2944_v50  ;;  %v3008_v61 = vrot.slane %v2985_v32, 4  ;;  %v10004_v50 = vld [vmem:[%s11372_s6 + $0x1b] sm:$0xff] }
 0x41e   :  { %v2928_v33 = vrot.slane %v2927_v55, 2  ;;  %v2991_v34 = vadd.f32 %v2990_v56, %v2982_v27 }
 0x41f   :  { %v2934_v35 = vrot.slane %v2933_v57, 2  ;;  %v2997_v36 = vadd.f32 %v2996_v59, %v2983_v31  ;;  %v2946_v38 = vrot.slane %v2945_v60, 2  ;;  %v3009_v39 = vadd.f32 %v3008_v61, %v2985_v32 }
 0x420   :  { %v2929_v41 = vadd.f32 %v2928_v33, %v2927_v55  ;;  %v2992_v43 = vrot.slane %v2991_v34, 2  ;;  %v1287_v31 = vrot.slane %v9971_v2, %v9197_v37  ;;  %v10012_v55 = vld [vmem:[%s11372_s6 + $0x23] sm:$0xff] }
 0x421   :  { %v2935_v45 = vadd.f32 %v2934_v35, %v2933_v57  ;;  %v2998_v46 = vrot.slane %v2997_v36, 2  ;;  %v2947_v47 = vadd.f32 %v2946_v38, %v2945_v60  ;;  %v3010_v48 = vrot.slane %v3009_v39, 2 }
 0x422   :  { %v2930_v51 = vrot.slane %v2929_v41, 1  ;;  %v2993_v52 = vadd.f32 %v2992_v43, %v2991_v34  ;;  %v10007_v32 = vadd.f32 %v9979_v44, %v1287_v31  ;;  %v3106_v57 = vrot.slane %v10004_v50, %v8788_v19  ;;  %v7977_v31 = vld [vmem:[%s11374_s5 + $0x428] ss:$28 sps:$4 sm:$0xff]  }
 0x423   :  { %v2936_v53 = vrot.slane %v2935_v45, 1  ;;  %v2999_v54 = vadd.f32 %v2998_v46, %v2997_v36  ;;  %v2948_v58 = vrot.slane %v2947_v47, 1  ;;  %v3011_v62 = vadd.f32 %v3010_v48, %v3009_v39 }
 0x424   :  { %v2931_v0 = vadd.f32 %v2930_v51, %v2929_v41  ;;  %v2994_v1 = vrot.slane %v2993_v52, 1  ;;  %v3110_v60 = vrot.slane %v10004_v50, %v8794_v21  ;;  %v3155_v61 = vrot.slane %v10012_v55, %v8788_v19 }
 0x425   :  { %v2937_v63 = vadd.f32 %v2936_v53, %v2935_v45  ;;  %v3000_v7 = vrot.slane %v2999_v54, 1  ;;  %v2949_v17 = vadd.f32 %v2948_v58, %v2947_v47  ;;  %v3012_v3 = vrot.slane %v3011_v62, 1 }
 0x426   :  { %v2974_v8 = vmul.f32 0.125, %v2931_v0  ;;  %v2995_v9 = vadd.f32 %v2994_v1, %v2993_v52  ;;  %v2938_v44 = vrot.slane %v10007_v32, 4  ;;  %v2984_v34 = vmul.f32 %v10007_v32, %v10007_v32 }
 0x427   :  { %v2975_v10 = vmul.f32 0.125, %v2937_v63  ;;  %v3001_v11 = vadd.f32 %v3000_v7, %v2999_v54  ;;  %v2977_v12 = vmul.f32 0.125, %v2949_v17  ;;  %v3013_v13 = vadd.f32 %v3012_v3, %v3011_v62 }
 0x428   :  { %v3038_v15 = vmul.f32 0.125, %v2995_v9  ;;  %v3046_v16 = vmul.f32 %v2974_v8, %v2974_v8  ;;  %v3086_v56 = vsub.f32 %v9981_v18, %v2974_v8  ;;  %v3118_v38 = vrot.slane %v10004_v50, %v9200_v40  ;;  %v7959_v8 = vld [vmem:[%s11374_s5 + $0x380] ss:$28 sps:$4 sm:$0xff]   ;;  %v7962_v9 = vld [vmem:[%s11374_s5 + $0x388] ss:$28 sps:$4 sm:$0xff]  }
 0x429   :  { %v3039_v49 = vmul.f32 0.125, %v3001_v11  ;;  %v3047_v4 = vmul.f32 %v2975_v10, %v2975_v10  ;;  %v3041_v5 = vmul.f32 0.125, %v3013_v13  ;;  %v3049_v20 = vmul.f32 %v2977_v12, %v2977_v12 }
 0x42a   :  { %v3054_v6 = vsub.f32 %v3038_v15, %v3046_v16  ;;  %v3087_v35 = vsub.f32 %v9983_v23, %v2975_v10  ;;  %v3089_v18 = vsub.f32 %v9985_v24, %v2977_v12  ;;  %v3159_v45 = vrot.slane %v10012_v55, %v8794_v21  ;;  %v7967_v15 = vld [vmem:[%s11374_s5 + $0x3bc] ss:$28 sps:$4 sm:$0xff]   ;;  %v7970_v16 = vld [vmem:[%s11374_s5 + $0x3c4] ss:$28 sps:$4 sm:$0xff]  }
 0x42b   :  { %v3055_v22 = vsub.f32 %v3039_v49, %v3047_v4  ;;  %v3057_v26 = vsub.f32 %v3041_v5, %v3049_v20  ;;  %v3167_v47 = vrot.slane %v10012_v55, %v9200_v40  ;;  %v2939_v48 = vadd.f32 %v10007_v32, %v2938_v44  ;;  %v7965_v4 = vld [vmem:[%s11374_s5 + $0x3b8] ss:$28 sps:$4 sm:$0xff]   ;;  %v7986_v44 = vld [vmem:[%s11374_s5 + $0x468] ss:$28 sps:$4 sm:$0xff]  }
 0x42c   :  { %v3062_v25 = vmax.f32 %v3054_v6, 0.0  ;;  %v3002_v51 = vrot.slane %v2984_v34, 4  ;;  %v7968_v6 = vld [vmem:[%s11374_s5 + $0x3c0] ss:$28 sps:$4 sm:$0xff]  }
 0x42d   :  { %v3063_v42 = vmax.f32 %v3055_v22, 0.0  ;;  %v3065_v28 = vmax.f32 %v3057_v26, 0.0  ;;  %v2940_v62 = vrot.slane %v2939_v48, 2  ;;  %v7973_v22 = vld [vmem:[%s11374_s5 + $0x3f4] ss:$28 sps:$4 sm:$0xff]  }
 0x42e   :  { %v3070_v27 = vadd.f32 1e-05, %v3062_v25  ;;  %v3003_v0 = vadd.f32 %v3002_v51, %v2984_v34  ;;  %v7976_v25 = vld [vmem:[%s11374_s5 + $0x3fc] ss:$28 sps:$4 sm:$0xff]   ;;  %v7971_v26 = vld [vmem:[%s11374_s5 + $0x3f0] ss:$28 sps:$4 sm:$0xff]  }
 0x42f   :  { %v3071_v29 = vadd.f32 1e-05, %v3063_v42  ;;  %v3073_v30 = vadd.f32 1e-05, %v3065_v28  ;;  %v2941_v11 = vadd.f32 %v2940_v62, %v2939_v48  ;;  %v7974_v42 = vld [vmem:[%s11374_s5 + $0x3f8] ss:$28 sps:$4 sm:$0xff]  }
 0x430   :  { %8515 = vrsqrt.f32 %v3070_v27  ;;  %v3004_v12 = vrot.slane %v3003_v0, 2  ;;  %v8003_v51 = vld [vmem:[%s11374_s5 + $0x50c] ss:$28 sps:$4 sm:$0xff]   ;;  %v8007_v62 = vld [vmem:[%s11374_s5 + $0x540] ss:$28 sps:$4 sm:$0xff]  }
 0x431   :  { %8517 = vrsqrt.f32 %v3071_v29  ;;  %v2942_v5 = vrot.slane %v2941_v11, 1  ;;  %v7979_v29 = vld [vmem:[%s11374_s5 + $0x42c] ss:$28 sps:$4 sm:$0xff]  }
 0x432   :  { %8519 = vrsqrt.f32 %v3073_v30  ;;  %v3005_v20 = vadd.f32 %v3004_v12, %v3003_v0  ;;  %v7982_v30 = vld [vmem:[%s11374_s5 + $0x434] ss:$28 sps:$4 sm:$0xff]   ;;  %v8010_v0 = vld [vmem:[%s11374_s5 + $0x548] ss:$28 sps:$4 sm:$0xff]  }
 0x433   :  { %v2943_v27 = vadd.f32 %v2942_v5, %v2941_v11  ;;  %v8022_v11 = vld [vmem:[%s11374_s5 + $0x5b8] ss:$28 sps:$4 sm:$0xff]   ;;  %v8027_v12 = vld [vmem:[%s11374_s5 + $0x5ec] ss:$28 sps:$4 sm:$0xff]  }
 0x434   :  { %v3006_v28 = vrot.slane %v3005_v20, 1  ;;  %v8028_v5 = vld [vmem:[%s11374_s5 + $0x5f0] ss:$28 sps:$4 sm:$0xff]  }
 0x43a   :  { %v8516_v59 = vpop.eup %8515 }
 0x43b   :  { %v3094_v33 = vmul.f32 %v8516_v59, %v3086_v56  ;;  %v8518_v36 = vpop.eup %8517  ;;  %v7980_v56 = vld [vmem:[%s11374_s5 + $0x430] ss:$28 sps:$4 sm:$0xff]   ;;  %v3007_v59 = vadd.f32 %v3006_v28, %v3005_v20  ;;  %v8033_v20 = vld [vmem:[%s11374_s5 + $0x624] ss:$28 sps:$4 sm:$0xff]  }
 0x43c   :  { %v8520_v39 = vpop.eup %8519  ;;  %v3095_v43 = vmul.f32 %v8518_v36, %v3087_v35  ;;  %v7991_v36 = vld [vmem:[%s11374_s5 + $0x49c] ss:$28 sps:$4 sm:$0xff]   ;;  %v8042_v28 = vld [vmem:[%s11374_s5 + $0x664] ss:$28 sps:$4 sm:$0xff]  }
 0x43d   :  { %v3143_v41 = vmul.f32 %v3106_v57, %v3094_v33  ;;  %v3097_v46 = vmul.f32 %v8520_v39, %v3089_v18  ;;  %v10087_v57 = vmul.f32 0.125, %v2943_v27  ;;  %v7983_v33 = vld [vmem:[%s11374_s5 + $0x460] ss:$28 sps:$4 sm:$0xff]   ;;  %v3040_v34 = vmul.f32 0.125, %v3007_v59 }
 0x43e   :  { %v3144_v23 = vmul.f32 %v3110_v60, %v3095_v43  ;;  %v7985_v60 = vld [vmem:[%s11374_s5 + $0x464] ss:$28 sps:$4 sm:$0xff]   ;;  %v7997_v43 = vld [vmem:[%s11374_s5 + $0x4d4] ss:$28 sps:$4 sm:$0xff]   ;;  %v8039_v27 = vld [vmem:[%s11374_s5 + $0x65c] ss:$28 sps:$4 sm:$0xff]  }
 0x43f   :  { %v3192_v52 = vadd.f32 %v3155_v61, %v3143_v41  ;;  %v3146_v53 = vmul.f32 %v3118_v38, %v3097_v46  ;;  %v7988_v61 = vld [vmem:[%s11374_s5 + $0x46c] ss:$28 sps:$4 sm:$0xff]   ;;  %v3048_v35 = vmul.f32 %v10087_v57, %v10087_v57  ;;  %v7994_v18 = vld [vmem:[%s11374_s5 + $0x4a4] ss:$28 sps:$4 sm:$0xff]   ;;  %v7989_v38 = vld [vmem:[%s11374_s5 + $0x498] ss:$28 sps:$4 sm:$0xff]  }
 0x440   :  { %v3193_v24 = vadd.f32 %v3159_v45, %v3144_v23  ;;  %v7992_v39 = vld [vmem:[%s11374_s5 + $0x4a0] ss:$28 sps:$4 sm:$0xff]   ;;  %v7995_v46 = vld [vmem:[%s11374_s5 + $0x4d0] ss:$28 sps:$4 sm:$0xff]  }
 0x441   :  { %vm3200_vm8 = vcmp.gt.f32.partialorder %v3192_v52, 0.0  ;;  %v3208_v54 = vmul.f32 0.2, %v3192_v52  ;;  %v3195_v58 = vadd.f32 %v3167_v47, %v3146_v53  ;;  %v3056_v41 = vsub.f32 %v3040_v34, %v3048_v35  ;;  %v8000_v45 = vld [vmem:[%s11374_s5 + $0x4dc] ss:$28 sps:$4 sm:$0xff]  }
 0x442   :  { %vm3201_vm9 = vcmp.gt.f32.partialorder %v3193_v24, 0.0  ;;  %v3209_v1 = vmul.f32 0.2, %v3193_v24  ;;  %v7998_v47 = vld [vmem:[%s11374_s5 + $0x4d8] ss:$28 sps:$4 sm:$0xff]  }
 0x443   :  { %v3216_v63 = vsel %vm3200_vm8, %v3192_v52, %v3208_v54  ;;  %vm3203_vm10 = vcmp.gt.f32.partialorder %v3195_v58, 0.0  ;;  %v3211_v7 = vmul.f32 0.2, %v3195_v58  ;;  %v3064_v48 = vmax.f32 %v3056_v41, 0.0  ;;  %v8006_v23 = vld [vmem:[%s11374_s5 + $0x514] ss:$28 sps:$4 sm:$0xff]  }
 0x444   :  { %v3217_v17 = vsel %vm3201_vm9, %v3193_v24, %v3209_v1  ;;  %v10041_v13 = vpack.c.bf16 %v3216_v63, %v3216_v63  ;;  %v8001_v52 = vld [vmem:[%s11374_s5 + $0x508] ss:$28 sps:$4 sm:$0xff]   ;;  %v8004_v53 = vld [vmem:[%s11374_s5 + $0x510] ss:$28 sps:$4 sm:$0xff]   ;;  %v8015_v1 = vld [vmem:[%s11374_s5 + $0x57c] ss:$28 sps:$4 sm:$0xff]  }
 0x445   :  { %v10033_v3 = vpack.c.bf16 %v3217_v17, %v3217_v17  ;;  %v3219_v10 = vsel %vm3203_vm10, %v3195_v58, %v3211_v7  ;;  %v3072_v24 = vadd.f32 1e-05, %v3064_v48  ;;  %v8009_v54 = vld [vmem:[%s11374_s5 + $0x544] ss:$28 sps:$4 sm:$0xff]   ;;  %v8012_v58 = vld [vmem:[%s11374_s5 + $0x54c] ss:$28 sps:$4 sm:$0xff]  }
 0x446   :  { %v10053_v49 = vpack.c.bf16 %v3219_v10, %v3219_v10  ;;  %v8018_v63 = vld [vmem:[%s11374_s5 + $0x584] ss:$28 sps:$4 sm:$0xff]   ;;  %v8013_v7 = vld [vmem:[%s11374_s5 + $0x578] ss:$28 sps:$4 sm:$0xff]   ;;  %v8019_v10 = vld [vmem:[%s11374_s5 + $0x5b0] ss:$28 sps:$4 sm:$0xff]  }
 0x447   :  { %6117 = vmatprep.mubr.bf16.mxu0 %v10033_v3  ;;  %6281 = vmatprep.mubr.bf16.mxu1 %v10033_v3  ;;  %8521 = vrsqrt.f32 %v3072_v24  ;;  %v8016_v17 = vld [vmem:[%s11374_s5 + $0x580] ss:$28 sps:$4 sm:$0xff]   ;;  %v8054_v34 = vld [vmem:[%s11374_s5 + $0x6d4] ss:$28 sps:$4 sm:$0xff]  }
 0x448   :  { %6118 = vmatmul.mubr.bf16.vlgmr.msra.gmra.mrb[12].mxu0 %v10041_v13  ;;  %6282 = vmatmul.mubr.bf16.vlgmr.msra.gmra.mrb[20].mxu1 %v10041_v13  ;;  %v8048_v59 = vld [vmem:[%s11374_s5 + $0x69c] ss:$28 sps:$4 sm:$0xff]   ;;  %v8066_v48 = vld [vmem:[%s11374_s5 + $0x744] ss:$28 sps:$4 sm:$0xff]   ;;  %v8067_v24 = vld [vmem:[%s11374_s5 + $0x770] ss:$28 sps:$4 sm:$0xff]  }
 0x449   :  { %6127 = vmatpush1.bf16.msra.mxu0 %v7959_v8  ;;  %6291 = vmatpush1.bf16.msra.mxu1 %v7962_v9  ;;  %v8021_v8 = vld [vmem:[%s11374_s5 + $0x5b4] ss:$28 sps:$4 sm:$0xff]   ;;  %v8024_v9 = vld [vmem:[%s11374_s5 + $0x5bc] ss:$28 sps:$4 sm:$0xff]  }
 0x44a   :  { %6158 = vmatprep.mubr.bf16.mxu0 %v10053_v49  ;;  %6322 = vmatprep.mubr.bf16.mxu1 %v10053_v49 }
 0x44b   :  { %6128 = vmatprep.subr.bf16.mxu0 %v7967_v15  ;;  %6292 = vmatprep.subr.bf16.mxu1 %v7970_v16  ;;  %v8030_v15 = vld [vmem:[%s11374_s5 + $0x5f4] ss:$28 sps:$4 sm:$0xff]  }
 0x44d   :  { %6129 = vmatpush1.bf16.msra.mxu0 %v7965_v4  ;;  %6293 = vmatpush1.bf16.msra.mxu1 %v7968_v6  ;;  %v3088_v4 = vsub.f32 %v10007_v32, %v10087_v57  ;;  %v8025_v6 = vld [vmem:[%s11374_s5 + $0x5e8] ss:$28 sps:$4 sm:$0xff]   ;;  %v8045_v57 = vld [vmem:[%s11374_s5 + $0x694] ss:$28 sps:$4 sm:$0xff]  }
 0x44e   :  { %6130 = vmatprep.subr.bf16.mxu0 %v7973_v22  ;;  %6294 = vmatprep.subr.bf16.mxu1 %v7976_v25  ;;  %v8036_v32 = vld [vmem:[%s11374_s5 + $0x62c] ss:$28 sps:$4 sm:$0xff]   ;;  %v3114_v25 = vrot.slane %v10004_v50, %v9197_v37 }
 0x451   :  { %6131 = vmatpush1.bf16.msra.mxu0 %v7971_v26  ;;  %6295 = vmatpush1.bf16.msra.mxu1 %v7974_v42  ;;  %v8522_v16 = vpop.eup %8521  ;;  %v8031_v26 = vld [vmem:[%s11374_s5 + $0x620] ss:$28 sps:$4 sm:$0xff]   ;;  %v8034_v42 = vld [vmem:[%s11374_s5 + $0x628] ss:$28 sps:$4 sm:$0xff]  }
 0x452   :  { %6132 = vmatprep.subr.bf16.mxu0 %v7979_v29  ;;  %6296 = vmatprep.subr.bf16.mxu1 %v7982_v30  ;;  %v3096_v22 = vmul.f32 %v8522_v16, %v3088_v4  ;;  %v3163_v30 = vrot.slane %v10012_v55, %v9197_v37 }
 0x454   :  { %v3145_v29 = vmul.f32 %v3114_v25, %v3096_v22 }
 0x455   :  { %6133 = vmatpush1.bf16.msra.mxu0 %v7977_v31  ;;  %6297 = vmatpush1.bf16.msra.mxu1 %v7980_v56  ;;  %v8037_v31 = vld [vmem:[%s11374_s5 + $0x658] ss:$28 sps:$4 sm:$0xff]   ;;  %v8040_v56 = vld [vmem:[%s11374_s5 + $0x660] ss:$28 sps:$4 sm:$0xff]  }
 0x456   :  { %6134 = vmatprep.subr.bf16.mxu0 %v7985_v60  ;;  %6298 = vmatprep.subr.bf16.mxu1 %v7988_v61  ;;  %v3194_v60 = vadd.f32 %v3163_v30, %v3145_v29  ;;  %v8043_v61 = vld [vmem:[%s11374_s5 + $0x690] ss:$28 sps:$4 sm:$0xff]  }
 0x458   :  { %v3210_v35 = vmul.f32 0.2, %v3194_v60  ;;  %vm3202_vm11 = vcmp.gt.f32.partialorder %v3194_v60, 0.0 }
 0x459   :  { %6135 = vmatpush1.bf16.msra.mxu0 %v7983_v33  ;;  %6299 = vmatpush1.bf16.msra.mxu1 %v7986_v44  ;;  %v8046_v33 = vld [vmem:[%s11374_s5 + $0x698] ss:$28 sps:$4 sm:$0xff]   ;;  %v8051_v44 = vld [vmem:[%s11374_s5 + $0x6cc] ss:$28 sps:$4 sm:$0xff]  }
 0x45a   :  { %6136 = vmatprep.subr.bf16.mxu0 %v7991_v36  ;;  %6300 = vmatprep.subr.bf16.mxu1 %v7994_v18  ;;  %v8049_v36 = vld [vmem:[%s11374_s5 + $0x6c8] ss:$28 sps:$4 sm:$0xff]   ;;  %v8052_v18 = vld [vmem:[%s11374_s5 + $0x6d0] ss:$28 sps:$4 sm:$0xff]   ;;  %v3218_v41 = vsel %vm3202_vm11, %v3194_v60, %v3210_v35 }
 0x45d   :  { %6137 = vmatpush1.bf16.msra.mxu0 %v7989_v38  ;;  %6301 = vmatpush1.bf16.msra.mxu1 %v7992_v39  ;;  %v8057_v38 = vld [vmem:[%s11374_s5 + $0x704] ss:$28 sps:$4 sm:$0xff]   ;;  %v8060_v39 = vld [vmem:[%s11374_s5 + $0x70c] ss:$28 sps:$4 sm:$0xff]  }
 0x45e   :  { %6138 = vmatprep.subr.bf16.mxu0 %v7997_v43  ;;  %6302 = vmatprep.subr.bf16.mxu1 %v8000_v45  ;;  %v8055_v43 = vld [vmem:[%s11374_s5 + $0x700] ss:$28 sps:$4 sm:$0xff]   ;;  %v8058_v45 = vld [vmem:[%s11374_s5 + $0x708] ss:$28 sps:$4 sm:$0xff]  }
 0x461   :  { %6139 = vmatpush1.bf16.msra.mxu0 %v7995_v46  ;;  %6303 = vmatpush1.bf16.msra.mxu1 %v7998_v47  ;;  %v10253_v46 = vpack.c.bf16 %v3218_v41, %v3218_v41  ;;  %v8063_v47 = vld [vmem:[%s11374_s5 + $0x73c] ss:$28 sps:$4 sm:$0xff]  }
 0x462   :  { %6140 = vmatprep.subr.bf16.mxu0 %v8003_v51  ;;  %6304 = vmatprep.subr.bf16.mxu1 %v8006_v23  ;;  %v8061_v51 = vld [vmem:[%s11374_s5 + $0x738] ss:$28 sps:$4 sm:$0xff]   ;;  %v8064_v23 = vld [vmem:[%s11374_s5 + $0x740] ss:$28 sps:$4 sm:$0xff]  }
 0x465   :  { %6141 = vmatpush1.bf16.msra.mxu0 %v8001_v52  ;;  %6305 = vmatpush1.bf16.msra.mxu1 %v8004_v53  ;;  %v8069_v52 = vld [vmem:[%s11374_s5 + $0x774] ss:$28 sps:$4 sm:$0xff]   ;;  %v8072_v53 = vld [vmem:[%s11374_s5 + $0x77c] ss:$28 sps:$4 sm:$0xff]  }
 0x466   :  { %6142 = vmatprep.subr.bf16.mxu0 %v8009_v54  ;;  %6306 = vmatprep.subr.bf16.mxu1 %v8012_v58  ;;  %v8070_v54 = vld [vmem:[%s11374_s5 + $0x778] ss:$28 sps:$4 sm:$0xff]   ;;  %v8075_v58 = vld [vmem:[%s11374_s5 + $0x7ac] ss:$28 sps:$4 sm:$0xff]  }
 0x469   :  { %6143 = vmatpush1.bf16.msra.mxu0 %v8007_v62  ;;  %6307 = vmatpush1.bf16.msra.mxu1 %v8010_v0  ;;  %v8078_v62 = vld [vmem:[%s11374_s5 + $0x7b4] ss:$28 sps:$4 sm:$0xff]   ;;  %v10288_v0 = vsub.s32 4, %v8779_v14 }
 0x46a   :  { %6144 = vmatprep.subr.bf16.mxu0 %v8015_v1  ;;  %6308 = vmatprep.subr.bf16.mxu1 %v8018_v63  ;;  %v10291_v1 = vsub.s32 5, %v8779_v14  ;;  %v8073_v63 = vld [vmem:[%s11374_s5 + $0x7a8] ss:$28 sps:$4 sm:$0xff]  }
 0x46d   :  { %6145 = vmatpush1.bf16.msra.mxu0 %v8013_v7  ;;  %6309 = vmatpush1.bf16.msra.mxu1 %v8016_v17  ;;  %v8076_v7 = vld [vmem:[%s11374_s5 + $0x7b0] ss:$28 sps:$4 sm:$0xff]   ;;  %v10300_v17 = vsub.s32 7, %v8779_v14 }
 0x46e   :  { %6146 = vmatprep.subr.bf16.mxu0 %v8021_v8  ;;  %6310 = vmatprep.subr.bf16.mxu1 %v8024_v9  ;;  %v8081_v8 = vld [vmem:[%s11374_s5 + $0x7e4] ss:$28 sps:$4 sm:$0xff]   ;;  %v8084_v9 = vld [vmem:[%s11374_s5 + $0x7ec] ss:$28 sps:$4 sm:$0xff]  }
 0x46f   :  { %v1307_v16 = vrot.slane %v9971_v2, %v10300_v17 }
 0x471   :  { %6147 = vmatpush1.bf16.msra.mxu0 %v8019_v10  ;;  %6311 = vmatpush1.bf16.msra.mxu1 %v8022_v11  ;;  %v1295_v10 = vrot.slane %v9971_v2, %v10288_v0  ;;  %v1299_v11 = vrot.slane %v9971_v2, %v10291_v1 }
 0x472   :  { %6148 = vmatprep.subr.bf16.mxu0 %v8027_v12  ;;  %6312 = vmatprep.subr.bf16.mxu1 %v8030_v15  ;;  %v8079_v12 = vld [vmem:[%s11374_s5 + $0x7e0] ss:$28 sps:$4 sm:$0xff]   ;;  %v8082_v15 = vld [vmem:[%s11374_s5 + $0x7e8] ss:$28 sps:$4 sm:$0xff]  }
 0x475   :  { %6149 = vmatpush1.bf16.msra.mxu0 %v8025_v6  ;;  %6313 = vmatpush1.bf16.msra.mxu1 %v8028_v5  ;;  %v8087_v6 = vld [vmem:[%s11374_s5 + $0x81c] ss:$28 sps:$4 sm:$0xff]   ;;  %v8090_v5 = vld [vmem:[%s11374_s5 + $0x824] ss:$28 sps:$4 sm:$0xff]  }
 0x476   :  { %6150 = vmatprep.subr.bf16.mxu0 %v8033_v20  ;;  %6314 = vmatprep.subr.bf16.mxu1 %v8036_v32 }
 0x479   :  { %6151 = vmatpush1.bf16.msra.mxu0 %v8031_v26  ;;  %6315 = vmatpush1.bf16.msra.mxu1 %v8034_v42 }
 0x47a   :  { %6152 = vmatprep.subr.bf16.mxu0 %v8039_v27  ;;  %6316 = vmatprep.subr.bf16.mxu1 %v8042_v28  ;;  %v8085_v27 = vld [vmem:[%s11374_s5 + $0x818] ss:$28 sps:$4 sm:$0xff]  }
 0x47d   :  { %6153 = vmatpush1.bf16.msra.mxu0 %v8037_v31  ;;  %6317 = vmatpush1.bf16.msra.mxu1 %v8040_v56 }
 0x47e   :  { %6154 = vmatprep.subr.bf16.mxu0 %v8045_v57  ;;  %6318 = vmatprep.subr.bf16.mxu1 %v8048_v59  ;;  %v8088_v57 = vld [vmem:[%s11374_s5 + $0x820] ss:$28 sps:$4 sm:$0xff]  }
 0x481   :  { %6155 = vmatpush1.bf16.msra.mxu0 %v8043_v61  ;;  %6319 = vmatpush1.bf16.msra.mxu1 %v8046_v33  ;;  %v8093_v33 = vld [vmem:[%s11374_s5 + $0x854] ss:$28 sps:$4 sm:$0xff]  }
 0x482   :  { %6156 = vmatprep.subr.bf16.mxu0 %v8051_v44  ;;  %6320 = vmatprep.subr.bf16.mxu1 %v8054_v34  ;;  %v8096_v44 = vld [vmem:[%s11374_s5 + $0x85c] ss:$28 sps:$4 sm:$0xff]  }
 0x485   :  { %6157 = vmatpush1.bf16.msra.mxu0 %v8049_v36  ;;  %6321 = vmatpush1.bf16.msra.mxu1 %v8052_v18 }
 0x486   :  { %6167 = vmatprep.subr.bf16.mxu0 %v8057_v38  ;;  %6331 = vmatprep.subr.bf16.mxu1 %v8060_v39 }
 0x488   :  { %6159 = vmatmul.mubr.bf16.vlgmr.msra.gmra.mrb[12].mxu0 %v10253_v46  ;;  %6323 = vmatmul.mubr.bf16.vlgmr.msra.gmra.mrb[20].mxu1 %v10253_v46 }
 0x489   :  { %6168 = vmatpush1.bf16.msra.mxu0 %v8055_v43  ;;  %6332 = vmatpush1.bf16.msra.mxu1 %v8058_v45 }
 0x48a   :  { %6169 = vmatprep.subr.bf16.mxu0 %v8063_v47  ;;  %6333 = vmatprep.subr.bf16.mxu1 %v8066_v48  ;;  %v8091_v48 = vld [vmem:[%s11374_s5 + $0x850] ss:$28 sps:$4 sm:$0xff]  }
 0x48d   :  { %6170 = vmatpush1.bf16.msra.mxu0 %v8061_v51  ;;  %6334 = vmatpush1.bf16.msra.mxu1 %v8064_v23  ;;  %v8094_v51 = vld [vmem:[%s11374_s5 + $0x858] ss:$28 sps:$4 sm:$0xff]  }
 0x48e   :  { %6171 = vmatprep.subr.bf16.mxu0 %v8069_v52  ;;  %6335 = vmatprep.subr.bf16.mxu1 %v8072_v53  ;;  %v8099_v53 = vld [vmem:[%s11374_s5 + $0x88c] ss:$28 sps:$4 sm:$0xff]  }
 0x491   :  { %6172 = vmatpush1.bf16.msra.mxu0 %v8067_v24  ;;  %6336 = vmatpush1.bf16.msra.mxu1 %v8070_v54  ;;  %v8102_v24 = vld [vmem:[%s11374_s5 + $0x894] ss:$28 sps:$4 sm:$0xff]  }
 0x492   :  { %6173 = vmatprep.subr.bf16.mxu0 %v8075_v58  ;;  %6337 = vmatprep.subr.bf16.mxu1 %v8078_v62 }
 0x495   :  { %6174 = vmatpush1.bf16.msra.mxu0 %v8073_v63  ;;  %6338 = vmatpush1.bf16.msra.mxu1 %v8076_v7 }
 0x496   :  { %6175 = vmatprep.subr.bf16.mxu0 %v8081_v8  ;;  %6339 = vmatprep.subr.bf16.mxu1 %v8084_v9 }
 0x497   :  { %v2835_v4 = vpop.f32.mrb[8].mxu0 }
 0x498   :  { %v10326_v20 = vadd.f32 %v2835_v4, %v1295_v10  ;;  %v10328_v32 = vpop.f32.mrb[16].mxu1  ;;  %v2837_v22 = vpop.f32.mrb[9].mxu0 }
 0x499   :  { %v10330_v25 = vadd.f32 %v2837_v22, %v1299_v11  ;;  %v2919_v26 = vpop.f32.mrb[17].mxu1  ;;  %v2839_v42 = vpop.f32.mrb[10].mxu0  ;;  %6176 = vmatpush1.bf16.msra.mxu0 %v8079_v12  ;;  %6340 = vmatpush1.bf16.msra.mxu1 %v8082_v15  ;;  %v8097_v15 = vld [vmem:[%s11374_s5 + $0x888] ss:$28 sps:$4 sm:$0xff]  }
 0x49a   :  { %v2950_v28 = vrot.slane %v10326_v20, 4  ;;  %v2986_v29 = vmul.f32 %v10326_v20, %v10326_v20  ;;  %v10338_v30 = vadd.f32 %v2919_v26, %v1307_v16  ;;  %v2921_v31 = vpop.f32.mrb[18].mxu1  ;;  %v2840_v56 = vpop.f32.mrb[11].mxu0  ;;  %6177 = vmatprep.subr.bf16.mxu0 %v8087_v6  ;;  %6341 = vmatprep.subr.bf16.mxu1 %v8090_v5  ;;  %v8100_v16 = vld [vmem:[%s11374_s5 + $0x890] ss:$28 sps:$4 sm:$0xff]  }
 0x49b   :  { %v2956_v59 = vrot.slane %v10330_v25, 4  ;;  %v2987_v60 = vmul.f32 %v10330_v25, %v10330_v25  ;;  %v2922_v61 = vpop.f32.mrb[19].mxu1  ;;  %v8105_v5 = vld [vmem:[%s11374_s5 + $0x8c4] ss:$28 sps:$4 sm:$0xff]   ;;  %v8108_v22 = vld [vmem:[%s11374_s5 + $0x8cc] ss:$28 sps:$4 sm:$0xff]  }
 0x49c   :  { %v2951_v34 = vadd.f32 %v10326_v20, %v2950_v28  ;;  %v3014_v35 = vrot.slane %v2986_v29, 4  ;;  %v2968_v36 = vrot.slane %v10338_v30, 4  ;;  %v2989_v18 = vmul.f32 %v10338_v30, %v10338_v30  ;;  %v8103_v61 = vld [vmem:[%s11374_s5 + $0x8c0] ss:$28 sps:$4 sm:$0xff]  }
 0x49d   :  { %v2957_v38 = vadd.f32 %v10330_v25, %v2956_v59  ;;  %v3020_v39 = vrot.slane %v2987_v60, 4  ;;  %6178 = vmatpush1.bf16.msra.mxu0 %v8085_v27  ;;  %6342 = vmatpush1.bf16.msra.mxu1 %v8088_v57 }
 0x49e   :  { %v2952_v41 = vrot.slane %v2951_v34, 2  ;;  %v3015_v43 = vadd.f32 %v3014_v35, %v2986_v29  ;;  %v2969_v45 = vadd.f32 %v10338_v30, %v2968_v36  ;;  %v3032_v47 = vrot.slane %v2989_v18, 4  ;;  %6179 = vmatprep.subr.bf16.mxu0 %v8093_v33  ;;  %6343 = vmatprep.subr.bf16.mxu1 %v8096_v44  ;;  %v8111_v35 = vld [vmem:[%s11374_s5 + $0x8fc] ss:$28 sps:$4 sm:$0xff]  }
 0x49f   :  { %v2958_v23 = vrot.slane %v2957_v38, 2  ;;  %v3021_v52 = vadd.f32 %v3020_v39, %v2987_v60  ;;  %v8114_v39 = vld [vmem:[%s11374_s5 + $0x904] ss:$28 sps:$4 sm:$0xff]  }
 0x4a0   :  { %v2953_v54 = vadd.f32 %v2952_v41, %v2951_v34  ;;  %v3016_v58 = vrot.slane %v3015_v43, 2  ;;  %v2970_v62 = vrot.slane %v2969_v45, 2  ;;  %v3033_v63 = vadd.f32 %v3032_v47, %v2989_v18  ;;  %v8106_v34 = vld [vmem:[%s11374_s5 + $0x8c8] ss:$28 sps:$4 sm:$0xff]  }
 0x4a1   :  { %v2959_v7 = vadd.f32 %v2958_v23, %v2957_v38  ;;  %v3022_v8 = vrot.slane %v3021_v52, 2  ;;  %6180 = vmatpush1.bf16.msra.mxu0 %v8091_v48  ;;  %6344 = vmatpush1.bf16.msra.mxu1 %v8094_v51  ;;  %v8109_v48 = vld [vmem:[%s11374_s5 + $0x8f8] ss:$28 sps:$4 sm:$0xff]   ;;  %v8112_v23 = vld [vmem:[%s11374_s5 + $0x900] ss:$28 sps:$4 sm:$0xff]  }
 0x4a2   :  { %v2954_v9 = vrot.slane %v2953_v54, 1  ;;  %v3017_v10 = vadd.f32 %v3016_v58, %v3015_v43  ;;  %v2971_v11 = vadd.f32 %v2970_v62, %v2969_v45  ;;  %v3034_v12 = vrot.slane %v3033_v63, 2  ;;  %6181 = vmatprep.subr.bf16.mxu0 %v8099_v53  ;;  %6345 = vmatprep.subr.bf16.mxu1 %v8102_v24  ;;  %v8120_v58 = vld [vmem:[%s11374_s5 + $0x93c] ss:$28 sps:$4 sm:$0xff]  }
 0x4a3   :  { %v2960_v4 = vrot.slane %v2959_v7, 1  ;;  %v3023_v6 = vadd.f32 %v3022_v8, %v3021_v52  ;;  %v8117_v52 = vld [vmem:[%s11374_s5 + $0x934] ss:$28 sps:$4 sm:$0xff]  }
 0x4a4   :  { %v2955_v26 = vadd.f32 %v2954_v9, %v2953_v54  ;;  %v3018_v42 = vrot.slane %v3017_v10, 1  ;;  %v2972_v27 = vrot.slane %v2971_v11, 1  ;;  %v3035_v28 = vadd.f32 %v3034_v12, %v3033_v63  ;;  %v8115_v9 = vld [vmem:[%s11374_s5 + $0x930] ss:$28 sps:$4 sm:$0xff]  }
 0x4a5   :  { %v2961_v29 = vadd.f32 %v2960_v4, %v2959_v7  ;;  %v3024_v31 = vrot.slane %v3023_v6, 1  ;;  %6182 = vmatpush1.bf16.msra.mxu0 %v8097_v15  ;;  %6346 = vmatpush1.bf16.msra.mxu1 %v8100_v16  ;;  %v10419_v63 = vsub.s32 6, %v8779_v14  ;;  %v8126_v15 = vld [vmem:[%s11374_s5 + $0x974] ss:$28 sps:$4 sm:$0xff]  }
 0x4a6   :  { %v10382_v56 = vmul.f32 0.125, %v2955_v26  ;;  %v3019_v57 = vadd.f32 %v3018_v42, %v3017_v10  ;;  %v2973_v59 = vadd.f32 %v2972_v27, %v2971_v11  ;;  %v3036_v60 = vrot.slane %v3035_v28, 1  ;;  %6183 = vmatprep.subr.bf16.mxu0 %v8105_v5  ;;  %6347 = vmatprep.subr.bf16.mxu1 %v8108_v22  ;;  %v8118_v10 = vld [vmem:[%s11374_s5 + $0x938] ss:$28 sps:$4 sm:$0xff]   ;;  %v8123_v11 = vld [vmem:[%s11374_s5 + $0x96c] ss:$28 sps:$4 sm:$0xff]  }
 0x4a7   :  { %v10387_v33 = vmul.f32 0.125, %v2961_v29  ;;  %v3025_v44 = vadd.f32 %v3024_v31, %v3023_v6  ;;  %v1303_v16 = vrot.slane %v9971_v2, %v10419_v63  ;;  %v8121_v6 = vld [vmem:[%s11374_s5 + $0x968] ss:$28 sps:$4 sm:$0xff]   ;;  %v8124_v5 = vld [vmem:[%s11374_s5 + $0x970] ss:$28 sps:$4 sm:$0xff]   ;;  %v3122_v31 = vrot.slane %v10004_v50, %v10288_v0 }
 0x4a8   :  { %v3042_v36 = vmul.f32 0.125, %v3019_v57  ;;  %v3050_v18 = vmul.f32 %v10382_v56, %v10382_v56  ;;  %v10397_v38 = vmul.f32 0.125, %v2973_v59  ;;  %v3037_v47 = vadd.f32 %v3036_v60, %v3035_v28  ;;  %v8129_v22 = vld [vmem:[%s11374_s5 + $0x9a4] ss:$28 sps:$4 sm:$0xff]   ;;  %v8132_v2 = vld [vmem:[%s11374_s5 + $0x9ac] ss:$28 sps:$4 sm:$0xff]  }
 0x4a9   :  { %v3043_v41 = vmul.f32 0.125, %v3025_v44  ;;  %v3051_v45 = vmul.f32 %v10387_v33, %v10387_v33  ;;  %6184 = vmatpush1.bf16.msra.mxu0 %v8103_v61  ;;  %6348 = vmatpush1.bf16.msra.mxu1 %v8106_v34  ;;  %v10448_v26 = vadd.f32 %v10328_v32, %v1303_v16  ;;  %v8127_v42 = vld [vmem:[%s11374_s5 + $0x9a0] ss:$28 sps:$4 sm:$0xff]   ;;  %v8130_v27 = vld [vmem:[%s11374_s5 + $0x9a8] ss:$28 sps:$4 sm:$0xff]   ;;  %v3090_v29 = vsub.f32 %v10326_v20, %v10382_v56 }
 0x4aa   :  { %v3058_v43 = vsub.f32 %v3042_v36, %v3050_v18  ;;  %v3053_v51 = vmul.f32 %v10397_v38, %v10397_v38  ;;  %6185 = vmatprep.subr.bf16.mxu0 %v8111_v35  ;;  %v3045_v54 = vmul.f32 0.125, %v3037_v47  ;;  %6349 = vmatprep.subr.bf16.mxu1 %v8114_v39  ;;  %v8135_v28 = vld [vmem:[%s11374_s5 + $0x9dc] ss:$28 sps:$4 sm:$0xff]   ;;  %v8138_v32 = vld [vmem:[%s11374_s5 + $0x9e4] ss:$28 sps:$4 sm:$0xff]   ;;  %v3126_v60 = vrot.slane %v10004_v50, %v10291_v1 }
 0x4ab   :  { %v3059_v24 = vsub.f32 %v3043_v41, %v3051_v45  ;;  %v2962_v59 = vrot.slane %v10448_v26, 4  ;;  %v8133_v61 = vld [vmem:[%s11374_s5 + $0x9d8] ss:$28 sps:$4 sm:$0xff]   ;;  %v3171_v44 = vrot.slane %v10012_v55, %v10288_v0  ;;  %v2988_v20 = vmul.f32 %v10448_v26, %v10448_v26  ;;  %v8136_v35 = vld [vmem:[%s11374_s5 + $0x9e0] ss:$28 sps:$4 sm:$0xff]  }
 0x4ac   :  { %v3066_v53 = vmax.f32 %v3058_v43, 0.0  ;;  %v3061_v8 = vsub.f32 %v3045_v54, %v3053_v51  ;;  %v3091_v56 = vsub.f32 %v10330_v25, %v10387_v33  ;;  %v8141_v36 = vld [vmem:[%s11374_s5 + $0xa14] ss:$28 sps:$4 sm:$0xff]   ;;  %v3134_v39 = vrot.slane %v10004_v50, %v10300_v17  ;;  %v8144_v41 = vld [vmem:[%s11374_s5 + $0xa1c] ss:$28 sps:$4 sm:$0xff]  }
 0x4ad   :  { %v3067_v7 = vmax.f32 %v3059_v24, 0.0  ;;  %6186 = vmatpush1.bf16.msra.mxu0 %v8109_v48  ;;  %6350 = vmatpush1.bf16.msra.mxu1 %v8112_v23  ;;  %v3093_v43 = vsub.f32 %v10338_v30, %v10397_v38  ;;  %v3175_v45 = vrot.slane %v10012_v55, %v10291_v1  ;;  %v2963_v48 = vadd.f32 %v10448_v26, %v2962_v59  ;;  %v8139_v50 = vld [vmem:[%s11374_s5 + $0xa10] ss:$28 sps:$4 sm:$0xff]   ;;  %v8142_v30 = vld [vmem:[%s11374_s5 + $0xa18] ss:$28 sps:$4 sm:$0xff]  }
 0x4ae   :  { %v3074_v62 = vadd.f32 1e-05, %v3066_v53  ;;  %6187 = vmatprep.subr.bf16.mxu0 %v8117_v52  ;;  %v3069_v12 = vmax.f32 %v3061_v8, 0.0  ;;  %6351 = vmatprep.subr.bf16.mxu1 %v8120_v58  ;;  %v3183_v51 = vrot.slane %v10012_v55, %v10300_v17  ;;  %v3026_v23 = vrot.slane %v2988_v20, 4  ;;  %v8147_v38 = vld [vmem:[%s11374_s5 + $0xa4c] ss:$28 sps:$4 sm:$0xff]  }
 0x4af   :  { %v3075_v14 = vadd.f32 1e-05, %v3067_v7  ;;  %v8150_v55 = vld [vmem:[%s11374_s5 + $0xa54] ss:$28 sps:$4 sm:$0xff]   ;;  %v8145_v7 = vld [vmem:[%s11374_s5 + $0xa48] ss:$28 sps:$4 sm:$0xff]  }
 0x4b0   :  { %8523 = vrsqrt.f32 %v3074_v62  ;;  %v3077_v4 = vadd.f32 1e-05, %v3069_v12  ;;  %v2964_v62 = vrot.slane %v2963_v48, 2  ;;  %v8148_v8 = vld [vmem:[%s11374_s5 + $0xa50] ss:$28 sps:$4 sm:$0xff]  }
 0x4b1   :  { %8525 = vrsqrt.f32 %v3075_v14  ;;  %6188 = vmatpush1.bf16.msra.mxu0 %v8115_v9  ;;  %6352 = vmatpush1.bf16.msra.mxu1 %v8118_v10  ;;  %v3027_v9 = vadd.f32 %v3026_v23, %v2988_v20  ;;  %v8156_v16 = vld [vmem:[%s11374_s5 + $0xa8c] ss:$28 sps:$4 sm:$0xff]  }
 0x4b2   :  { %6189 = vmatprep.subr.bf16.mxu0 %v8123_v11  ;;  %8527 = vrsqrt.f32 %v3077_v4  ;;  %6353 = vmatprep.subr.bf16.mxu1 %v8126_v15  ;;  %v8153_v11 = vld [vmem:[%s11374_s5 + $0xa84] ss:$28 sps:$4 sm:$0xff]   ;;  %v8163_v20 = vld [vmem:[%s11374_s5 + $0xaf0] ss:$28 sps:$4 sm:$0xff]  }
 0x4b3   :  { %v8178_v23 = vld [vmem:[%s11374_s5 + $0xb68] ss:$28 sps:$4 sm:$0xff]  }
 0x4b5   :  { %6190 = vmatpush1.bf16.msra.mxu0 %v8121_v6  ;;  %6354 = vmatpush1.bf16.msra.mxu1 %v8124_v5  ;;  %v8151_v5 = vld [vmem:[%s11374_s5 + $0xa80] ss:$28 sps:$4 sm:$0xff]  }
 0x4b6   :  { %6191 = vmatprep.subr.bf16.mxu0 %v8129_v22  ;;  %6355 = vmatprep.subr.bf16.mxu1 %v8132_v2  ;;  %v2965_v22 = vadd.f32 %v2964_v62, %v2963_v48  ;;  %v3028_v2 = vrot.slane %v3027_v9, 2  ;;  %v8175_v48 = vld [vmem:[%s11374_s5 + $0xb60] ss:$28 sps:$4 sm:$0xff]   ;;  %v8190_v62 = vld [vmem:[%s11374_s5 + $0xbd8] ss:$28 sps:$4 sm:$0xff]  }
 0x4b8   :  { %v2966_v59 = vrot.slane %v2965_v22, 1 }
 0x4b9   :  { %6192 = vmatpush1.bf16.msra.mxu0 %v8127_v42  ;;  %6356 = vmatpush1.bf16.msra.mxu1 %v8130_v27  ;;  %v8154_v42 = vld [vmem:[%s11374_s5 + $0xa88] ss:$28 sps:$4 sm:$0xff]  }
 0x4ba   :  { %v8524_v57 = vpop.eup %8523  ;;  %6193 = vmatprep.subr.bf16.mxu0 %v8135_v28  ;;  %6357 = vmatprep.subr.bf16.mxu1 %v8138_v32  ;;  %v8159_v32 = vld [vmem:[%s11374_s5 + $0xabc] ss:$28 sps:$4 sm:$0xff]  }
 0x4bb   :  { %v3098_v34 = vmul.f32 %v8524_v57, %v3090_v29  ;;  %v8526_v18 = vpop.eup %8525  ;;  %v8157_v57 = vld [vmem:[%s11374_s5 + $0xab8] ss:$28 sps:$4 sm:$0xff]  }
 0x4bc   :  { %v3099_v33 = vmul.f32 %v8526_v18, %v3091_v56  ;;  %v8528_v47 = vpop.eup %8527  ;;  %v2967_v56 = vadd.f32 %v2966_v59, %v2965_v22  ;;  %v8171_v18 = vld [vmem:[%s11374_s5 + $0xb2c] ss:$28 sps:$4 sm:$0xff]   ;;  %v8205_v22 = vld [vmem:[%s11374_s5 + $0xc78] ss:$28 sps:$4 sm:$0xff]  }
 0x4bd   :  { %v3147_v25 = vmul.f32 %v3122_v31, %v3098_v34  ;;  %6194 = vmatpush1.bf16.msra.mxu0 %v8133_v61  ;;  %v3101_v53 = vmul.f32 %v8528_v47, %v3093_v43  ;;  %6358 = vmatpush1.bf16.msra.mxu1 %v8136_v35  ;;  %v8162_v31 = vld [vmem:[%s11374_s5 + $0xac4] ss:$28 sps:$4 sm:$0xff]   ;;  %v8168_v34 = vld [vmem:[%s11374_s5 + $0xafc] ss:$28 sps:$4 sm:$0xff]   ;;  %v8172_v43 = vld [vmem:[%s11374_s5 + $0xb30] ss:$28 sps:$4 sm:$0xff]  }
 0x4be   :  { %v3148_v52 = vmul.f32 %v3126_v60, %v3099_v33  ;;  %6195 = vmatprep.subr.bf16.mxu0 %v8141_v36  ;;  %6359 = vmatprep.subr.bf16.mxu1 %v8144_v41  ;;  %v3029_v60 = vadd.f32 %v3028_v2, %v3027_v9  ;;  %v8160_v61 = vld [vmem:[%s11374_s5 + $0xac0] ss:$28 sps:$4 sm:$0xff]   ;;  %v8166_v36 = vld [vmem:[%s11374_s5 + $0xaf8] ss:$28 sps:$4 sm:$0xff]   ;;  %v8169_v41 = vld [vmem:[%s11374_s5 + $0xb28] ss:$28 sps:$4 sm:$0xff]  }
 0x4bf   :  { %v3196_v24 = vadd.f32 %v3171_v44, %v3147_v25  ;;  %v3150_v17 = vmul.f32 %v3134_v39, %v3101_v53  ;;  %v8165_v44 = vld [vmem:[%s11374_s5 + $0xaf4] ss:$28 sps:$4 sm:$0xff]   ;;  %v10571_v25 = vmul.f32 0.125, %v2967_v56  ;;  %v8180_v47 = vld [vmem:[%s11374_s5 + $0xb6c] ss:$28 sps:$4 sm:$0xff]  }
 0x4c0   :  { %v3197_v54 = vadd.f32 %v3175_v45, %v3148_v52  ;;  %v3030_v35 = vrot.slane %v3029_v60, 1  ;;  %v8174_v39 = vld [vmem:[%s11374_s5 + $0xb34] ss:$28 sps:$4 sm:$0xff]   ;;  %v8177_v45 = vld [vmem:[%s11374_s5 + $0xb64] ss:$28 sps:$4 sm:$0xff]  }
 0x4c1   :  { %vm3204_vm12 = vcmp.gt.f32.partialorder %v3196_v24, 0.0  ;;  %v3212_v58 = vmul.f32 0.2, %v3196_v24  ;;  %6196 = vmatpush1.bf16.msra.mxu0 %v8139_v50  ;;  %6360 = vmatpush1.bf16.msra.mxu1 %v8142_v30  ;;  %v3199_v14 = vadd.f32 %v3183_v51, %v3150_v17  ;;  %v3052_v50 = vmul.f32 %v10571_v25, %v10571_v25  ;;  %v8183_v52 = vld [vmem:[%s11374_s5 + $0xb9c] ss:$28 sps:$4 sm:$0xff]  }
 0x4c2   :  { %6197 = vmatprep.subr.bf16.mxu0 %v8147_v38  ;;  %vm3205_vm13 = vcmp.gt.f32.partialorder %v3197_v54, 0.0  ;;  %v3213_v10 = vmul.f32 0.2, %v3197_v54  ;;  %6361 = vmatprep.subr.bf16.mxu1 %v8150_v55  ;;  %v3031_v33 = vadd.f32 %v3030_v35, %v3029_v60  ;;  %v8186_v53 = vld [vmem:[%s11374_s5 + $0xba4] ss:$28 sps:$4 sm:$0xff]  }
 0x4c3   :  { %v3220_v12 = vsel %vm3204_vm12, %v3196_v24, %v3212_v58  ;;  %vm3207_vm14 = vcmp.gt.f32.partialorder %v3199_v14, 0.0  ;;  %v3215_v4 = vmul.f32 0.2, %v3199_v14  ;;  %v8181_v30 = vld [vmem:[%s11374_s5 + $0xb98] ss:$28 sps:$4 sm:$0xff]  }
 0x4c4   :  { %v3221_v15 = vsel %vm3205_vm13, %v3197_v54, %v3213_v10  ;;  %v10528_v27 = vpack.c.bf16 %v3220_v12, %v3220_v12  ;;  %v3044_v51 = vmul.f32 0.125, %v3031_v33  ;;  %v8184_v24 = vld [vmem:[%s11374_s5 + $0xba0] ss:$28 sps:$4 sm:$0xff]   ;;  %v8189_v55 = vld [vmem:[%s11374_s5 + $0xbd4] ss:$28 sps:$4 sm:$0xff]  }
 0x4c5   :  { %6198 = vmatpush1.bf16.msra.mxu0 %v8145_v7  ;;  %v10520_v6 = vpack.c.bf16 %v3221_v15, %v3221_v15  ;;  %6362 = vmatpush1.bf16.msra.mxu1 %v8148_v8  ;;  %v3223_v28 = vsel %vm3207_vm14, %v3199_v14, %v3215_v4  ;;  %v8192_v17 = vld [vmem:[%s11374_s5 + $0xbdc] ss:$28 sps:$4 sm:$0xff]   ;;  %v8187_v54 = vld [vmem:[%s11374_s5 + $0xbd0] ss:$28 sps:$4 sm:$0xff]   ;;  %v8193_v9 = vld [vmem:[%s11374_s5 + $0xc08] ss:$28 sps:$4 sm:$0xff]  }
 0x4c6   :  { %6208 = vmatprep.subr.bf16.mxu0 %v8153_v11  ;;  %6372 = vmatprep.subr.bf16.mxu1 %v8156_v16  ;;  %v10536_v29 = vpack.c.bf16 %v3223_v28, %v3223_v28  ;;  %v3060_v38 = vsub.f32 %v3044_v51, %v3052_v50  ;;  %v8195_v7 = vld [vmem:[%s11374_s5 + $0xc0c] ss:$28 sps:$4 sm:$0xff]   ;;  %v8198_v8 = vld [vmem:[%s11374_s5 + $0xc14] ss:$28 sps:$4 sm:$0xff]   ;;  %v8201_v14 = vld [vmem:[%s11374_s5 + $0xc44] ss:$28 sps:$4 sm:$0xff]  }
 0x4c7   :  { %6199 = vmatprep.mubr.bf16.mxu0 %v10520_v6  ;;  %6363 = vmatprep.mubr.bf16.mxu1 %v10520_v6  ;;  %v8196_v11 = vld [vmem:[%s11374_s5 + $0xc10] ss:$28 sps:$4 sm:$0xff]   ;;  %v8199_v15 = vld [vmem:[%s11374_s5 + $0xc40] ss:$28 sps:$4 sm:$0xff]   ;;  %v8202_v16 = vld [vmem:[%s11374_s5 + $0xc48] ss:$28 sps:$4 sm:$0xff]  }
 0x4c8   :  { %6200 = vmatmul.mubr.bf16.vlgmr.msra.gmra.mrb[12].mxu0 %v10528_v27  ;;  %6364 = vmatmul.mubr.bf16.vlgmr.msra.gmra.mrb[20].mxu1 %v10528_v27  ;;  %v3068_v58 = vmax.f32 %v3060_v38, 0.0  ;;  %v8204_v12 = vld [vmem:[%s11374_s5 + $0xc4c] ss:$28 sps:$4 sm:$0xff]   ;;  %v8207_v4 = vld [vmem:[%s11374_s5 + $0xc7c] ss:$28 sps:$4 sm:$0xff]  }
 0x4c9   :  { %6209 = vmatpush1.bf16.msra.mxu0 %v8151_v5  ;;  %6373 = vmatpush1.bf16.msra.mxu1 %v8154_v42  ;;  %v8210_v5 = vld [vmem:[%s11374_s5 + $0xc84] ss:$28 sps:$4 sm:$0xff]   ;;  %v8213_v42 = vld [vmem:[%s11374_s5 + $0xcb4] ss:$28 sps:$4 sm:$0xff]   ;;  %v8216_v28 = vld [vmem:[%s11374_s5 + $0xcbc] ss:$28 sps:$4 sm:$0xff]  }
 0x4ca   :  { %6240 = vmatprep.mubr.bf16.mxu0 %v10536_v29  ;;  %6404 = vmatprep.mubr.bf16.mxu1 %v10536_v29  ;;  %v3076_v10 = vadd.f32 1e-05, %v3068_v58  ;;  %v8208_v2 = vld [vmem:[%s11374_s5 + $0xc80] ss:$28 sps:$4 sm:$0xff]   ;;  %v8222_v59 = vld [vmem:[%s11374_s5 + $0xcf4] ss:$28 sps:$4 sm:$0xff]  }
 0x4cb   :  { %6210 = vmatprep.subr.bf16.mxu0 %v8159_v32  ;;  %6374 = vmatprep.subr.bf16.mxu1 %v8162_v31  ;;  %v8211_v32 = vld [vmem:[%s11374_s5 + $0xcb0] ss:$28 sps:$4 sm:$0xff]   ;;  %v8214_v31 = vld [vmem:[%s11374_s5 + $0xcb8] ss:$28 sps:$4 sm:$0xff]   ;;  %v8234_v33 = vld [vmem:[%s11374_s5 + $0xd64] ss:$28 sps:$4 sm:$0xff]  }
 0x4cc   :  { %8529 = vrsqrt.f32 %v3076_v10  ;;  %v8237_v51 = vld [vmem:[%s11374_s5 + $0xd94] ss:$28 sps:$4 sm:$0xff]   ;;  %v8240_v50 = vld [vmem:[%s11374_s5 + $0xd9c] ss:$28 sps:$4 sm:$0xff]   ;;  %v8254_v10 = vld [vmem:[%s11374_s5 + $0x4c] ss:$28 sps:$4 sm:$0xff]  }
 0x4cd   :  { %6211 = vmatpush1.bf16.msra.mxu0 %v8157_v57  ;;  %6375 = vmatpush1.bf16.msra.mxu1 %v8160_v61  ;;  %v8219_v57 = vld [vmem:[%s11374_s5 + $0xcec] ss:$28 sps:$4 sm:$0xff]   ;;  %v3092_v61 = vsub.f32 %v10448_v26, %v10571_v25  ;;  %v8545_v26 = vld [vmem:[%s11372_s6 + $0x1b] sm:$0xff]  ;;  %v8246_v38 = vld [vmem:[%s11374_s5 + $0xdd4] ss:$28 sps:$4 sm:$0xff]  }
 0x4ce   :  { %6212 = vmatprep.subr.bf16.mxu0 %v8165_v44  ;;  %6376 = vmatprep.subr.bf16.mxu1 %v8168_v34  ;;  %v8217_v44 = vld [vmem:[%s11374_s5 + $0xce8] ss:$28 sps:$4 sm:$0xff]   ;;  %v8220_v34 = vld [vmem:[%s11374_s5 + $0xcf0] ss:$28 sps:$4 sm:$0xff]   ;;  %v3130_v35 = vrot.slane %v8545_v26, %v10419_v63 }
 0x4cf   :  { %v8281_v26 = vld [vmem:[%s11374_s5 + $0x168] ss:$28 sps:$4 sm:$0xff]  }
 0x4d1   :  { %6213 = vmatpush1.bf16.msra.mxu0 %v8163_v20  ;;  %6377 = vmatpush1.bf16.msra.mxu1 %v8166_v36  ;;  %v8225_v20 = vld [vmem:[%s11374_s5 + $0xd24] ss:$28 sps:$4 sm:$0xff]   ;;  %v8228_v36 = vld [vmem:[%s11374_s5 + $0xd2c] ss:$28 sps:$4 sm:$0xff]  }
 0x4d2   :  { %6214 = vmatprep.subr.bf16.mxu0 %v8171_v18  ;;  %6378 = vmatprep.subr.bf16.mxu1 %v8174_v39  ;;  %v8223_v18 = vld [vmem:[%s11374_s5 + $0xd20] ss:$28 sps:$4 sm:$0xff]   ;;  %v8226_v39 = vld [vmem:[%s11374_s5 + $0xd28] ss:$28 sps:$4 sm:$0xff]  }
 0x4d5   :  { %6215 = vmatpush1.bf16.msra.mxu0 %v8169_v41  ;;  %6379 = vmatpush1.bf16.msra.mxu1 %v8172_v43  ;;  %v8231_v41 = vld [vmem:[%s11374_s5 + $0xd5c] ss:$28 sps:$4 sm:$0xff]   ;;  %v8546_v43 = vld [vmem:[%s11372_s6 + $0x23] sm:$0xff] }
 0x4d6   :  { %6216 = vmatprep.subr.bf16.mxu0 %v8177_v45  ;;  %6380 = vmatprep.subr.bf16.mxu1 %v8180_v47  ;;  %v8530_v60 = vpop.eup %8529  ;;  %v3179_v45 = vrot.slane %v8546_v43, %v10419_v63  ;;  %v8229_v47 = vld [vmem:[%s11374_s5 + $0xd58] ss:$28 sps:$4 sm:$0xff]  }
 0x4d7   :  { %v3100_v56 = vmul.f32 %v8530_v60, %v3092_v61  ;;  %v8275_v60 = vld [vmem:[%s11374_s5 + $0x2f0] ss:$28 sps:$4 sm:$0xff]   ;;  %v8272_v61 = vld [vmem:[%s11374_s5 + $0x128] ss:$28 sps:$4 sm:$0xff]   ;;  %v8291_v43 = vld [vmem:[%s11374_s5 + $0x398] ss:$28 sps:$4 sm:$0xff]  }
 0x4d9   :  { %6217 = vmatpush1.bf16.msra.mxu0 %v8175_v48  ;;  %6381 = vmatpush1.bf16.msra.mxu1 %v8178_v23  ;;  %v3149_v25 = vmul.f32 %v3130_v35, %v3100_v56  ;;  %v8232_v48 = vld [vmem:[%s11374_s5 + $0xd60] ss:$28 sps:$4 sm:$0xff]  }
 0x4da   :  { %6218 = vmatprep.subr.bf16.mxu0 %v8183_v52  ;;  %6382 = vmatprep.subr.bf16.mxu1 %v8186_v53  ;;  %v8235_v52 = vld [vmem:[%s11374_s5 + $0xd90] ss:$28 sps:$4 sm:$0xff]   ;;  %v8238_v53 = vld [vmem:[%s11374_s5 + $0xd98] ss:$28 sps:$4 sm:$0xff]   ;;  %v8277_v56 = vld [vmem:[%s11374_s5 + $0x160] ss:$28 sps:$4 sm:$0xff]  }
 0x4db   :  { %v3198_v23 = vadd.f32 %v3179_v45, %v3149_v25  ;;  %v8284_v35 = vld [vmem:[%s11374_s5 + $0x19c] ss:$28 sps:$4 sm:$0xff]   ;;  %v8294_v45 = vld [vmem:[%s11374_s5 + $0x20c] ss:$28 sps:$4 sm:$0xff]  }
 0x4dc   :  { %v8290_v25 = vld [vmem:[%s11374_s5 + $0x558] ss:$28 sps:$4 sm:$0xff]  }
 0x4dd   :  { %6219 = vmatpush1.bf16.msra.mxu0 %v8181_v30  ;;  %6383 = vmatpush1.bf16.msra.mxu1 %v8184_v24  ;;  %v8243_v30 = vld [vmem:[%s11374_s5 + $0xdcc] ss:$28 sps:$4 sm:$0xff]   ;;  %v3214_v24 = vmul.f32 0.2, %v3198_v23  ;;  %vm3206_vm15 = vcmp.gt.f32.partialorder %v3198_v23, 0.0 }
 0x4de   :  { %6220 = vmatprep.subr.bf16.mxu0 %v8189_v55  ;;  %6384 = vmatprep.subr.bf16.mxu1 %v8192_v17  ;;  %v8241_v55 = vld [vmem:[%s11374_s5 + $0xdc8] ss:$28 sps:$4 sm:$0xff]   ;;  %v8244_v17 = vld [vmem:[%s11374_s5 + $0xdd0] ss:$28 sps:$4 sm:$0xff]  }
 0x4df   :  { %v3222_v58 = vsel %vm3206_vm15, %v3198_v23, %v3214_v24  ;;  %v8300_v23 = vld [vmem:[%s11374_s5 + $0x5c8] ss:$28 sps:$4 sm:$0xff]   ;;  %v8302_v24 = vld [vmem:[%s11374_s5 + $0x278] ss:$28 sps:$4 sm:$0xff]  }
 0x4e1   :  { %6221 = vmatpush1.bf16.msra.mxu0 %v8187_v54  ;;  %6385 = vmatpush1.bf16.msra.mxu1 %v8190_v62  ;;  %v8249_v54 = vld [vmem:[%s11374_s5 + $0x14] ss:$28 sps:$4 sm:$0xff]  }
 0x4e2   :  { %6222 = vmatprep.subr.bf16.mxu0 %v8195_v7  ;;  %6386 = vmatprep.subr.bf16.mxu1 %v8198_v8  ;;  %v8250_v62 = vld [vmem:[%s11374_s5 + $0x1d8] ss:$28 sps:$4 sm:$0xff]   ;;  %v8247_v7 = vld [vmem:[%s11374_s5 + $0x10] ss:$28 sps:$4 sm:$0xff]   ;;  %v10741_v8 = vpack.c.bf16 %v3222_v58, %v3222_v58 }
 0x4e3   :  { %v8307_v58 = vld [vmem:[%s11374_s5 + $0x2b0] ss:$28 sps:$4 sm:$0xff]  }
 0x4e5   :  { %6223 = vmatpush1.bf16.msra.mxu0 %v8193_v9  ;;  %6387 = vmatpush1.bf16.msra.mxu1 %v8196_v11  ;;  %v8251_v9 = vld [vmem:[%s11374_s5 + $0x18] ss:$28 sps:$4 sm:$0xff]   ;;  %v8255_v11 = vld [vmem:[%s11374_s5 + $0x210] ss:$28 sps:$4 sm:$0xff]  }
 0x4e6   :  { %6224 = vmatprep.subr.bf16.mxu0 %v8201_v14  ;;  %6388 = vmatprep.subr.bf16.mxu1 %v8204_v12  ;;  %v8252_v14 = vld [vmem:[%s11374_s5 + $0x48] ss:$28 sps:$4 sm:$0xff]   ;;  %v8256_v12 = vld [vmem:[%s11374_s5 + $0x50] ss:$28 sps:$4 sm:$0xff]  }
 0x4e9   :  { %6225 = vmatpush1.bf16.msra.mxu0 %v8199_v15  ;;  %6389 = vmatpush1.bf16.msra.mxu1 %v8202_v16  ;;  %v8259_v15 = vld [vmem:[%s11374_s5 + $0x84] ss:$28 sps:$4 sm:$0xff]  }
 0x4ea   :  { %6226 = vmatprep.subr.bf16.mxu0 %v8207_v4  ;;  %6390 = vmatprep.subr.bf16.mxu1 %v8210_v5  ;;  %v8260_v16 = vld [vmem:[%s11374_s5 + $0x248] ss:$28 sps:$4 sm:$0xff]   ;;  %v8257_v4 = vld [vmem:[%s11374_s5 + $0x80] ss:$28 sps:$4 sm:$0xff]  }
 0x4eb   :  { %v8261_v5 = vld [vmem:[%s11374_s5 + $0x88] ss:$28 sps:$4 sm:$0xff]  }
 0x4ed   :  { %6227 = vmatpush1.bf16.msra.mxu0 %v8205_v22  ;;  %6391 = vmatpush1.bf16.msra.mxu1 %v8208_v2  ;;  %v8265_v22 = vld [vmem:[%s11374_s5 + $0x280] ss:$28 sps:$4 sm:$0xff]   ;;  %v8262_v2 = vld [vmem:[%s11374_s5 + $0xb8] ss:$28 sps:$4 sm:$0xff]  }
 0x4ee   :  { %6228 = vmatprep.subr.bf16.mxu0 %v8213_v42  ;;  %6392 = vmatprep.subr.bf16.mxu1 %v8216_v28  ;;  %v8266_v42 = vld [vmem:[%s11374_s5 + $0xc0] ss:$28 sps:$4 sm:$0xff]   ;;  %v8269_v28 = vld [vmem:[%s11374_s5 + $0xf4] ss:$28 sps:$4 sm:$0xff]  }
 0x4f1   :  { %6229 = vmatpush1.bf16.msra.mxu0 %v8211_v32  ;;  %6393 = vmatpush1.bf16.msra.mxu1 %v8214_v31  ;;  %v8270_v32 = vld [vmem:[%s11374_s5 + $0x2b8] ss:$28 sps:$4 sm:$0xff]   ;;  %v8267_v31 = vld [vmem:[%s11374_s5 + $0xf0] ss:$28 sps:$4 sm:$0xff]  }
 0x4f2   :  { %6230 = vmatprep.subr.bf16.mxu0 %v8219_v57  ;;  %6394 = vmatprep.subr.bf16.mxu1 %v8222_v59  ;;  %v8271_v57 = vld [vmem:[%s11374_s5 + $0xf8] ss:$28 sps:$4 sm:$0xff]   ;;  %v8274_v59 = vld [vmem:[%s11374_s5 + $0x12c] ss:$28 sps:$4 sm:$0xff]  }
 0x4f5   :  { %6231 = vmatpush1.bf16.msra.mxu0 %v8217_v44  ;;  %6395 = vmatpush1.bf16.msra.mxu1 %v8220_v34  ;;  %v8276_v44 = vld [vmem:[%s11374_s5 + $0x130] ss:$28 sps:$4 sm:$0xff]   ;;  %v8279_v34 = vld [vmem:[%s11374_s5 + $0x164] ss:$28 sps:$4 sm:$0xff]  }
 0x4f6   :  { %6232 = vmatprep.subr.bf16.mxu0 %v8225_v20  ;;  %6396 = vmatprep.subr.bf16.mxu1 %v8228_v36  ;;  %v8280_v20 = vld [vmem:[%s11374_s5 + $0x328] ss:$28 sps:$4 sm:$0xff]   ;;  %v8285_v36 = vld [vmem:[%s11374_s5 + $0x360] ss:$28 sps:$4 sm:$0xff]  }
 0x4f9   :  { %6233 = vmatpush1.bf16.msra.mxu0 %v8223_v18  ;;  %6397 = vmatpush1.bf16.msra.mxu1 %v8226_v39  ;;  %v8282_v18 = vld [vmem:[%s11374_s5 + $0x198] ss:$28 sps:$4 sm:$0xff]   ;;  %v8286_v39 = vld [vmem:[%s11374_s5 + $0x1a0] ss:$28 sps:$4 sm:$0xff]  }
 0x4fa   :  { %6234 = vmatprep.subr.bf16.mxu0 %v8231_v41  ;;  %6398 = vmatprep.subr.bf16.mxu1 %v8234_v33  ;;  %v8289_v41 = vld [vmem:[%s11374_s5 + $0x1d4] ss:$28 sps:$4 sm:$0xff]  }
 0x4fb   :  { %v8287_v33 = vld [vmem:[%s11374_s5 + $0x1d0] ss:$28 sps:$4 sm:$0xff]  }
 0x4fd   :  { %6235 = vmatpush1.bf16.msra.mxu0 %v8229_v47  ;;  %6399 = vmatpush1.bf16.msra.mxu1 %v8232_v48  ;;  %v8295_v47 = vld [vmem:[%s11374_s5 + $0x590] ss:$28 sps:$4 sm:$0xff]   ;;  %v8292_v48 = vld [vmem:[%s11374_s5 + $0x208] ss:$28 sps:$4 sm:$0xff]  }
 0x4fe   :  { %6236 = vmatprep.subr.bf16.mxu0 %v8237_v51  ;;  %6400 = vmatprep.subr.bf16.mxu1 %v8240_v50  ;;  %v8296_v51 = vld [vmem:[%s11374_s5 + $0x3d0] ss:$28 sps:$4 sm:$0xff]   ;;  %v8299_v50 = vld [vmem:[%s11374_s5 + $0x244] ss:$28 sps:$4 sm:$0xff]  }
 0x501   :  { %6237 = vmatpush1.bf16.msra.mxu0 %v8235_v52  ;;  %6401 = vmatpush1.bf16.msra.mxu1 %v8238_v53  ;;  %v8297_v52 = vld [vmem:[%s11374_s5 + $0x240] ss:$28 sps:$4 sm:$0xff]   ;;  %v8301_v53 = vld [vmem:[%s11374_s5 + $0x408] ss:$28 sps:$4 sm:$0xff]  }
 0x502   :  { %6238 = vmatprep.subr.bf16.mxu0 %v8243_v30  ;;  %6402 = vmatprep.subr.bf16.mxu1 %v8246_v38  ;;  %v8304_v30 = vld [vmem:[%s11374_s5 + $0x27c] ss:$28 sps:$4 sm:$0xff]  }
 0x503   :  { %v8305_v38 = vld [vmem:[%s11374_s5 + $0x600] ss:$28 sps:$4 sm:$0xff]  }
 0x505   :  { %6239 = vmatpush1.bf16.msra.mxu0 %v8241_v55  ;;  %6403 = vmatpush1.bf16.msra.mxu1 %v8244_v17  ;;  %v8306_v55 = vld [vmem:[%s11374_s5 + $0x440] ss:$28 sps:$4 sm:$0xff]   ;;  %v8309_v17 = vld [vmem:[%s11374_s5 + $0x2b4] ss:$28 sps:$4 sm:$0xff]  }
 0x506   :  { %6413 = vmatprep.subr.bf16.mxu0 %v8249_v54  ;;  %7558 = vmatprep.subr.bf16.mxu1 %v8250_v62  ;;  %v8310_v54 = vld [vmem:[%s11374_s5 + $0x638] ss:$28 sps:$4 sm:$0xff]  }
 0x507   :  { %v8311_v62 = vld [vmem:[%s11374_s5 + $0x478] ss:$28 sps:$4 sm:$0xff]  }
 0x508   :  { %6241 = vmatmul.mubr.bf16.vlgmr.msra.gmra.mrb[12].mxu0 %v10741_v8  ;;  %6405 = vmatmul.mubr.bf16.vlgmr.msra.gmra.mrb[20].mxu1 %v10741_v8 }
 0x509   :  { %6414 = vmatpush1.bf16.msra.mxu0 %v8247_v7  ;;  %6445 = vmatprep.mubr.bf16.mxu0 %v10033_v3  ;;  %v8314_v7 = vld [vmem:[%s11374_s5 + $0x2ec] ss:$28 sps:$4 sm:$0xff]  }
 0x50a   :  { %7559 = vmatpush3.bf16.msra.mxu1 %v8251_v9  ;;  %6609 = vmatprep.mubr.bf16.mxu1 %v10033_v3  ;;  %v8264_v3 = vld [vmem:[%s11374_s5 + $0xbc] ss:$28 sps:$4 sm:$0xff]   ;;  %v8315_v9 = vld [vmem:[%s11374_s5 + $0x670] ss:$28 sps:$4 sm:$0xff]  }
 0x50b   :  { %6415 = vmatprep.subr.bf16.mxu0 %v8254_v10  ;;  %7560 = vmatprep.subr.bf16.mxu1 %v8255_v11  ;;  %v8312_v10 = vld [vmem:[%s11374_s5 + $0x2e8] ss:$28 sps:$4 sm:$0xff]   ;;  %v8316_v11 = vld [vmem:[%s11374_s5 + $0x4b0] ss:$28 sps:$4 sm:$0xff]  }
 0x50d   :  { %6416 = vmatpush1.bf16.msra.mxu0 %v8252_v14  ;;  %v8319_v14 = vld [vmem:[%s11374_s5 + $0x324] ss:$28 sps:$4 sm:$0xff]  }
 0x50e   :  { %7561 = vmatpush3.bf16.msra.mxu1 %v8256_v12  ;;  %6417 = vmatprep.subr.bf16.mxu0 %v8259_v15  ;;  %v8320_v12 = vld [vmem:[%s11374_s5 + $0x6a8] ss:$28 sps:$4 sm:$0xff]   ;;  %v8317_v15 = vld [vmem:[%s11374_s5 + $0x320] ss:$28 sps:$4 sm:$0xff]  }
 0x50f   :  { %7562 = vmatprep.subr.bf16.mxu1 %v8260_v16  ;;  %v8321_v16 = vld [vmem:[%s11374_s5 + $0x4e8] ss:$28 sps:$4 sm:$0xff]  }
 0x511   :  { %6418 = vmatpush1.bf16.msra.mxu0 %v8257_v4  ;;  %v8324_v4 = vld [vmem:[%s11374_s5 + $0x35c] ss:$28 sps:$4 sm:$0xff]  }
 0x512   :  { %7563 = vmatpush3.bf16.msra.mxu1 %v8261_v5  ;;  %6419 = vmatprep.subr.bf16.mxu0 %v8264_v3  ;;  %v8325_v5 = vld [vmem:[%s11374_s5 + $0x6e0] ss:$28 sps:$4 sm:$0xff]   ;;  %v8322_v3 = vld [vmem:[%s11374_s5 + $0x358] ss:$28 sps:$4 sm:$0xff]  }
 0x513   :  { %7564 = vmatprep.subr.bf16.mxu1 %v8265_v22  ;;  %v8326_v22 = vld [vmem:[%s11374_s5 + $0x520] ss:$28 sps:$4 sm:$0xff]  }
 0x515   :  { %6420 = vmatpush1.bf16.msra.mxu0 %v8262_v2  ;;  %v8329_v2 = vld [vmem:[%s11374_s5 + $0x394] ss:$28 sps:$4 sm:$0xff]  }
 0x516   :  { %7565 = vmatpush3.bf16.msra.mxu1 %v8266_v42  ;;  %6421 = vmatprep.subr.bf16.mxu0 %v8269_v28  ;;  %v8330_v42 = vld [vmem:[%s11374_s5 + $0x8d8] ss:$28 sps:$4 sm:$0xff]   ;;  %v8327_v28 = vld [vmem:[%s11374_s5 + $0x390] ss:$28 sps:$4 sm:$0xff]  }
 0x517   :  { %7566 = vmatprep.subr.bf16.mxu1 %v8270_v32  ;;  %v8331_v32 = vld [vmem:[%s11374_s5 + $0x718] ss:$28 sps:$4 sm:$0xff]  }
 0x519   :  { %6422 = vmatpush1.bf16.msra.mxu0 %v8267_v31  ;;  %v8334_v31 = vld [vmem:[%s11374_s5 + $0x3cc] ss:$28 sps:$4 sm:$0xff]  }
 0x51a   :  { %7567 = vmatpush3.bf16.msra.mxu1 %v8271_v57  ;;  %6423 = vmatprep.subr.bf16.mxu0 %v8274_v59  ;;  %v8335_v57 = vld [vmem:[%s11374_s5 + $0x910] ss:$28 sps:$4 sm:$0xff]   ;;  %v8332_v59 = vld [vmem:[%s11374_s5 + $0x3c8] ss:$28 sps:$4 sm:$0xff]  }
 0x51b   :  { %7568 = vmatprep.subr.bf16.mxu1 %v8275_v60  ;;  %v8336_v60 = vld [vmem:[%s11374_s5 + $0x750] ss:$28 sps:$4 sm:$0xff]  }
 0x51d   :  { %6424 = vmatpush1.bf16.msra.mxu0 %v8272_v61  ;;  %v8340_v61 = vld [vmem:[%s11374_s5 + $0x948] ss:$28 sps:$4 sm:$0xff]  }
 0x51e   :  { %7569 = vmatpush3.bf16.msra.mxu1 %v8276_v44  ;;  %6425 = vmatprep.subr.bf16.mxu0 %v8279_v34  ;;  %v8341_v44 = vld [vmem:[%s11374_s5 + $0x788] ss:$28 sps:$4 sm:$0xff]   ;;  %v8344_v34 = vld [vmem:[%s11374_s5 + $0x43c] ss:$28 sps:$4 sm:$0xff]  }
 0x51f   :  { %7570 = vmatprep.subr.bf16.mxu1 %v8280_v20  ;;  %v8345_v20 = vld [vmem:[%s11374_s5 + $0x980] ss:$28 sps:$4 sm:$0xff]  }
 0x521   :  { %6426 = vmatpush1.bf16.msra.mxu0 %v8277_v56  ;;  %v8342_v56 = vld [vmem:[%s11374_s5 + $0x438] ss:$28 sps:$4 sm:$0xff]  }
 0x522   :  { %7571 = vmatpush3.bf16.msra.mxu1 %v8281_v26  ;;  %6427 = vmatprep.subr.bf16.mxu0 %v8284_v35  ;;  %v8346_v26 = vld [vmem:[%s11374_s5 + $0x7c0] ss:$28 sps:$4 sm:$0xff]   ;;  %v8349_v35 = vld [vmem:[%s11374_s5 + $0x474] ss:$28 sps:$4 sm:$0xff]  }
 0x523   :  { %7572 = vmatprep.subr.bf16.mxu1 %v8285_v36  ;;  %v8350_v36 = vld [vmem:[%s11374_s5 + $0x9b8] ss:$28 sps:$4 sm:$0xff]  }
 0x525   :  { %6428 = vmatpush1.bf16.msra.mxu0 %v8282_v18  ;;  %v8347_v18 = vld [vmem:[%s11374_s5 + $0x470] ss:$28 sps:$4 sm:$0xff]  }
 0x526   :  { %7573 = vmatpush3.bf16.msra.mxu1 %v8286_v39  ;;  %6429 = vmatprep.subr.bf16.mxu0 %v8289_v41  ;;  %v8351_v39 = vld [vmem:[%s11374_s5 + $0x7f8] ss:$28 sps:$4 sm:$0xff]   ;;  %v8354_v41 = vld [vmem:[%s11374_s5 + $0x4ac] ss:$28 sps:$4 sm:$0xff]  }
 0x527   :  { %7580 = vmatprep.subr.bf16.mxu1 %v8290_v25  ;;  %v8355_v25 = vld [vmem:[%s11374_s5 + $0x9f0] ss:$28 sps:$4 sm:$0xff]  }
 0x529   :  { %6610 = vmatmul.mubr.bf16.vlgmr.msra.gmra.mrb[24].mxu1 %v10041_v13  ;;  %6430 = vmatpush1.bf16.msra.mxu0 %v8287_v33  ;;  %v8352_v33 = vld [vmem:[%s11374_s5 + $0x4a8] ss:$28 sps:$4 sm:$0xff]  }
 0x52a   :  { %7581 = vmatpush3.bf16.msra.mxu1 %v8291_v43  ;;  %6649 = vmatprep.mubr.bf16.mxu1 %v10053_v49  ;;  %v8356_v43 = vld [vmem:[%s11374_s5 + $0x830] ss:$28 sps:$4 sm:$0xff]  }
 0x52b   :  { %6431 = vmatprep.subr.bf16.mxu0 %v8294_v45  ;;  %7582 = vmatprep.subr.bf16.mxu1 %v8295_v47  ;;  %v8359_v45 = vld [vmem:[%s11374_s5 + $0x4e4] ss:$28 sps:$4 sm:$0xff]  }
 0x52c   :  { %v8360_v47 = vld [vmem:[%s11374_s5 + $0xa28] ss:$28 sps:$4 sm:$0xff]  }
 0x52d   :  { %6432 = vmatpush1.bf16.msra.mxu0 %v8292_v48  ;;  %v8357_v48 = vld [vmem:[%s11374_s5 + $0x4e0] ss:$28 sps:$4 sm:$0xff]  }
 0x52e   :  { %7583 = vmatpush3.bf16.msra.mxu1 %v8296_v51  ;;  %6433 = vmatprep.subr.bf16.mxu0 %v8299_v50  ;;  %v8361_v51 = vld [vmem:[%s11374_s5 + $0x868] ss:$28 sps:$4 sm:$0xff]   ;;  %v8364_v50 = vld [vmem:[%s11374_s5 + $0x51c] ss:$28 sps:$4 sm:$0xff]  }
 0x52f   :  { %7584 = vmatprep.subr.bf16.mxu1 %v8300_v23  ;;  %v8365_v23 = vld [vmem:[%s11374_s5 + $0xa60] ss:$28 sps:$4 sm:$0xff]  }
 0x531   :  { %6434 = vmatpush1.bf16.msra.mxu0 %v8297_v52  ;;  %v8362_v52 = vld [vmem:[%s11374_s5 + $0x518] ss:$28 sps:$4 sm:$0xff]  }
 0x532   :  { %7585 = vmatpush3.bf16.msra.mxu1 %v8301_v53  ;;  %6435 = vmatprep.subr.bf16.mxu0 %v8304_v30  ;;  %v8366_v53 = vld [vmem:[%s11374_s5 + $0x8a0] ss:$28 sps:$4 sm:$0xff]   ;;  %v8369_v30 = vld [vmem:[%s11374_s5 + $0x554] ss:$28 sps:$4 sm:$0xff]  }
 0x533   :  { %7586 = vmatprep.subr.bf16.mxu1 %v8305_v38  ;;  %v8370_v38 = vld [vmem:[%s11374_s5 + $0xc58] ss:$28 sps:$4 sm:$0xff]  }
 0x535   :  { %6436 = vmatpush1.bf16.msra.mxu0 %v8302_v24  ;;  %v8367_v24 = vld [vmem:[%s11374_s5 + $0x550] ss:$28 sps:$4 sm:$0xff]  }
 0x536   :  { %7587 = vmatpush3.bf16.msra.mxu1 %v8306_v55  ;;  %6437 = vmatprep.subr.bf16.mxu0 %v8309_v17  ;;  %v8371_v55 = vld [vmem:[%s11374_s5 + $0xa98] ss:$28 sps:$4 sm:$0xff]   ;;  %v8374_v17 = vld [vmem:[%s11374_s5 + $0x58c] ss:$28 sps:$4 sm:$0xff]  }
 0x537   :  { %7588 = vmatprep.subr.bf16.mxu1 %v8310_v54  ;;  %v8375_v54 = vld [vmem:[%s11374_s5 + $0xc90] ss:$28 sps:$4 sm:$0xff]  }
 0x539   :  { %6438 = vmatpush1.bf16.msra.mxu0 %v8307_v58  ;;  %v8372_v58 = vld [vmem:[%s11374_s5 + $0x588] ss:$28 sps:$4 sm:$0xff]  }
 0x53a   :  { %7589 = vmatpush3.bf16.msra.mxu1 %v8311_v62  ;;  %6439 = vmatprep.subr.bf16.mxu0 %v8314_v7  ;;  %v8376_v62 = vld [vmem:[%s11374_s5 + $0xad0] ss:$28 sps:$4 sm:$0xff]   ;;  %v8379_v7 = vld [vmem:[%s11374_s5 + $0x5c4] ss:$28 sps:$4 sm:$0xff]  }
 0x53b   :  { %7590 = vmatprep.subr.bf16.mxu1 %v8315_v9  ;;  %v8380_v9 = vld [vmem:[%s11374_s5 + $0xcc8] ss:$28 sps:$4 sm:$0xff]  }
 0x53d   :  { %6440 = vmatpush1.bf16.msra.mxu0 %v8312_v10  ;;  %v8377_v10 = vld [vmem:[%s11374_s5 + $0x5c0] ss:$28 sps:$4 sm:$0xff]  }
 0x53e   :  { %7591 = vmatpush3.bf16.msra.mxu1 %v8316_v11  ;;  %6441 = vmatprep.subr.bf16.mxu0 %v8319_v14  ;;  %v8381_v11 = vld [vmem:[%s11374_s5 + $0xb08] ss:$28 sps:$4 sm:$0xff]   ;;  %v8384_v14 = vld [vmem:[%s11374_s5 + $0x5fc] ss:$28 sps:$4 sm:$0xff]  }
 0x53f   :  { %7592 = vmatprep.subr.bf16.mxu1 %v8320_v12  ;;  %v8385_v12 = vld [vmem:[%s11374_s5 + $0xd00] ss:$28 sps:$4 sm:$0xff]  }
 0x541   :  { %6442 = vmatpush1.bf16.msra.mxu0 %v8317_v15  ;;  %v8382_v15 = vld [vmem:[%s11374_s5 + $0x5f8] ss:$28 sps:$4 sm:$0xff]  }
 0x542   :  { %7593 = vmatpush3.bf16.msra.mxu1 %v8321_v16  ;;  %6443 = vmatprep.subr.bf16.mxu0 %v8324_v4  ;;  %v8386_v16 = vld [vmem:[%s11374_s5 + $0xb40] ss:$28 sps:$4 sm:$0xff]   ;;  %v8389_v4 = vld [vmem:[%s11374_s5 + $0x634] ss:$28 sps:$4 sm:$0xff]  }
 0x543   :  { %7594 = vmatprep.subr.bf16.mxu1 %v8325_v5  ;;  %v8390_v5 = vld [vmem:[%s11374_s5 + $0xd38] ss:$28 sps:$4 sm:$0xff]  }
 0x545   :  { %6444 = vmatpush1.bf16.msra.mxu0 %v8322_v3  ;;  %v8387_v3 = vld [vmem:[%s11374_s5 + $0x630] ss:$28 sps:$4 sm:$0xff]  }
 0x546   :  { %7595 = vmatpush3.bf16.msra.mxu1 %v8326_v22  ;;  %6454 = vmatprep.subr.bf16.mxu0 %v8329_v2  ;;  %v8391_v22 = vld [vmem:[%s11374_s5 + $0xb78] ss:$28 sps:$4 sm:$0xff]   ;;  %v8394_v2 = vld [vmem:[%s11374_s5 + $0x66c] ss:$28 sps:$4 sm:$0xff]  }
 0x547   :  { %7602 = vmatprep.subr.bf16.mxu1 %v8330_v42  ;;  %v8395_v42 = vld [vmem:[%s11374_s5 + $0xd70] ss:$28 sps:$4 sm:$0xff]  }
 0x548   :  { %6446 = vmatmul.mubr.bf16.vlgmr.msra.gmra.mrb[16].mxu0 %v10041_v13  ;;  %v8339_v13 = vld [vmem:[%s11374_s5 + $0x404] ss:$28 sps:$4 sm:$0xff]  }
 0x549   :  { %6650 = vmatmul.mubr.bf16.vlgmr.msra.gmra.mrb[28].mxu1 %v10253_v46  ;;  %6455 = vmatpush1.bf16.msra.mxu0 %v8327_v28  ;;  %v8392_v28 = vld [vmem:[%s11374_s5 + $0x668] ss:$28 sps:$4 sm:$0xff]  }
 0x54a   :  { %6486 = vmatprep.mubr.bf16.mxu0 %v10053_v49  ;;  %7603 = vmatpush3.bf16.msra.mxu1 %v8331_v32  ;;  %v8337_v49 = vld [vmem:[%s11374_s5 + $0x400] ss:$28 sps:$4 sm:$0xff]   ;;  %v8396_v32 = vld [vmem:[%s11374_s5 + $0xbb0] ss:$28 sps:$4 sm:$0xff]  }
 0x54b   :  { %6689 = vmatprep.mubr.bf16.mxu1 %v10520_v6  ;;  %6456 = vmatprep.subr.bf16.mxu0 %v8334_v31  ;;  %v8399_v31 = vld [vmem:[%s11374_s5 + $0x6a4] ss:$28 sps:$4 sm:$0xff]  }
 0x54c   :  { %7604 = vmatprep.subr.bf16.mxu1 %v8335_v57  ;;  %v8400_v57 = vld [vmem:[%s11374_s5 + $0xda8] ss:$28 sps:$4 sm:$0xff]  }
 0x54d   :  { %6457 = vmatpush1.bf16.msra.mxu0 %v8332_v59  ;;  %v8397_v59 = vld [vmem:[%s11374_s5 + $0x6a0] ss:$28 sps:$4 sm:$0xff]  }
 0x54e   :  { %7605 = vmatpush3.bf16.msra.mxu1 %v8336_v60  ;;  %6458 = vmatprep.subr.bf16.mxu0 %v8339_v13  ;;  %v8401_v60 = vld [vmem:[%s11374_s5 + $0xbe8] ss:$28 sps:$4 sm:$0xff]   ;;  %v8404_v13 = vld [vmem:[%s11374_s5 + $0x6dc] ss:$28 sps:$4 sm:$0xff]  }
 0x54f   :  { %7606 = vmatprep.subr.bf16.mxu1 %v8340_v61  ;;  %v8405_v61 = vld [vmem:[%s11374_s5 + $0xde0] ss:$28 sps:$4 sm:$0xff]  }
 0x551   :  { %6459 = vmatpush1.bf16.msra.mxu0 %v8337_v49  ;;  %v8402_v49 = vld [vmem:[%s11374_s5 + $0x6d8] ss:$28 sps:$4 sm:$0xff]  }
 0x552   :  { %7607 = vmatpush3.bf16.msra.mxu1 %v8341_v44  ;;  %6460 = vmatprep.subr.bf16.mxu0 %v8344_v34  ;;  %v8406_v44 = vld [vmem:[%s11374_s5 + $0xc20] ss:$28 sps:$4 sm:$0xff]   ;;  %v8409_v34 = vld [vmem:[%s11374_s5 + $0x714] ss:$28 sps:$4 sm:$0xff]  }
 0x553   :  { %7608 = vmatprep.subr.bf16.mxu1 %v8345_v20  ;;  %v8407_v20 = vld [vmem:[%s11374_s5 + $0x710] ss:$28 sps:$4 sm:$0xff]  }
 0x555   :  { %6461 = vmatpush1.bf16.msra.mxu0 %v8342_v56  ;;  %v8412_v56 = vld [vmem:[%s11374_s5 + $0x74c] ss:$28 sps:$4 sm:$0xff]  }
 0x556   :  { %7609 = vmatpush3.bf16.msra.mxu1 %v8346_v26  ;;  %6462 = vmatprep.subr.bf16.mxu0 %v8349_v35  ;;  %v8410_v26 = vld [vmem:[%s11374_s5 + $0x748] ss:$28 sps:$4 sm:$0xff]  }
 0x557   :  { %7610 = vmatprep.subr.bf16.mxu1 %v8350_v36  ;;  %v8415_v35 = vld [vmem:[%s11374_s5 + $0x784] ss:$28 sps:$4 sm:$0xff]  }
 0x558   :  { %v8413_v36 = vld [vmem:[%s11374_s5 + $0x780] ss:$28 sps:$4 sm:$0xff]  }
 0x559   :  { %6463 = vmatpush1.bf16.msra.mxu0 %v8347_v18  ;;  %v8421_v18 = vld [vmem:[%s11374_s5 + $0x7f4] ss:$28 sps:$4 sm:$0xff]  }
 0x55a   :  { %7611 = vmatpush3.bf16.msra.mxu1 %v8351_v39  ;;  %6464 = vmatprep.subr.bf16.mxu0 %v8354_v41  ;;  %v8419_v39 = vld [vmem:[%s11374_s5 + $0x7f0] ss:$28 sps:$4 sm:$0xff]  }
 0x55b   :  { %7612 = vmatprep.subr.bf16.mxu1 %v8355_v25  ;;  %v8424_v41 = vld [vmem:[%s11374_s5 + $0x82c] ss:$28 sps:$4 sm:$0xff]  }
 0x55c   :  { %v8422_v25 = vld [vmem:[%s11374_s5 + $0x828] ss:$28 sps:$4 sm:$0xff]  }
 0x55d   :  { %6465 = vmatpush1.bf16.msra.mxu0 %v8352_v33  ;;  %v8427_v33 = vld [vmem:[%s11374_s5 + $0x864] ss:$28 sps:$4 sm:$0xff]  }
 0x55e   :  { %7613 = vmatpush3.bf16.msra.mxu1 %v8356_v43  ;;  %6466 = vmatprep.subr.bf16.mxu0 %v8359_v45  ;;  %v8425_v43 = vld [vmem:[%s11374_s5 + $0x860] ss:$28 sps:$4 sm:$0xff]  }
 0x55f   :  { %7614 = vmatprep.subr.bf16.mxu1 %v8360_v47  ;;  %v8430_v45 = vld [vmem:[%s11374_s5 + $0x89c] ss:$28 sps:$4 sm:$0xff]  }
 0x560   :  { %v8428_v47 = vld [vmem:[%s11374_s5 + $0x898] ss:$28 sps:$4 sm:$0xff]  }
 0x561   :  { %6467 = vmatpush1.bf16.msra.mxu0 %v8357_v48  ;;  %v8433_v48 = vld [vmem:[%s11374_s5 + $0x8d4] ss:$28 sps:$4 sm:$0xff]  }
 0x562   :  { %7615 = vmatpush3.bf16.msra.mxu1 %v8361_v51  ;;  %6468 = vmatprep.subr.bf16.mxu0 %v8364_v50  ;;  %v8431_v51 = vld [vmem:[%s11374_s5 + $0x8d0] ss:$28 sps:$4 sm:$0xff]  }
 0x563   :  { %7616 = vmatprep.subr.bf16.mxu1 %v8365_v23  ;;  %v8436_v50 = vld [vmem:[%s11374_s5 + $0x90c] ss:$28 sps:$4 sm:$0xff]  }
 0x564   :  { %v8434_v23 = vld [vmem:[%s11374_s5 + $0x908] ss:$28 sps:$4 sm:$0xff]  }
 0x565   :  { %6469 = vmatpush1.bf16.msra.mxu0 %v8362_v52  ;;  %v8439_v52 = vld [vmem:[%s11374_s5 + $0x944] ss:$28 sps:$4 sm:$0xff]  }
 0x566   :  { %7617 = vmatpush3.bf16.msra.mxu1 %v8366_v53  ;;  %6470 = vmatprep.subr.bf16.mxu0 %v8369_v30  ;;  %v8437_v53 = vld [vmem:[%s11374_s5 + $0x940] ss:$28 sps:$4 sm:$0xff]  }
 0x567   :  { %7624 = vmatprep.subr.bf16.mxu1 %v8370_v38  ;;  %v8442_v30 = vld [vmem:[%s11374_s5 + $0x97c] ss:$28 sps:$4 sm:$0xff]  }
 0x568   :  { %v8440_v38 = vld [vmem:[%s11374_s5 + $0x978] ss:$28 sps:$4 sm:$0xff]  }
 0x569   :  { %6690 = vmatmul.mubr.bf16.vlgmr.msra.gmra.mrb[32].mxu1 %v10528_v27  ;;  %6471 = vmatpush1.bf16.msra.mxu0 %v8367_v24  ;;  %v8445_v24 = vld [vmem:[%s11374_s5 + $0x9b4] ss:$28 sps:$4 sm:$0xff]  }
 0x56a   :  { %7625 = vmatpush3.bf16.msra.mxu1 %v8371_v55  ;;  %6729 = vmatprep.mubr.bf16.mxu1 %v10536_v29  ;;  %v8443_v55 = vld [vmem:[%s11374_s5 + $0x9b0] ss:$28 sps:$4 sm:$0xff]  }
 0x56b   :  { %6472 = vmatprep.subr.bf16.mxu0 %v8374_v17  ;;  %7626 = vmatprep.subr.bf16.mxu1 %v8375_v54  ;;  %v8448_v17 = vld [vmem:[%s11374_s5 + $0x9ec] ss:$28 sps:$4 sm:$0xff]  }
 0x56c   :  { %v8446_v54 = vld [vmem:[%s11374_s5 + $0x9e8] ss:$28 sps:$4 sm:$0xff]  }
 0x56d   :  { %6473 = vmatpush1.bf16.msra.mxu0 %v8372_v58  ;;  %v8451_v58 = vld [vmem:[%s11374_s5 + $0xa24] ss:$28 sps:$4 sm:$0xff]  }
 0x56e   :  { %7627 = vmatpush3.bf16.msra.mxu1 %v8376_v62  ;;  %6474 = vmatprep.subr.bf16.mxu0 %v8379_v7  ;;  %v8449_v62 = vld [vmem:[%s11374_s5 + $0xa20] ss:$28 sps:$4 sm:$0xff]  }
 0x56f   :  { %7628 = vmatprep.subr.bf16.mxu1 %v8380_v9  ;;  %v8454_v7 = vld [vmem:[%s11374_s5 + $0xa5c] ss:$28 sps:$4 sm:$0xff]  }
 0x570   :  { %v8452_v9 = vld [vmem:[%s11374_s5 + $0xa58] ss:$28 sps:$4 sm:$0xff]  }
 0x571   :  { %6475 = vmatpush1.bf16.msra.mxu0 %v8377_v10  ;;  %v8457_v10 = vld [vmem:[%s11374_s5 + $0xa94] ss:$28 sps:$4 sm:$0xff]  }
 0x572   :  { %7629 = vmatpush3.bf16.msra.mxu1 %v8381_v11  ;;  %6476 = vmatprep.subr.bf16.mxu0 %v8384_v14  ;;  %v8455_v11 = vld [vmem:[%s11374_s5 + $0xa90] ss:$28 sps:$4 sm:$0xff]  }
 0x573   :  { %7630 = vmatprep.subr.bf16.mxu1 %v8385_v12  ;;  %v8460_v14 = vld [vmem:[%s11374_s5 + $0xacc] ss:$28 sps:$4 sm:$0xff]  }
 0x574   :  { %v8458_v12 = vld [vmem:[%s11374_s5 + $0xac8] ss:$28 sps:$4 sm:$0xff]  }
 0x575   :  { %6477 = vmatpush1.bf16.msra.mxu0 %v8382_v15  ;;  %v8463_v15 = vld [vmem:[%s11374_s5 + $0xb04] ss:$28 sps:$4 sm:$0xff]  }
 0x576   :  { %7631 = vmatpush3.bf16.msra.mxu1 %v8386_v16  ;;  %6478 = vmatprep.subr.bf16.mxu0 %v8389_v4  ;;  %v8461_v16 = vld [vmem:[%s11374_s5 + $0xb00] ss:$28 sps:$4 sm:$0xff]   ;;  %v8469_v4 = vld [vmem:[%s11374_s5 + $0xb74] ss:$28 sps:$4 sm:$0xff]  }
 0x577   :  { %7632 = vmatprep.subr.bf16.mxu1 %v8390_v5  ;;  %v8467_v5 = vld [vmem:[%s11374_s5 + $0xb70] ss:$28 sps:$4 sm:$0xff]  }
 0x579   :  { %6479 = vmatpush1.bf16.msra.mxu0 %v8387_v3  ;;  %v11264_v3 = vld [vmem:[%s11372_s6 + $0x2b] sm:$0x7f] }
 0x57a   :  { %7633 = vmatpush3.bf16.msra.mxu1 %v8391_v22  ;;  %6480 = vmatprep.subr.bf16.mxu0 %v8394_v2  ;;  %v8472_v22 = vld [vmem:[%s11374_s5 + $0xbac] ss:$28 sps:$4 sm:$0xff]   ;;  %v3749_v2 = vrot.slane %v11264_v3, %v8788_v19 }
 0x57b   :  { %7634 = vmatprep.subr.bf16.mxu1 %v8395_v42  ;;  %v3757_v42 = vrot.slane %v11264_v3, %v9197_v37 }
 0x57d   :  { %6481 = vmatpush1.bf16.msra.mxu0 %v8392_v28  ;;  %v3753_v28 = vrot.slane %v11264_v3, %v8794_v21 }
 0x57e   :  { %7635 = vmatpush3.bf16.msra.mxu1 %v8396_v32  ;;  %6482 = vmatprep.subr.bf16.mxu0 %v8399_v31  ;;  %v8470_v32 = vld [vmem:[%s11374_s5 + $0xba8] ss:$28 sps:$4 sm:$0xff]   ;;  %v3761_v31 = vrot.slane %v11264_v3, %v9200_v40 }
 0x57f   :  { %7636 = vmatprep.subr.bf16.mxu1 %v8400_v57  ;;  %v8475_v57 = vld [vmem:[%s11374_s5 + $0xbe4] ss:$28 sps:$4 sm:$0xff]  }
 0x581   :  { %6483 = vmatpush1.bf16.msra.mxu0 %v8397_v59 }
 0x582   :  { %7637 = vmatpush3.bf16.msra.mxu1 %v8401_v60  ;;  %6484 = vmatprep.subr.bf16.mxu0 %v8404_v13 }
 0x583   :  { %7638 = vmatprep.subr.bf16.mxu1 %v8405_v61 }
 0x585   :  { %6485 = vmatpush1.bf16.msra.mxu0 %v8402_v49 }
 0x586   :  { %7639 = vmatpush3.bf16.msra.mxu1 %v8406_v44  ;;  %6495 = vmatprep.subr.bf16.mxu0 %v8409_v34  ;;  %v8473_v44 = vld [vmem:[%s11374_s5 + $0xbe0] ss:$28 sps:$4 sm:$0xff]  }
 0x588   :  { %6487 = vmatmul.mubr.bf16.vlgmr.msra.gmra.mrb[16].mxu0 %v10253_v46  ;;  %v8418_v46 = vld [vmem:[%s11374_s5 + $0x7bc] ss:$28 sps:$4 sm:$0xff]  }
 0x589   :  { %6730 = vmatmul.mubr.bf16.vlgmr.msra.gmra.mrb[36].mxu1 %v10741_v8  ;;  %6496 = vmatpush1.bf16.msra.mxu0 %v8407_v20 }
 0x58a   :  { %6527 = vmatprep.mubr.bf16.mxu0 %v10520_v6  ;;  %6497 = vmatprep.subr.bf16.mxu0 %v8412_v56  ;;  %v8416_v6 = vld [vmem:[%s11374_s5 + $0x7b8] ss:$28 sps:$4 sm:$0xff]  }
 0x58b   :  { %v8478_v56 = vld [vmem:[%s11374_s5 + $0xc1c] ss:$28 sps:$4 sm:$0xff]  }
 0x58d   :  { %6498 = vmatpush1.bf16.msra.mxu0 %v8410_v26 }
 0x58e   :  { %6499 = vmatprep.subr.bf16.mxu0 %v8415_v35  ;;  %v8476_v35 = vld [vmem:[%s11374_s5 + $0xc18] ss:$28 sps:$4 sm:$0xff]  }
 0x591   :  { %6500 = vmatpush1.bf16.msra.mxu0 %v8413_v36  ;;  %v8481_v36 = vld [vmem:[%s11374_s5 + $0xc54] ss:$28 sps:$4 sm:$0xff]  }
 0x592   :  { %6501 = vmatprep.subr.bf16.mxu0 %v8418_v46  ;;  %v8479_v46 = vld [vmem:[%s11374_s5 + $0xc50] ss:$28 sps:$4 sm:$0xff]  }
 0x595   :  { %6502 = vmatpush1.bf16.msra.mxu0 %v8416_v6  ;;  %v8484_v6 = vld [vmem:[%s11374_s5 + $0xc8c] ss:$28 sps:$4 sm:$0xff]  }
 0x596   :  { %6503 = vmatprep.subr.bf16.mxu0 %v8421_v18 }
 0x599   :  { %6504 = vmatpush1.bf16.msra.mxu0 %v8419_v39 }
 0x59a   :  { %6505 = vmatprep.subr.bf16.mxu0 %v8424_v41  ;;  %v8482_v41 = vld [vmem:[%s11374_s5 + $0xc88] ss:$28 sps:$4 sm:$0xff]  }
 0x59d   :  { %6506 = vmatpush1.bf16.msra.mxu0 %v8422_v25 }
 0x59e   :  { %6507 = vmatprep.subr.bf16.mxu0 %v8427_v33  ;;  %v8487_v33 = vld [vmem:[%s11374_s5 + $0xcc4] ss:$28 sps:$4 sm:$0xff]  }
 0x5a1   :  { %6508 = vmatpush1.bf16.msra.mxu0 %v8425_v43 }
 0x5a2   :  { %6509 = vmatprep.subr.bf16.mxu0 %v8430_v45  ;;  %v8485_v45 = vld [vmem:[%s11374_s5 + $0xcc0] ss:$28 sps:$4 sm:$0xff]  }
 0x5a5   :  { %6510 = vmatpush1.bf16.msra.mxu0 %v8428_v47  ;;  %v8490_v47 = vld [vmem:[%s11374_s5 + $0xcfc] ss:$28 sps:$4 sm:$0xff]  }
 0x5a6   :  { %6511 = vmatprep.subr.bf16.mxu0 %v8433_v48  ;;  %v8488_v48 = vld [vmem:[%s11374_s5 + $0xcf8] ss:$28 sps:$4 sm:$0xff]  }
 0x5a9   :  { %6512 = vmatpush1.bf16.msra.mxu0 %v8431_v51  ;;  %v8493_v51 = vld [vmem:[%s11374_s5 + $0xd34] ss:$28 sps:$4 sm:$0xff]  }
 0x5aa   :  { %6513 = vmatprep.subr.bf16.mxu0 %v8436_v50  ;;  %v8491_v50 = vld [vmem:[%s11374_s5 + $0xd30] ss:$28 sps:$4 sm:$0xff]  }
 0x5ad   :  { %6514 = vmatpush1.bf16.msra.mxu0 %v8434_v23  ;;  %v8496_v23 = vld [vmem:[%s11374_s5 + $0xd6c] ss:$28 sps:$4 sm:$0xff]  }
 0x5ae   :  { %6515 = vmatprep.subr.bf16.mxu0 %v8439_v52  ;;  %v8494_v52 = vld [vmem:[%s11374_s5 + $0xd68] ss:$28 sps:$4 sm:$0xff]  }
 0x5b1   :  { %6516 = vmatpush1.bf16.msra.mxu0 %v8437_v53  ;;  %v8499_v53 = vld [vmem:[%s11374_s5 + $0xda4] ss:$28 sps:$4 sm:$0xff]  }
 0x5b2   :  { %6517 = vmatprep.subr.bf16.mxu0 %v8442_v30 }
 0x5b5   :  { %6518 = vmatpush1.bf16.msra.mxu0 %v8440_v38 }
 0x5b6   :  { %6519 = vmatprep.subr.bf16.mxu0 %v8445_v24  ;;  %v8497_v24 = vld [vmem:[%s11374_s5 + $0xda0] ss:$28 sps:$4 sm:$0xff]  }
 0x5b9   :  { %6520 = vmatpush1.bf16.msra.mxu0 %v8443_v55 }
 0x5ba   :  { %6521 = vmatprep.subr.bf16.mxu0 %v8448_v17 }
 0x5bd   :  { %6522 = vmatpush1.bf16.msra.mxu0 %v8446_v54  ;;  %v8502_v54 = vld [vmem:[%s11374_s5 + $0xddc] ss:$28 sps:$4 sm:$0xff]  }
 0x5be   :  { %6523 = vmatprep.subr.bf16.mxu0 %v8451_v58 }
 0x5c1   :  { %6524 = vmatpush1.bf16.msra.mxu0 %v8449_v62  ;;  %v8500_v62 = vld [vmem:[%s11374_s5 + $0xdd8] ss:$28 sps:$4 sm:$0xff]  }
 0x5c2   :  { %6525 = vmatprep.subr.bf16.mxu0 %v8454_v7  ;;  %v3773_v7 = vrot.slane %v11264_v3, %v10419_v63 }
 0x5c5   :  { %6526 = vmatpush1.bf16.msra.mxu0 %v8452_v9 }
 0x5c6   :  { %6536 = vmatprep.subr.bf16.mxu0 %v8457_v10 }
 0x5c8   :  { %6528 = vmatmul.mubr.bf16.vlgmr.msra.gmra.mrb[16].mxu0 %v10528_v27  ;;  %v8466_v27 = vld [vmem:[%s11374_s5 + $0xb3c] ss:$28 sps:$4 sm:$0xff]  }
 0x5c9   :  { %6537 = vmatpush1.bf16.msra.mxu0 %v8455_v11  ;;  %6568 = vmatprep.mubr.bf16.mxu0 %v10536_v29  ;;  %v8464_v29 = vld [vmem:[%s11374_s5 + $0xb38] ss:$28 sps:$4 sm:$0xff]  }
 0x5ca   :  { %6538 = vmatprep.subr.bf16.mxu0 %v8460_v14 }
 0x5cd   :  { %6539 = vmatpush1.bf16.msra.mxu0 %v8458_v12 }
 0x5ce   :  { %6540 = vmatprep.subr.bf16.mxu0 %v8463_v15 }
 0x5d1   :  { %6541 = vmatpush1.bf16.msra.mxu0 %v8461_v16 }
 0x5d2   :  { %6542 = vmatprep.subr.bf16.mxu0 %v8466_v27 }
 0x5d5   :  { %6543 = vmatpush1.bf16.msra.mxu0 %v8464_v29 }
 0x5d6   :  { %6544 = vmatprep.subr.bf16.mxu0 %v8469_v4 }
 0x5d9   :  { %6545 = vmatpush1.bf16.msra.mxu0 %v8467_v5 }
 0x5da   :  { %6546 = vmatprep.subr.bf16.mxu0 %v8472_v22 }
 0x5db   :  { %v6242_v19 = vpop.f32.mrb[12].mxu0  ;;  %v6406_v60 = vpop.f32.mrb[20].mxu1 }
 0x5dc   :  { %v7674_v59 = vadd.f32 %v6242_v19, %v3749_v2  ;;  %v6244_v13 = vpop.f32.mrb[13].mxu0  ;;  %v7676_v37 = vadd.f32 %v6406_v60, %v3757_v42  ;;  %v6408_v49 = vpop.f32.mrb[21].mxu1  ;;  %v3765_v19 = vrot.slane %v11264_v3, %v10288_v0 }
 0x5dd   :  { %v7675_v61 = vadd.f32 %v6244_v13, %v3753_v28  ;;  %v6246_v21 = vpop.f32.mrb[14].mxu0  ;;  %6547 = vmatpush1.bf16.msra.mxu0 %v8470_v32  ;;  %v7677_v40 = vadd.f32 %v6408_v49, %v3761_v31  ;;  %v6410_v34 = vpop.f32.mrb[22].mxu1 }
 0x5de   :  { %8531 = vtanh.f32 %v7674_v59  ;;  %v6247_v20 = vpop.f32.mrb[15].mxu0  ;;  %6548 = vmatprep.subr.bf16.mxu0 %v8475_v57  ;;  %v6411_v26 = vpop.f32.mrb[23].mxu1  ;;  %v3769_v59 = vrot.slane %v11264_v3, %v10291_v1 }
 0x5df   :  { %8533 = vtanh.f32 %v7676_v37 }
 0x5e0   :  { %8535 = vtanh.f32 %v7675_v61 }
 0x5e1   :  { %8537 = vtanh.f32 %v7677_v40  ;;  %6549 = vmatpush1.bf16.msra.mxu0 %v8473_v44 }
 0x5e2   :  { %6550 = vmatprep.subr.bf16.mxu0 %v8478_v56 }
 0x5e5   :  { %6551 = vmatpush1.bf16.msra.mxu0 %v8476_v35 }
 0x5e6   :  { %6552 = vmatprep.subr.bf16.mxu0 %v8481_v36 }
 0x5e8   :  { %v8532_v18 = vpop.eup %8531 }
 0x5e9   :  { %v8534_v39 = vpop.eup %8533  ;;  %6744 = vst [vmem:[%s11375_s7] sm:$0xff] %v8532_v18  ;;  %6553 = vmatpush1.bf16.msra.mxu0 %v8479_v46 }
 0x5ea   :  { %v8536_v25 = vpop.eup %8535  ;;  %6746 = vst [vmem:[%s11375_s7 + $0x10] sm:$0xff] %v8534_v39  ;;  %6554 = vmatprep.subr.bf16.mxu0 %v8484_v6 }
 0x5eb   :  { %v8538_v43 = vpop.eup %8537  ;;  %6745 = vst [vmem:[%s11375_s7 + $0x8] sm:$0xff] %v8536_v25 }
 0x5ec   :  { %6747 = vst [vmem:[%s11375_s7 + $0x18] sm:$0xff] %v8538_v43 }
 0x5ed   :  { %6555 = vmatpush1.bf16.msra.mxu0 %v8482_v41 }
 0x5ee   :  { %6556 = vmatprep.subr.bf16.mxu0 %v8487_v33 }
 0x5f1   :  { %6557 = vmatpush1.bf16.msra.mxu0 %v8485_v45 }
 0x5f2   :  { %6558 = vmatprep.subr.bf16.mxu0 %v8490_v47 }
 0x5f5   :  { %6559 = vmatpush1.bf16.msra.mxu0 %v8488_v48 }
 0x5f6   :  { %6560 = vmatprep.subr.bf16.mxu0 %v8493_v51 }
 0x5f9   :  { %6561 = vmatpush1.bf16.msra.mxu0 %v8491_v50 }
 0x5fa   :  { %6562 = vmatprep.subr.bf16.mxu0 %v8496_v23 }
 0x5fc   :  { %v7574_v30 = vpop.f32.mrb[24].mxu1 }
 0x5fd   :  { %v7575_v38 = vpop.f32.mrb[25].mxu1  ;;  %6563 = vmatpush1.bf16.msra.mxu0 %v8494_v52 }
 0x5fe   :  { %v7576_v55 = vadd.f32 %v7575_v38, %v7574_v30  ;;  %v7577_v17 = vpop.f32.mrb[26].mxu1  ;;  %6564 = vmatprep.subr.bf16.mxu0 %v8499_v53 }
 0x5ff   :  { %v7578_v58 = vpop.f32.mrb[27].mxu1 }
 0x600   :  { %v6612_v11 = vadd.f32 %v7576_v55, %v3773_v7 }
 0x601   :  { %6565 = vmatpush1.bf16.msra.mxu0 %v8497_v24 }
 0x602   :  { %6566 = vmatprep.subr.bf16.mxu0 %v8502_v54 }
 0x605   :  { %6567 = vmatpush1.bf16.msra.mxu0 %v8500_v62 }
 0x608   :  { %6569 = vmatmul.mubr.bf16.vlgmr.msra.gmra.mrb[16].mxu0 %v10741_v8 }
 0x61c   :  { %v7596_v9 = vpop.f32.mrb[28].mxu1 }
 0x61d   :  { %v7597_v10 = vpop.f32.mrb[29].mxu1 }
 0x61e   :  { %v7598_v14 = vadd.f32 %v7597_v10, %v7596_v9  ;;  %v7599_v12 = vpop.f32.mrb[30].mxu1 }
 0x61f   :  { %v7600_v15 = vpop.f32.mrb[31].mxu1 }
 0x620   :  { %v6652_v16 = vadd.f32 %v7598_v14, %v6612_v11 }
 0x63c   :  { %v7618_v27 = vpop.f32.mrb[32].mxu1 }
 0x63d   :  { %v7619_v29 = vpop.f32.mrb[33].mxu1 }
 0x63e   :  { %v7620_v4 = vadd.f32 %v7619_v29, %v7618_v27  ;;  %v7621_v5 = vpop.f32.mrb[34].mxu1 }
 0x63f   :  { %v7622_v22 = vpop.f32.mrb[35].mxu1 }
 0x640   :  { %v6692_v2 = vadd.f32 %v7620_v4, %v6652_v16 }
 0x65c   :  { %v7640_v42 = vpop.f32.mrb[36].mxu1 }
 0x65d   :  { %v7641_v28 = vpop.f32.mrb[37].mxu1 }
 0x65e   :  { %v7642_v32 = vadd.f32 %v7641_v28, %v7640_v42  ;;  %v7643_v8 = vpop.f32.mrb[38].mxu1 }
 0x65f   :  { %v7644_v31 = vpop.f32.mrb[39].mxu1 }
 0x660   :  { %v6732_v57 = vadd.f32 %v7642_v32, %v6692_v2 }
 0x662   :  { %8539 = vtanh.f32 %v6732_v57 }
 0x66c   :  { %v8540_v63 = vpop.eup %8539 }
 0x66d   :  { %6751 = vst.msk [vmem:[%s11375_s7 + $0x30] sm:$0xff] %vm6750_vm0, %v8540_v63 }
 0x6db   :  { %v6570_v60 = vpop.f32.mrb[16].mxu0 }
 0x6dc   :  { %v7678_v13 = vadd.f32 %v6570_v60, %v3765_v19  ;;  %v6572_v37 = vpop.f32.mrb[17].mxu0 }
 0x6dd   :  { %v7679_v61 = vadd.f32 %v6572_v37, %v3769_v59  ;;  %v6574_v49 = vpop.f32.mrb[18].mxu0 }
 0x6de   :  { %8541 = vtanh.f32 %v7678_v13  ;;  %v6575_v21 = vpop.f32.mrb[19].mxu0 }
 0x6df   :  { %8543 = vtanh.f32 %v7679_v61 }
 0x6e8   :  { %v8542_v44 = vpop.eup %8541 }
 0x6e9   :  { %v8544_v40 = vpop.eup %8543  ;;  %6748 = vst [vmem:[%s11375_s7 + $0x20] sm:$0xff] %v8542_v44 }
 0x6ea   :  { %6749 = vst [vmem:[%s11375_s7 + $0x28] sm:$0xff] %v8544_v40 }

</bundles_post_ra>
